<compile_context>
chip_gen: v7x
topology: tpu7x:2x2x1
jax: 0.10.0
libtpu: 0.0.40
codegen_flags: <defaults>
</compile_context>

<pallas_src>
import functools

import numpy as np
import jax
import jax.numpy as jnp
from jax import lax
from jax.experimental import pallas as pl
from jax.experimental.pallas import tpu as pltpu

LEAKY_SLOPE = 0.01   # torch.nn.LeakyReLU default negative_slope
LN_EPS = 1e-5        # torch.nn.LayerNorm default eps


# ---------------------------------------------------------------------------
# Trace-time numpy helpers (all become compile-time constants).
# ---------------------------------------------------------------------------
def _resize_coords(in_n, out_n):
    # torch.nn.Upsample(mode='bilinear', align_corners=False)
    scale = in_n / out_n
    i = np.arange(out_n, dtype=np.float32)
    src = np.maximum((i + 0.5) * scale - 0.5, 0.0)
    i0 = np.minimum(np.floor(src).astype(np.int32), in_n - 1)
    i1 = np.minimum(i0 + 1, in_n - 1)
    frac = (src - i0).astype(np.float32)
    return i0, i1, frac


def _resize_matrix(in_n, out_n):
    i0, i1, frac = _resize_coords(in_n, out_n)
    r = np.zeros((out_n, in_n), np.float32)
    np.add.at(r, (np.arange(out_n), i0), 1.0 - frac)
    np.add.at(r, (np.arange(out_n), i1), frac)
    return r


def _resize_matrix_2d(in_h, in_w, out_h, out_w):
    # out_flat = R2d @ in_flat (row-major h*W+w ordering)
    return np.kron(_resize_matrix(in_h, out_h), _resize_matrix(in_w, out_w))


def _tap_masks(H, W):
    hh, ww = np.meshgrid(np.arange(H), np.arange(W), indexing="ij")
    h, w = hh.reshape(-1), ww.reshape(-1)
    m = []
    for dy in (-1, 0, 1):
        for dx in (-1, 0, 1):
            valid = (h + dy >= 0) & (h + dy < H) & (w + dx >= 0) & (w + dx < W)
            m.append(valid.astype(np.float32))
    return np.stack(m, axis=0)          # (9, H*W)


# ---------------------------------------------------------------------------
# Kernel helpers
# ---------------------------------------------------------------------------
def _seg_ln_stats(v, seg_ref, segT_ref, inv_cnt):
    """Per-sample LayerNorm stats of v (rows, Bt*N), samples contiguous on lanes.

    Lane reductions run on the MXU via the segment-indicator matmul (seg) and
    the per-sample stats are expanded back to lanes with segT; only a tiny
    (rows, Bt) cross-sublane reduce stays on the VPU.
    Returns (mu_full, inv_full), each (1, Bt*N).
    """
    seg = seg_ref[...]
    s1 = jnp.sum(jnp.dot(v, seg, preferred_element_type=jnp.float32),
                 axis=0, keepdims=True)                     # (1, Bt)
    s2 = jnp.sum(jnp.dot(v * v, seg, preferred_element_type=jnp.float32),
                 axis=0, keepdims=True)                     # (1, Bt)
    mu = s1 * inv_cnt
    var = s2 * inv_cnt - mu * mu
    inv = lax.rsqrt(var + LN_EPS)
    segT = segT_ref[...]
    mu_full = jnp.dot(mu, segT, preferred_element_type=jnp.float32)    # (1, L)
    inv_full = jnp.dot(inv, segT, preferred_element_type=jnp.float32)  # (1, L)
    return mu_full, inv_full


def _conv3x3_lrelu_ln(x, xcol_ref, maskcol_ref, w_aug, g_t, be_t,
                      seg_ref, segT_ref, *, C, CMR, W, inv_cnt):
    """Conv2d(3x3, pad=1) + LeakyReLU + per-sample LayerNorm, batch on lanes.

    x: (C, L) with L = Bt*N.  The 9 taps (roll + precomputed boundary mask) are
    staged into the xcol VMEM scratch (aligned row blocks, bounded vreg live
    range) together with a ones row; conv + bias is then one MXU matmul
    w_aug (Cout, 9C+1) @ xcol[0:9C+1] (9C+1, L).
    """
    L = x.shape[1]
    t = 0
    for dy in (-1, 0, 1):
        for dx in (-1, 0, 1):
            s = dy * W + dx
            r0 = t * C
            if s == 0:
                xcol_ref[r0:r0 + C, :] = x                          # center tap
            else:
                xs = pltpu.roll(x, shift=(-s) % L, axis=1)
                xcol_ref[r0:r0 + C, :] = xs * maskcol_ref[t * CMR:t * CMR + C, :]
            t += 1
    xcol_ref[9 * C:9 * C + 1, :] = jnp.ones((1, L), jnp.float32)    # bias row

    y = jnp.dot(w_aug, xcol_ref[0:9 * C + 1, :],
                preferred_element_type=jnp.float32)                 # (Cout, L)
    y = jnp.where(y >= 0, y, LEAKY_SLOPE * y)

    mu_f, inv_f = _seg_ln_stats(y, seg_ref, segT_ref, inv_cnt)
    return (y - mu_f) * (inv_f * g_t) + be_t


def generator_block_kernel(inp_ref, prev_ref, vgg_ref,
                           rinpT_ref, rprevT_ref, seg_ref, segT_ref,
                           maskcol_ref, lngv_ref, lngnv_ref, lnb_ref,
                           w1_ref, g1_ref, be1_ref,
                           w2_ref, g2_ref, be2_ref,
                           out_ref, xcol_ref,
                           *, H, W, Bt, Cv, Cin, Cout, CMR):
    N = H * W
    rinpT = rinpT_ref[...]
    rprevT = rprevT_ref[...]

    # Fused bilinear resizes (one small MXU matmul per sample / stream) and
    # channel packing into the folded (Cin, Bt*N) layout.
    xi = jnp.concatenate(
        [jnp.dot(inp_ref[b], rinpT, preferred_element_type=jnp.float32)
         for b in range(Bt)], axis=1)                               # (1,  L)
    xp = jnp.concatenate(
        [jnp.dot(prev_ref[b], rprevT, preferred_element_type=jnp.float32)
         for b in range(Bt)], axis=1)                               # (Cp, L)
    xv = jnp.concatenate([vgg_ref[b] for b in range(Bt)], axis=1)   # (Cv, L)
    x = jnp.concatenate([xi, xp, xv], axis=0)                       # (Cin, L)

    # vgg LayerNorm (per sample, over Cv*H*W) folded into per-position
    # scale/shift constants; non-vgg rows pass through (scale 1, shift 0).
    mu_f, inv_f = _seg_ln_stats(xv, seg_ref, segT_ref, 1.0 / (Cv * N))
    a = lngv_ref[...] * inv_f + lngnv_ref[...]
    sh = lnb_ref[...] - lngv_ref[...] * (mu_f * inv_f)
    xn = x * a + sh

    h1 = _conv3x3_lrelu_ln(xn, xcol_ref, maskcol_ref, w1_ref[...],
                           g1_ref[...], be1_ref[...], seg_ref, segT_ref,
                           C=Cin, CMR=CMR, W=W, inv_cnt=1.0 / (Cout * N))
    h2 = _conv3x3_lrelu_ln(h1, xcol_ref, maskcol_ref, w2_ref[...],
                           g2_ref[...], be2_ref[...], seg_ref, segT_ref,
                           C=Cout, CMR=CMR, W=W, inv_cnt=1.0 / (Cout * N))

    # Unfold samples from lanes back to the (Bt, Cout, N) output block; each
    # per-sample store is a lane-aligned (Cout, 256) slab.
    for b in range(Bt):
        out_ref[b] = h2[:, b * N:(b + 1) * N].astype(out_ref.dtype)


# ---------------------------------------------------------------------------
# Factory: all parameter massaging done with numpy; returns a jitted forward.
# ---------------------------------------------------------------------------
def make_generator_block(params, block_size, *, max_samples_per_tile=8):
    H = W = block_size
    N = H * W

    w1 = np.asarray(params["w1"], np.float32)
    w2 = np.asarray(params["w2"], np.float32)
    b1 = np.asarray(params["b1"], np.float32)
    b2 = np.asarray(params["b2"], np.float32)
    g1 = np.asarray(params["g1"], np.float32).reshape(-1, N)
    be1 = np.asarray(params["be1"], np.float32).reshape(-1, N)
    g2 = np.asarray(params["g2"], np.float32).reshape(-1, N)
    be2 = np.asarray(params["be2"], np.float32).reshape(-1, N)
    lng = np.asarray(params["ln_g"], np.float32).reshape(-1, N)
    lnb = np.asarray(params["ln_b"], np.float32).reshape(-1, N)

    Cout, Cin = w1.shape[:2]
    Cv = lng.shape[0]
    n_pre = Cin - Cv          # input channel (1) + prev channels
    Cp = n_pre - 1
    CMR = max(Cin, Cout)

    # Conv weights -> im2col layout (Cout, 9*Cin), bias folded as last column.
    wcol1 = np.concatenate(
        [w1.transpose(0, 2, 3, 1).reshape(Cout, 9 * Cin), b1[:, None]], axis=1)
    wcol2 = np.concatenate(
        [w2.transpose(0, 2, 3, 1).reshape(Cout, 9 * Cout), b2[:, None]], axis=1)

    # vgg LayerNorm affine, padded to full channel width (identity elsewhere).
    lngv = np.concatenate([np.zeros((n_pre, N), np.float32), lng], axis=0)
    lngnv = np.concatenate([np.ones((n_pre, N), np.float32),
                            np.zeros((Cv, N), np.float32)], axis=0)
    lnbf = np.concatenate([np.zeros((n_pre, N), np.float32), lnb], axis=0)

    base_masks = _tap_masks(H, W)        # (9, N)

    def forward(inp, prev, vgg):
        B = inp.shape[0]
        Hi, Wi = inp.shape[2], inp.shape[3]
        Hp, Wp = prev.shape[2], prev.shape[3]
        n_inp, n_prev = Hi * Wi, Hp * Wp

        # Batch tiling: fold Bt samples onto lanes per grid step, keep >=2 grid
        # steps when possible (v7x has 2 TensorCores).
        num_tiles = 2 if B >= 2 else 1
        Bt = -(-B // num_tiles)
        while Bt > max_samples_per_tile:
            num_tiles *= 2
            Bt = -(-B // num_tiles)
        L = Bt * N
        Bpad = num_tiles * Bt

        # Trace-time constants (numpy -> baked into the executable).
        rinpT = jnp.asarray(np.ascontiguousarray(_resize_matrix_2d(Hi, Wi, H, W).T))
        rprevT = jnp.asarray(np.ascontiguousarray(_resize_matrix_2d(Hp, Wp, H, W).T))
        seg_np = np.zeros((L, Bt), np.float32)
        for b in range(Bt):
            seg_np[b * N:(b + 1) * N, b] = 1.0
        seg = jnp.asarray(seg_np)
        segT = jnp.asarray(np.ascontiguousarray(seg_np.T))
        maskcol = jnp.asarray(np.tile(np.repeat(base_masks, CMR, axis=0), (1, Bt)))
        tile = lambda a: jnp.asarray(np.tile(a, (1, Bt)))
        lngv_t, lngnv_t, lnb_t = tile(lngv), tile(lngnv), tile(lnbf)
        g1_t, be1_t, g2_t, be2_t = tile(g1), tile(be1), tile(g2), tile(be2)
        w1c, w2c = jnp.asarray(wcol1), jnp.asarray(wcol2)

        inp_f = inp.reshape(B, 1, n_inp)
        prev_f = prev.reshape(B, Cp, n_prev)
        vgg_f = vgg.reshape(B, Cv, N)
        if Bpad != B:
            pad = ((0, Bpad - B), (0, 0), (0, 0))
            inp_f = jnp.pad(inp_f, pad)
            prev_f = jnp.pad(prev_f, pad)
            vgg_f = jnp.pad(vgg_f, pad)

        def tiled_spec(c, n):
            return pl.BlockSpec((Bt, c, n), lambda t: (t, 0, 0))

        def fixed_spec(arr):
            nd = arr.ndim
            return pl.BlockSpec(arr.shape, lambda t, _n=nd: (0,) * _n)

        kernel = functools.partial(
            generator_block_kernel, H=H, W=W, Bt=Bt, Cv=Cv,
            Cin=Cin, Cout=Cout, CMR=CMR)

        out = pl.pallas_call(
            kernel,
            out_shape=jax.ShapeDtypeStruct((Bpad, Cout, N), jnp.float32),
            grid=(num_tiles,),
            in_specs=[
                tiled_spec(1, n_inp), tiled_spec(Cp, n_prev), tiled_spec(Cv, N),
                fixed_spec(rinpT), fixed_spec(rprevT),
                fixed_spec(seg), fixed_spec(segT), fixed_spec(maskcol),
                fixed_spec(lngv_t), fixed_spec(lngnv_t), fixed_spec(lnb_t),
                fixed_spec(w1c), fixed_spec(g1_t), fixed_spec(be1_t),
                fixed_spec(w2c), fixed_spec(g2_t), fixed_spec(be2_t),
            ],
            out_specs=pl.BlockSpec((Bt, Cout, N), lambda t: (t, 0, 0)),
            scratch_shapes=[pltpu.VMEM((9 * CMR + 1, L), jnp.float32)],
            compiler_params=pltpu.CompilerParams(
                dimension_semantics=("parallel",)),
        )(inp_f, prev_f, vgg_f, rinpT, rprevT, seg, segT, maskcol,
          lngv_t, lngnv_t, lnb_t, w1c, g1_t, be1_t, w2c, g2_t, be2_t)

        if Bpad != B:
            out = out[:B]
        return out.reshape(B, Cout, H, W)

    return jax.jit(forward)


# ---------------------------------------------------------------------------
# Pure-JAX reference (mirrors the PyTorch forward) for the correctness check.
# ---------------------------------------------------------------------------
def bilinear_resize_nchw(x, out_size):
    _, _, H, W = x.shape
    h0, h1, fh = _resize_coords(H, out_size)
    w0, w1, fw = _resize_coords(W, out_size)
    fh = fh[None, None, :, None]
    fw = fw[None, None, None, :]
    xh = x[:, :, h0, :] * (1.0 - fh) + x[:, :, h1, :] * fh
    return xh[:, :, :, w0] * (1.0 - fw) + xh[:, :, :, w1] * fw


def reference_forward(inp, prev, vgg, params, block_size):
    inp_r = bilinear_resize_nchw(inp, block_size)
    prev_r = bilinear_resize_nchw(prev, block_size)
    mu = jnp.mean(vgg, axis=(1, 2, 3), keepdims=True)
    var = jnp.mean((vgg - mu) ** 2, axis=(1, 2, 3), keepdims=True)
    vggn = (vgg - mu) / jnp.sqrt(var + LN_EPS) * params["ln_g"][None] + params["ln_b"][None]
    x = jnp.concatenate([inp_r, prev_r, vggn], axis=1)

    def block(x, w, b, g, be):
        y = lax.conv_general_dilated(x, w, (1, 1), [(1, 1), (1, 1)],
                                     dimension_numbers=("NCHW", "OIHW", "NCHW"))
        y = y + b[None, :, None, None]
        y = jnp.where(y >= 0, y, LEAKY_SLOPE * y)
        m = jnp.mean(y, axis=(1, 2, 3), keepdims=True)
        v = jnp.mean((y - m) ** 2, axis=(1, 2, 3), keepdims=True)
        return (y - m) / jnp.sqrt(v + LN_EPS) * g[None] + be[None]

    x = block(x, params["w1"], params["b1"], params["g1"], params["be1"])
    x = block(x, params["w2"], params["b2"], params["g2"], params["be2"])
    return x


if __name__ == "__main__":
    # Module config: prev_channels=3, vgg_channels=4, out_channels=8,
    # block_size=16, initial=False  ->  Cin = 4 + 1 + 3 = 8.
    B, prev_channels, vgg_channels, out_channels, block_size = 4, 3, 4, 8, 16
    cin = vgg_channels + 1 + prev_channels

    key = jax.random.PRNGKey(0)
    ks = jax.random.split(key, 13)
    params = {
        "ln_g": 1.0 + 0.1 * jax.random.normal(ks[0], (vgg_channels, block_size, block_size), jnp.float32),
        "ln_b": 0.1 * jax.random.normal(ks[1], (vgg_channels, block_size, block_size), jnp.float32),
        "w1": 0.1 * jax.random.normal(ks[2], (out_channels, cin, 3, 3), jnp.float32),
        "b1": 0.05 * jax.random.normal(ks[3], (out_channels,), jnp.float32),
        "g1": 1.0 + 0.1 * jax.random.normal(ks[4], (out_channels, block_size, block_size), jnp.float32),
        "be1": 0.1 * jax.random.normal(ks[5], (out_channels, block_size, block_size), jnp.float32),
        "w2": 0.1 * jax.random.normal(ks[6], (out_channels, out_channels, 3, 3), jnp.float32),
        "b2": 0.05 * jax.random.normal(ks[7], (out_channels,), jnp.float32),
        "g2": 1.0 + 0.1 * jax.random.normal(ks[8], (out_channels, block_size, block_size), jnp.float32),
        "be2": 0.1 * jax.random.normal(ks[9], (out_channels, block_size, block_size), jnp.float32),
    }

    inp = jax.random.normal(ks[10], (B, 1, 32, 32), jnp.float32)          # main input (1 channel)
    prev = jax.random.normal(ks[11], (B, prev_channels, 8, 8), jnp.float32)
    vgg = jax.random.normal(ks[12], (B, vgg_channels, block_size, block_size), jnp.float32)

    forward = make_generator_block(params, block_size)
    out = jax.block_until_ready(forward(inp, prev, vgg))

    ref = jax.block_until_ready(reference_forward(inp, prev, vgg, params, block_size))
    max_err = float(jnp.max(jnp.abs(out - ref)))
    assert out.shape == (B, out_channels, block_size, block_size), out.shape
    assert max_err < 2e-3, f"max abs error vs reference: {max_err}"
    print("KERNEL_OK")
</pallas_src>

<mosaic_0001>
module attributes {stable_mosaic.version = 11 : i64} {
  func.func @generator_block_kernel(%arg0: i32, %arg1: memref<2x1x1024xf32, #tpu.memory_space<vmem>>, %arg2: memref<2x3x64xf32, #tpu.memory_space<vmem>>, %arg3: memref<2x4x256xf32, #tpu.memory_space<vmem>>, %arg4: memref<1024x256xf32, #tpu.memory_space<vmem>>, %arg5: memref<64x256xf32, #tpu.memory_space<vmem>>, %arg6: memref<512x2xf32, #tpu.memory_space<vmem>>, %arg7: memref<2x512xf32, #tpu.memory_space<vmem>>, %arg8: memref<72x512xf32, #tpu.memory_space<vmem>>, %arg9: memref<8x512xf32, #tpu.memory_space<vmem>>, %arg10: memref<8x512xf32, #tpu.memory_space<vmem>>, %arg11: memref<8x512xf32, #tpu.memory_space<vmem>>, %arg12: memref<8x73xf32, #tpu.memory_space<vmem>>, %arg13: memref<8x512xf32, #tpu.memory_space<vmem>>, %arg14: memref<8x512xf32, #tpu.memory_space<vmem>>, %arg15: memref<8x73xf32, #tpu.memory_space<vmem>>, %arg16: memref<8x512xf32, #tpu.memory_space<vmem>>, %arg17: memref<8x512xf32, #tpu.memory_space<vmem>>, %arg18: memref<2x8x256xf32, #tpu.memory_space<vmem>>, %arg19: memref<73x512xf32, #tpu.memory_space<vmem>>) attributes {dimension_semantics = [#tpu.dimension_semantics<parallel>], iteration_bounds = array<i64: 2>, scalar_prefetch = 0 : i64, scratch_operands = 1 : i64, tpu.core_type = #tpu.core_type<tc>, window_params = [{transform_indices = @transform_0, window_bounds = array<i64: 2, 1, 1024>}, {transform_indices = @transform_1, window_bounds = array<i64: 2, 3, 64>}, {transform_indices = @transform_2, window_bounds = array<i64: 2, 4, 256>}, {pipeline_mode = #tpu.pipeline_mode<synchronous>, transform_indices = @transform_3, window_bounds = array<i64: 1024, 256>}, {pipeline_mode = #tpu.pipeline_mode<synchronous>, transform_indices = @transform_4, window_bounds = array<i64: 64, 256>}, {pipeline_mode = #tpu.pipeline_mode<synchronous>, transform_indices = @transform_5, window_bounds = array<i64: 512, 2>}, {pipeline_mode = #tpu.pipeline_mode<synchronous>, transform_indices = @transform_6, window_bounds = array<i64: 2, 512>}, {pipeline_mode = #tpu.pipeline_mode<synchronous>, transform_indices = @transform_7, window_bounds = array<i64: 72, 512>}, {pipeline_mode = #tpu.pipeline_mode<synchronous>, transform_indices = @transform_8, window_bounds = array<i64: 8, 512>}, {pipeline_mode = #tpu.pipeline_mode<synchronous>, transform_indices = @transform_9, window_bounds = array<i64: 8, 512>}, {pipeline_mode = #tpu.pipeline_mode<synchronous>, transform_indices = @transform_10, window_bounds = array<i64: 8, 512>}, {pipeline_mode = #tpu.pipeline_mode<synchronous>, transform_indices = @transform_11, window_bounds = array<i64: 8, 73>}, {pipeline_mode = #tpu.pipeline_mode<synchronous>, transform_indices = @transform_12, window_bounds = array<i64: 8, 512>}, {pipeline_mode = #tpu.pipeline_mode<synchronous>, transform_indices = @transform_13, window_bounds = array<i64: 8, 512>}, {pipeline_mode = #tpu.pipeline_mode<synchronous>, transform_indices = @transform_14, window_bounds = array<i64: 8, 73>}, {pipeline_mode = #tpu.pipeline_mode<synchronous>, transform_indices = @transform_15, window_bounds = array<i64: 8, 512>}, {pipeline_mode = #tpu.pipeline_mode<synchronous>, transform_indices = @transform_16, window_bounds = array<i64: 8, 512>}, {transform_indices = @transform_17, window_bounds = array<i64: 2, 8, 256>}]} {
    %c0 = arith.constant 0 : index
    %c0_0 = arith.constant 0 : index
    %0 = vector.load %arg4[%c0, %c0_0] : memref<1024x256xf32, #tpu.memory_space<vmem>>, vector<1024x256xf32>
    %c0_1 = arith.constant 0 : index
    %c0_2 = arith.constant 0 : index
    %1 = vector.load %arg5[%c0_1, %c0_2] : memref<64x256xf32, #tpu.memory_space<vmem>>, vector<64x256xf32>
    %c0_3 = arith.constant 0 : index
    %c0_4 = arith.constant 0 : index
    %c0_5 = arith.constant 0 : index
    %2 = vector.load %arg1[%c0_3, %c0_4, %c0_5] : memref<2x1x1024xf32, #tpu.memory_space<vmem>>, vector<1x1x1024xf32>
    %3 = vector.shape_cast %2 : vector<1x1x1024xf32> to vector<1x1024xf32>
    %cst = arith.constant dense<0.000000e+00> : vector<1x256xf32>
    %4 = tpu.matmul %3, %0, %cst {dimension_numbers = #tpu.dot_dimension_numbers<[1], [0], [0], [1], [0, 0, 1, 1], [], []>} : vector<1x1024xf32>, vector<1024x256xf32>, vector<1x256xf32> -> vector<1x256xf32>
    %c1 = arith.constant 1 : index
    %c0_6 = arith.constant 0 : index
    %c0_7 = arith.constant 0 : index
    %5 = vector.load %arg1[%c1, %c0_6, %c0_7] : memref<2x1x1024xf32, #tpu.memory_space<vmem>>, vector<1x1x1024xf32>
    %6 = vector.shape_cast %5 : vector<1x1x1024xf32> to vector<1x1024xf32>
    %cst_8 = arith.constant dense<0.000000e+00> : vector<1x256xf32>
    %7 = tpu.matmul %6, %0, %cst_8 {dimension_numbers = #tpu.dot_dimension_numbers<[1], [0], [0], [1], [0, 0, 1, 1], [], []>} : vector<1x1024xf32>, vector<1024x256xf32>, vector<1x256xf32> -> vector<1x256xf32>
    %8 = tpu.concatenate %4, %7 in 1 : vector<1x256xf32>, vector<1x256xf32> -> vector<1x512xf32>
    %c0_9 = arith.constant 0 : index
    %c0_10 = arith.constant 0 : index
    %c0_11 = arith.constant 0 : index
    %9 = vector.load %arg2[%c0_9, %c0_10, %c0_11] : memref<2x3x64xf32, #tpu.memory_space<vmem>>, vector<1x3x64xf32>
    %10 = vector.shape_cast %9 : vector<1x3x64xf32> to vector<3x64xf32>
    %cst_12 = arith.constant dense<0.000000e+00> : vector<3x256xf32>
    %11 = tpu.matmul %10, %1, %cst_12 {dimension_numbers = #tpu.dot_dimension_numbers<[1], [0], [0], [1], [0, 0, 1, 1], [], []>} : vector<3x64xf32>, vector<64x256xf32>, vector<3x256xf32> -> vector<3x256xf32>
    %c1_13 = arith.constant 1 : index
    %c0_14 = arith.constant 0 : index
    %c0_15 = arith.constant 0 : index
    %12 = vector.load %arg2[%c1_13, %c0_14, %c0_15] : memref<2x3x64xf32, #tpu.memory_space<vmem>>, vector<1x3x64xf32>
    %13 = vector.shape_cast %12 : vector<1x3x64xf32> to vector<3x64xf32>
    %cst_16 = arith.constant dense<0.000000e+00> : vector<3x256xf32>
    %14 = tpu.matmul %13, %1, %cst_16 {dimension_numbers = #tpu.dot_dimension_numbers<[1], [0], [0], [1], [0, 0, 1, 1], [], []>} : vector<3x64xf32>, vector<64x256xf32>, vector<3x256xf32> -> vector<3x256xf32>
    %15 = tpu.concatenate %11, %14 in 1 : vector<3x256xf32>, vector<3x256xf32> -> vector<3x512xf32>
    %c0_17 = arith.constant 0 : index
    %c0_18 = arith.constant 0 : index
    %c0_19 = arith.constant 0 : index
    %16 = vector.load %arg3[%c0_17, %c0_18, %c0_19] : memref<2x4x256xf32, #tpu.memory_space<vmem>>, vector<1x4x256xf32>
    %17 = vector.shape_cast %16 : vector<1x4x256xf32> to vector<4x256xf32>
    %c1_20 = arith.constant 1 : index
    %c0_21 = arith.constant 0 : index
    %c0_22 = arith.constant 0 : index
    %18 = vector.load %arg3[%c1_20, %c0_21, %c0_22] : memref<2x4x256xf32, #tpu.memory_space<vmem>>, vector<1x4x256xf32>
    %19 = vector.shape_cast %18 : vector<1x4x256xf32> to vector<4x256xf32>
    %20 = tpu.concatenate %17, %19 in 1 : vector<4x256xf32>, vector<4x256xf32> -> vector<4x512xf32>
    %21 = tpu.concatenate %8, %15, %20 in 0 : vector<1x512xf32>, vector<3x512xf32>, vector<4x512xf32> -> vector<8x512xf32>
    %c0_23 = arith.constant 0 : index
    %c0_24 = arith.constant 0 : index
    %22 = vector.load %arg6[%c0_23, %c0_24] : memref<512x2xf32, #tpu.memory_space<vmem>>, vector<512x2xf32>
    %cst_25 = arith.constant dense<0.000000e+00> : vector<4x2xf32>
    %23 = tpu.matmul %20, %22, %cst_25 {dimension_numbers = #tpu.dot_dimension_numbers<[1], [0], [0], [1], [0, 0, 1, 1], [], []>} : vector<4x512xf32>, vector<512x2xf32>, vector<4x2xf32> -> vector<4x2xf32>
    %cst_26 = arith.constant dense<0.000000e+00> : vector<2xf32>
    %24 = vector.multi_reduction <add>, %23, %cst_26 [0] : vector<4x2xf32> to vector<2xf32>
    %25 = vector.shape_cast %24 : vector<2xf32> to vector<1x2xf32>
    %26 = arith.mulf %20, %20 : vector<4x512xf32>
    %cst_27 = arith.constant dense<0.000000e+00> : vector<4x2xf32>
    %27 = tpu.matmul %26, %22, %cst_27 {dimension_numbers = #tpu.dot_dimension_numbers<[1], [0], [0], [1], [0, 0, 1, 1], [], []>} : vector<4x512xf32>, vector<512x2xf32>, vector<4x2xf32> -> vector<4x2xf32>
    %cst_28 = arith.constant dense<0.000000e+00> : vector<2xf32>
    %28 = vector.multi_reduction <add>, %27, %cst_28 [0] : vector<4x2xf32> to vector<2xf32>
    %29 = vector.shape_cast %28 : vector<2xf32> to vector<1x2xf32>
    %cst_29 = arith.constant 9.765625E-4 : f32
    %30 = vector.broadcast %cst_29 : f32 to vector<1x2xf32>
    %31 = arith.mulf %25, %30 : vector<1x2xf32>
    %cst_30 = arith.constant 9.765625E-4 : f32
    %32 = vector.broadcast %cst_30 : f32 to vector<1x2xf32>
    %33 = arith.mulf %29, %32 : vector<1x2xf32>
    %34 = arith.mulf %31, %31 : vector<1x2xf32>
    %35 = arith.subf %33, %34 : vector<1x2xf32>
    %cst_31 = arith.constant 9.99999974E-6 : f32
    %36 = vector.broadcast %cst_31 : f32 to vector<1x2xf32>
    %37 = arith.addf %35, %36 : vector<1x2xf32>
    %38 = math.rsqrt %37 : vector<1x2xf32>
    %c0_32 = arith.constant 0 : index
    %c0_33 = arith.constant 0 : index
    %39 = vector.load %arg7[%c0_32, %c0_33] : memref<2x512xf32, #tpu.memory_space<vmem>>, vector<2x512xf32>
    %cst_34 = arith.constant dense<0.000000e+00> : vector<1x512xf32>
    %40 = tpu.matmul %31, %39, %cst_34 {dimension_numbers = #tpu.dot_dimension_numbers<[1], [0], [0], [1], [0, 0, 1, 1], [], []>} : vector<1x2xf32>, vector<2x512xf32>, vector<1x512xf32> -> vector<1x512xf32>
    %cst_35 = arith.constant dense<0.000000e+00> : vector<1x512xf32>
    %41 = tpu.matmul %38, %39, %cst_35 {dimension_numbers = #tpu.dot_dimension_numbers<[1], [0], [0], [1], [0, 0, 1, 1], [], []>} : vector<1x2xf32>, vector<2x512xf32>, vector<1x512xf32> -> vector<1x512xf32>
    %c0_36 = arith.constant 0 : index
    %c0_37 = arith.constant 0 : index
    %42 = vector.load %arg9[%c0_36, %c0_37] : memref<8x512xf32, #tpu.memory_space<vmem>>, vector<8x512xf32>
    %43 = vector.broadcast %41 : vector<1x512xf32> to vector<8x512xf32>
    %44 = arith.mulf %42, %43 : vector<8x512xf32>
    %c0_38 = arith.constant 0 : index
    %c0_39 = arith.constant 0 : index
    %45 = vector.load %arg10[%c0_38, %c0_39] : memref<8x512xf32, #tpu.memory_space<vmem>>, vector<8x512xf32>
    %46 = arith.addf %44, %45 : vector<8x512xf32>
    %c0_40 = arith.constant 0 : index
    %c0_41 = arith.constant 0 : index
    %47 = vector.load %arg11[%c0_40, %c0_41] : memref<8x512xf32, #tpu.memory_space<vmem>>, vector<8x512xf32>
    %c0_42 = arith.constant 0 : index
    %c0_43 = arith.constant 0 : index
    %48 = vector.load %arg9[%c0_42, %c0_43] : memref<8x512xf32, #tpu.memory_space<vmem>>, vector<8x512xf32>
    %49 = arith.mulf %40, %41 : vector<1x512xf32>
    %50 = vector.broadcast %49 : vector<1x512xf32> to vector<8x512xf32>
    %51 = arith.mulf %48, %50 : vector<8x512xf32>
    %52 = arith.subf %47, %51 : vector<8x512xf32>
    %53 = arith.mulf %21, %46 : vector<8x512xf32>
    %54 = arith.addf %53, %52 : vector<8x512xf32>
    %c0_44 = arith.constant 0 : index
    %c0_45 = arith.constant 0 : index
    %55 = vector.load %arg12[%c0_44, %c0_45] : memref<8x73xf32, #tpu.memory_space<vmem>>, vector<8x73xf32>
    %c0_46 = arith.constant 0 : index
    %c0_47 = arith.constant 0 : index
    %56 = vector.load %arg13[%c0_46, %c0_47] : memref<8x512xf32, #tpu.memory_space<vmem>>, vector<8x512xf32>
    %c0_48 = arith.constant 0 : index
    %c0_49 = arith.constant 0 : index
    %57 = vector.load %arg14[%c0_48, %c0_49] : memref<8x512xf32, #tpu.memory_space<vmem>>, vector<8x512xf32>
    %c17_i32 = arith.constant 17 : i32
    %58 = tpu.dynamic_rotate %54 by %c17_i32 dim 1 : vector<8x512xf32>, i32 -> vector<8x512xf32>
    %c0_50 = arith.constant 0 : index
    %c0_51 = arith.constant 0 : index
    %59 = vector.load %arg8[%c0_50, %c0_51] : memref<72x512xf32, #tpu.memory_space<vmem>>, vector<8x512xf32>
    %60 = arith.mulf %58, %59 : vector<8x512xf32>
    %c0_52 = arith.constant 0 : index
    %c0_53 = arith.constant 0 : index
    %61 = vector.load %arg19[%c0_52, %c0_53] : memref<73x512xf32, #tpu.memory_space<vmem>>, vector<8x512xf32>
    tpu.vector_store %arg19[%c0_52, %c0_53], %60 {strides = array<i32>} : memref<73x512xf32, #tpu.memory_space<vmem>>, vector<8x512xf32>,
    %c16_i32 = arith.constant 16 : i32
    %62 = tpu.dynamic_rotate %54 by %c16_i32 dim 1 : vector<8x512xf32>, i32 -> vector<8x512xf32>
    %c8 = arith.constant 8 : index
    %c0_54 = arith.constant 0 : index
    %63 = vector.load %arg8[%c8, %c0_54] : memref<72x512xf32, #tpu.memory_space<vmem>>, vector<8x512xf32>
    %64 = arith.mulf %62, %63 : vector<8x512xf32>
    %c8_55 = arith.constant 8 : index
    %c0_56 = arith.constant 0 : index
    %65 = vector.load %arg19[%c8_55, %c0_56] : memref<73x512xf32, #tpu.memory_space<vmem>>, vector<8x512xf32>
    tpu.vector_store %arg19[%c8_55, %c0_56], %64 {strides = array<i32>} : memref<73x512xf32, #tpu.memory_space<vmem>>, vector<8x512xf32>,
    %c15_i32 = arith.constant 15 : i32
    %66 = tpu.dynamic_rotate %54 by %c15_i32 dim 1 : vector<8x512xf32>, i32 -> vector<8x512xf32>
    %c16 = arith.constant 16 : index
    %c0_57 = arith.constant 0 : index
    %67 = vector.load %arg8[%c16, %c0_57] : memref<72x512xf32, #tpu.memory_space<vmem>>, vector<8x512xf32>
    %68 = arith.mulf %66, %67 : vector<8x512xf32>
    %c16_58 = arith.constant 16 : index
    %c0_59 = arith.constant 0 : index
    %69 = vector.load %arg19[%c16_58, %c0_59] : memref<73x512xf32, #tpu.memory_space<vmem>>, vector<8x512xf32>
    tpu.vector_store %arg19[%c16_58, %c0_59], %68 {strides = array<i32>} : memref<73x512xf32, #tpu.memory_space<vmem>>, vector<8x512xf32>,
    %c1_i32 = arith.constant 1 : i32
    %70 = tpu.dynamic_rotate %54 by %c1_i32 dim 1 : vector<8x512xf32>, i32 -> vector<8x512xf32>
    %c24 = arith.constant 24 : index
    %c0_60 = arith.constant 0 : index
    %71 = vector.load %arg8[%c24, %c0_60] : memref<72x512xf32, #tpu.memory_space<vmem>>, vector<8x512xf32>
    %72 = arith.mulf %70, %71 : vector<8x512xf32>
    %c24_61 = arith.constant 24 : index
    %c0_62 = arith.constant 0 : index
    %73 = vector.load %arg19[%c24_61, %c0_62] : memref<73x512xf32, #tpu.memory_space<vmem>>, vector<8x512xf32>
    tpu.vector_store %arg19[%c24_61, %c0_62], %72 {strides = array<i32>} : memref<73x512xf32, #tpu.memory_space<vmem>>, vector<8x512xf32>,
    %c32 = arith.constant 32 : index
    %c0_63 = arith.constant 0 : index
    %74 = vector.load %arg19[%c32, %c0_63] : memref<73x512xf32, #tpu.memory_space<vmem>>, vector<8x512xf32>
    tpu.vector_store %arg19[%c32, %c0_63], %54 {strides = array<i32>} : memref<73x512xf32, #tpu.memory_space<vmem>>, vector<8x512xf32>,
    %c511_i32 = arith.constant 511 : i32
    %75 = tpu.dynamic_rotate %54 by %c511_i32 dim 1 : vector<8x512xf32>, i32 -> vector<8x512xf32>
    %c40 = arith.constant 40 : index
    %c0_64 = arith.constant 0 : index
    %76 = vector.load %arg8[%c40, %c0_64] : memref<72x512xf32, #tpu.memory_space<vmem>>, vector<8x512xf32>
    %77 = arith.mulf %75, %76 : vector<8x512xf32>
    %c40_65 = arith.constant 40 : index
    %c0_66 = arith.constant 0 : index
    %78 = vector.load %arg19[%c40_65, %c0_66] : memref<73x512xf32, #tpu.memory_space<vmem>>, vector<8x512xf32>
    tpu.vector_store %arg19[%c40_65, %c0_66], %77 {strides = array<i32>} : memref<73x512xf32, #tpu.memory_space<vmem>>, vector<8x512xf32>,
    %c497_i32 = arith.constant 497 : i32
    %79 = tpu.dynamic_rotate %54 by %c497_i32 dim 1 : vector<8x512xf32>, i32 -> vector<8x512xf32>
    %c48 = arith.constant 48 : index
    %c0_67 = arith.constant 0 : index
    %80 = vector.load %arg8[%c48, %c0_67] : memref<72x512xf32, #tpu.memory_space<vmem>>, vector<8x512xf32>
    %81 = arith.mulf %79, %80 : vector<8x512xf32>
    %c48_68 = arith.constant 48 : index
    %c0_69 = arith.constant 0 : index
    %82 = vector.load %arg19[%c48_68, %c0_69] : memref<73x512xf32, #tpu.memory_space<vmem>>, vector<8x512xf32>
    tpu.vector_store %arg19[%c48_68, %c0_69], %81 {strides = array<i32>} : memref<73x512xf32, #tpu.memory_space<vmem>>, vector<8x512xf32>,
    %c496_i32 = arith.constant 496 : i32
    %83 = tpu.dynamic_rotate %54 by %c496_i32 dim 1 : vector<8x512xf32>, i32 -> vector<8x512xf32>
    %c56 = arith.constant 56 : index
    %c0_70 = arith.constant 0 : index
    %84 = vector.load %arg8[%c56, %c0_70] : memref<72x512xf32, #tpu.memory_space<vmem>>, vector<8x512xf32>
    %85 = arith.mulf %83, %84 : vector<8x512xf32>
    %c56_71 = arith.constant 56 : index
    %c0_72 = arith.constant 0 : index
    %86 = vector.load %arg19[%c56_71, %c0_72] : memref<73x512xf32, #tpu.memory_space<vmem>>, vector<8x512xf32>
    tpu.vector_store %arg19[%c56_71, %c0_72], %85 {strides = array<i32>} : memref<73x512xf32, #tpu.memory_space<vmem>>, vector<8x512xf32>,
    %c495_i32 = arith.constant 495 : i32
    %87 = tpu.dynamic_rotate %54 by %c495_i32 dim 1 : vector<8x512xf32>, i32 -> vector<8x512xf32>
    %c64 = arith.constant 64 : index
    %c0_73 = arith.constant 0 : index
    %88 = vector.load %arg8[%c64, %c0_73] : memref<72x512xf32, #tpu.memory_space<vmem>>, vector<8x512xf32>
    %89 = arith.mulf %87, %88 : vector<8x512xf32>
    %c64_74 = arith.constant 64 : index
    %c0_75 = arith.constant 0 : index
    %90 = vector.load %arg19[%c64_74, %c0_75] : memref<73x512xf32, #tpu.memory_space<vmem>>, vector<8x512xf32>
    tpu.vector_store %arg19[%c64_74, %c0_75], %89 {strides = array<i32>} : memref<73x512xf32, #tpu.memory_space<vmem>>, vector<8x512xf32>,
    %cst_76 = arith.constant 1.000000e+00 : f32
    %91 = vector.broadcast %cst_76 : f32 to vector<1x512xf32>
    %c72 = arith.constant 72 : index
    %c0_77 = arith.constant 0 : index
    %92 = vector.load %arg19[%c72, %c0_77] : memref<73x512xf32, #tpu.memory_space<vmem>>, vector<1x512xf32>
    tpu.vector_store %arg19[%c72, %c0_77], %91 {strides = array<i32>} : memref<73x512xf32, #tpu.memory_space<vmem>>, vector<1x512xf32>,
    %c0_78 = arith.constant 0 : index
    %c0_79 = arith.constant 0 : index
    %93 = vector.load %arg19[%c0_78, %c0_79] : memref<73x512xf32, #tpu.memory_space<vmem>>, vector<73x512xf32>
    %cst_80 = arith.constant dense<0.000000e+00> : vector<8x512xf32>
    %94 = tpu.matmul %55, %93, %cst_80 {dimension_numbers = #tpu.dot_dimension_numbers<[1], [0], [0], [1], [0, 0, 1, 1], [], []>} : vector<8x73xf32>, vector<73x512xf32>, vector<8x512xf32> -> vector<8x512xf32>
    %cst_81 = arith.constant 0.000000e+00 : f32
    %95 = vector.broadcast %cst_81 : f32 to vector<8x512xf32>
    %96 = arith.cmpf oge, %94, %95 : vector<8x512xf32>
    %cst_82 = arith.constant 0.00999999977 : f32
    %97 = vector.broadcast %cst_82 : f32 to vector<8x512xf32>
    %98 = arith.mulf %97, %94 : vector<8x512xf32>
    %99 = arith.select %96, %94, %98 : vector<8x512xi1>, vector<8x512xf32>
    %c0_83 = arith.constant 0 : index
    %c0_84 = arith.constant 0 : index
    %100 = vector.load %arg6[%c0_83, %c0_84] : memref<512x2xf32, #tpu.memory_space<vmem>>, vector<512x2xf32>
    %cst_85 = arith.constant dense<0.000000e+00> : vector<8x2xf32>
    %101 = tpu.matmul %99, %100, %cst_85 {dimension_numbers = #tpu.dot_dimension_numbers<[1], [0], [0], [1], [0, 0, 1, 1], [], []>} : vector<8x512xf32>, vector<512x2xf32>, vector<8x2xf32> -> vector<8x2xf32>
    %cst_86 = arith.constant dense<0.000000e+00> : vector<2xf32>
    %102 = vector.multi_reduction <add>, %101, %cst_86 [0] : vector<8x2xf32> to vector<2xf32>
    %103 = vector.shape_cast %102 : vector<2xf32> to vector<1x2xf32>
    %104 = arith.mulf %99, %99 : vector<8x512xf32>
    %cst_87 = arith.constant dense<0.000000e+00> : vector<8x2xf32>
    %105 = tpu.matmul %104, %100, %cst_87 {dimension_numbers = #tpu.dot_dimension_numbers<[1], [0], [0], [1], [0, 0, 1, 1], [], []>} : vector<8x512xf32>, vector<512x2xf32>, vector<8x2xf32> -> vector<8x2xf32>
    %cst_88 = arith.constant dense<0.000000e+00> : vector<2xf32>
    %106 = vector.multi_reduction <add>, %105, %cst_88 [0] : vector<8x2xf32> to vector<2xf32>
    %107 = vector.shape_cast %106 : vector<2xf32> to vector<1x2xf32>
    %cst_89 = arith.constant 4.8828125E-4 : f32
    %108 = vector.broadcast %cst_89 : f32 to vector<1x2xf32>
    %109 = arith.mulf %103, %108 : vector<1x2xf32>
    %cst_90 = arith.constant 4.8828125E-4 : f32
    %110 = vector.broadcast %cst_90 : f32 to vector<1x2xf32>
    %111 = arith.mulf %107, %110 : vector<1x2xf32>
    %112 = arith.mulf %109, %109 : vector<1x2xf32>
    %113 = arith.subf %111, %112 : vector<1x2xf32>
    %cst_91 = arith.constant 9.99999974E-6 : f32
    %114 = vector.broadcast %cst_91 : f32 to vector<1x2xf32>
    %115 = arith.addf %113, %114 : vector<1x2xf32>
    %116 = math.rsqrt %115 : vector<1x2xf32>
    %c0_92 = arith.constant 0 : index
    %c0_93 = arith.constant 0 : index
    %117 = vector.load %arg7[%c0_92, %c0_93] : memref<2x512xf32, #tpu.memory_space<vmem>>, vector<2x512xf32>
    %cst_94 = arith.constant dense<0.000000e+00> : vector<1x512xf32>
    %118 = tpu.matmul %109, %117, %cst_94 {dimension_numbers = #tpu.dot_dimension_numbers<[1], [0], [0], [1], [0, 0, 1, 1], [], []>} : vector<1x2xf32>, vector<2x512xf32>, vector<1x512xf32> -> vector<1x512xf32>
    %cst_95 = arith.constant dense<0.000000e+00> : vector<1x512xf32>
    %119 = tpu.matmul %116, %117, %cst_95 {dimension_numbers = #tpu.dot_dimension_numbers<[1], [0], [0], [1], [0, 0, 1, 1], [], []>} : vector<1x2xf32>, vector<2x512xf32>, vector<1x512xf32> -> vector<1x512xf32>
    %120 = vector.broadcast %118 : vector<1x512xf32> to vector<8x512xf32>
    %121 = arith.subf %99, %120 : vector<8x512xf32>
    %122 = vector.broadcast %119 : vector<1x512xf32> to vector<8x512xf32>
    %123 = arith.mulf %122, %56 : vector<8x512xf32>
    %124 = arith.mulf %121, %123 : vector<8x512xf32>
    %125 = arith.addf %124, %57 : vector<8x512xf32>
    %c0_96 = arith.constant 0 : index
    %c0_97 = arith.constant 0 : index
    %126 = vector.load %arg15[%c0_96, %c0_97] : memref<8x73xf32, #tpu.memory_space<vmem>>, vector<8x73xf32>
    %c0_98 = arith.constant 0 : index
    %c0_99 = arith.constant 0 : index
    %127 = vector.load %arg16[%c0_98, %c0_99] : memref<8x512xf32, #tpu.memory_space<vmem>>, vector<8x512xf32>
    %c0_100 = arith.constant 0 : index
    %c0_101 = arith.constant 0 : index
    %128 = vector.load %arg17[%c0_100, %c0_101] : memref<8x512xf32, #tpu.memory_space<vmem>>, vector<8x512xf32>
    %c17_i32_102 = arith.constant 17 : i32
    %129 = tpu.dynamic_rotate %125 by %c17_i32_102 dim 1 : vector<8x512xf32>, i32 -> vector<8x512xf32>
    %c0_103 = arith.constant 0 : index
    %c0_104 = arith.constant 0 : index
    %130 = vector.load %arg8[%c0_103, %c0_104] : memref<72x512xf32, #tpu.memory_space<vmem>>, vector<8x512xf32>
    %131 = arith.mulf %129, %130 : vector<8x512xf32>
    %c0_105 = arith.constant 0 : index
    %c0_106 = arith.constant 0 : index
    %132 = vector.load %arg19[%c0_105, %c0_106] : memref<73x512xf32, #tpu.memory_space<vmem>>, vector<8x512xf32>
    tpu.vector_store %arg19[%c0_105, %c0_106], %131 {strides = array<i32>} : memref<73x512xf32, #tpu.memory_space<vmem>>, vector<8x512xf32>,
    %c16_i32_107 = arith.constant 16 : i32
    %133 = tpu.dynamic_rotate %125 by %c16_i32_107 dim 1 : vector<8x512xf32>, i32 -> vector<8x512xf32>
    %c8_108 = arith.constant 8 : index
    %c0_109 = arith.constant 0 : index
    %134 = vector.load %arg8[%c8_108, %c0_109] : memref<72x512xf32, #tpu.memory_space<vmem>>, vector<8x512xf32>
    %135 = arith.mulf %133, %134 : vector<8x512xf32>
    %c8_110 = arith.constant 8 : index
    %c0_111 = arith.constant 0 : index
    %136 = vector.load %arg19[%c8_110, %c0_111] : memref<73x512xf32, #tpu.memory_space<vmem>>, vector<8x512xf32>
    tpu.vector_store %arg19[%c8_110, %c0_111], %135 {strides = array<i32>} : memref<73x512xf32, #tpu.memory_space<vmem>>, vector<8x512xf32>,
    %c15_i32_112 = arith.constant 15 : i32
    %137 = tpu.dynamic_rotate %125 by %c15_i32_112 dim 1 : vector<8x512xf32>, i32 -> vector<8x512xf32>
    %c16_113 = arith.constant 16 : index
    %c0_114 = arith.constant 0 : index
    %138 = vector.load %arg8[%c16_113, %c0_114] : memref<72x512xf32, #tpu.memory_space<vmem>>, vector<8x512xf32>
    %139 = arith.mulf %137, %138 : vector<8x512xf32>
    %c16_115 = arith.constant 16 : index
    %c0_116 = arith.constant 0 : index
    %140 = vector.load %arg19[%c16_115, %c0_116] : memref<73x512xf32, #tpu.memory_space<vmem>>, vector<8x512xf32>
    tpu.vector_store %arg19[%c16_115, %c0_116], %139 {strides = array<i32>} : memref<73x512xf32, #tpu.memory_space<vmem>>, vector<8x512xf32>,
    %c1_i32_117 = arith.constant 1 : i32
    %141 = tpu.dynamic_rotate %125 by %c1_i32_117 dim 1 : vector<8x512xf32>, i32 -> vector<8x512xf32>
    %c24_118 = arith.constant 24 : index
    %c0_119 = arith.constant 0 : index
    %142 = vector.load %arg8[%c24_118, %c0_119] : memref<72x512xf32, #tpu.memory_space<vmem>>, vector<8x512xf32>
    %143 = arith.mulf %141, %142 : vector<8x512xf32>
    %c24_120 = arith.constant 24 : index
    %c0_121 = arith.constant 0 : index
    %144 = vector.load %arg19[%c24_120, %c0_121] : memref<73x512xf32, #tpu.memory_space<vmem>>, vector<8x512xf32>
    tpu.vector_store %arg19[%c24_120, %c0_121], %143 {strides = array<i32>} : memref<73x512xf32, #tpu.memory_space<vmem>>, vector<8x512xf32>,
    %c32_122 = arith.constant 32 : index
    %c0_123 = arith.constant 0 : index
    %145 = vector.load %arg19[%c32_122, %c0_123] : memref<73x512xf32, #tpu.memory_space<vmem>>, vector<8x512xf32>
    tpu.vector_store %arg19[%c32_122, %c0_123], %125 {strides = array<i32>} : memref<73x512xf32, #tpu.memory_space<vmem>>, vector<8x512xf32>,
    %c511_i32_124 = arith.constant 511 : i32
    %146 = tpu.dynamic_rotate %125 by %c511_i32_124 dim 1 : vector<8x512xf32>, i32 -> vector<8x512xf32>
    %c40_125 = arith.constant 40 : index
    %c0_126 = arith.constant 0 : index
    %147 = vector.load %arg8[%c40_125, %c0_126] : memref<72x512xf32, #tpu.memory_space<vmem>>, vector<8x512xf32>
    %148 = arith.mulf %146, %147 : vector<8x512xf32>
    %c40_127 = arith.constant 40 : index
    %c0_128 = arith.constant 0 : index
    %149 = vector.load %arg19[%c40_127, %c0_128] : memref<73x512xf32, #tpu.memory_space<vmem>>, vector<8x512xf32>
    tpu.vector_store %arg19[%c40_127, %c0_128], %148 {strides = array<i32>} : memref<73x512xf32, #tpu.memory_space<vmem>>, vector<8x512xf32>,
    %c497_i32_129 = arith.constant 497 : i32
    %150 = tpu.dynamic_rotate %125 by %c497_i32_129 dim 1 : vector<8x512xf32>, i32 -> vector<8x512xf32>
    %c48_130 = arith.constant 48 : index
    %c0_131 = arith.constant 0 : index
    %151 = vector.load %arg8[%c48_130, %c0_131] : memref<72x512xf32, #tpu.memory_space<vmem>>, vector<8x512xf32>
    %152 = arith.mulf %150, %151 : vector<8x512xf32>
    %c48_132 = arith.constant 48 : index
    %c0_133 = arith.constant 0 : index
    %153 = vector.load %arg19[%c48_132, %c0_133] : memref<73x512xf32, #tpu.memory_space<vmem>>, vector<8x512xf32>
    tpu.vector_store %arg19[%c48_132, %c0_133], %152 {strides = array<i32>} : memref<73x512xf32, #tpu.memory_space<vmem>>, vector<8x512xf32>,
    %c496_i32_134 = arith.constant 496 : i32
    %154 = tpu.dynamic_rotate %125 by %c496_i32_134 dim 1 : vector<8x512xf32>, i32 -> vector<8x512xf32>
    %c56_135 = arith.constant 56 : index
    %c0_136 = arith.constant 0 : index
    %155 = vector.load %arg8[%c56_135, %c0_136] : memref<72x512xf32, #tpu.memory_space<vmem>>, vector<8x512xf32>
    %156 = arith.mulf %154, %155 : vector<8x512xf32>
    %c56_137 = arith.constant 56 : index
    %c0_138 = arith.constant 0 : index
    %157 = vector.load %arg19[%c56_137, %c0_138] : memref<73x512xf32, #tpu.memory_space<vmem>>, vector<8x512xf32>
    tpu.vector_store %arg19[%c56_137, %c0_138], %156 {strides = array<i32>} : memref<73x512xf32, #tpu.memory_space<vmem>>, vector<8x512xf32>,
    %c495_i32_139 = arith.constant 495 : i32
    %158 = tpu.dynamic_rotate %125 by %c495_i32_139 dim 1 : vector<8x512xf32>, i32 -> vector<8x512xf32>
    %c64_140 = arith.constant 64 : index
    %c0_141 = arith.constant 0 : index
    %159 = vector.load %arg8[%c64_140, %c0_141] : memref<72x512xf32, #tpu.memory_space<vmem>>, vector<8x512xf32>
    %160 = arith.mulf %158, %159 : vector<8x512xf32>
    %c64_142 = arith.constant 64 : index
    %c0_143 = arith.constant 0 : index
    %161 = vector.load %arg19[%c64_142, %c0_143] : memref<73x512xf32, #tpu.memory_space<vmem>>, vector<8x512xf32>
    tpu.vector_store %arg19[%c64_142, %c0_143], %160 {strides = array<i32>} : memref<73x512xf32, #tpu.memory_space<vmem>>, vector<8x512xf32>,
    %cst_144 = arith.constant 1.000000e+00 : f32
    %162 = vector.broadcast %cst_144 : f32 to vector<1x512xf32>
    %c72_145 = arith.constant 72 : index
    %c0_146 = arith.constant 0 : index
    %163 = vector.load %arg19[%c72_145, %c0_146] : memref<73x512xf32, #tpu.memory_space<vmem>>, vector<1x512xf32>
    tpu.vector_store %arg19[%c72_145, %c0_146], %162 {strides = array<i32>} : memref<73x512xf32, #tpu.memory_space<vmem>>, vector<1x512xf32>,
    %c0_147 = arith.constant 0 : index
    %c0_148 = arith.constant 0 : index
    %164 = vector.load %arg19[%c0_147, %c0_148] : memref<73x512xf32, #tpu.memory_space<vmem>>, vector<73x512xf32>
    %cst_149 = arith.constant dense<0.000000e+00> : vector<8x512xf32>
    %165 = tpu.matmul %126, %164, %cst_149 {dimension_numbers = #tpu.dot_dimension_numbers<[1], [0], [0], [1], [0, 0, 1, 1], [], []>} : vector<8x73xf32>, vector<73x512xf32>, vector<8x512xf32> -> vector<8x512xf32>
    %cst_150 = arith.constant 0.000000e+00 : f32
    %166 = vector.broadcast %cst_150 : f32 to vector<8x512xf32>
    %167 = arith.cmpf oge, %165, %166 : vector<8x512xf32>
    %cst_151 = arith.constant 0.00999999977 : f32
    %168 = vector.broadcast %cst_151 : f32 to vector<8x512xf32>
    %169 = arith.mulf %168, %165 : vector<8x512xf32>
    %170 = arith.select %167, %165, %169 : vector<8x512xi1>, vector<8x512xf32>
    %c0_152 = arith.constant 0 : index
    %c0_153 = arith.constant 0 : index
    %171 = vector.load %arg6[%c0_152, %c0_153] : memref<512x2xf32, #tpu.memory_space<vmem>>, vector<512x2xf32>
    %cst_154 = arith.constant dense<0.000000e+00> : vector<8x2xf32>
    %172 = tpu.matmul %170, %171, %cst_154 {dimension_numbers = #tpu.dot_dimension_numbers<[1], [0], [0], [1], [0, 0, 1, 1], [], []>} : vector<8x512xf32>, vector<512x2xf32>, vector<8x2xf32> -> vector<8x2xf32>
    %cst_155 = arith.constant dense<0.000000e+00> : vector<2xf32>
    %173 = vector.multi_reduction <add>, %172, %cst_155 [0] : vector<8x2xf32> to vector<2xf32>
    %174 = vector.shape_cast %173 : vector<2xf32> to vector<1x2xf32>
    %175 = arith.mulf %170, %170 : vector<8x512xf32>
    %cst_156 = arith.constant dense<0.000000e+00> : vector<8x2xf32>
    %176 = tpu.matmul %175, %171, %cst_156 {dimension_numbers = #tpu.dot_dimension_numbers<[1], [0], [0], [1], [0, 0, 1, 1], [], []>} : vector<8x512xf32>, vector<512x2xf32>, vector<8x2xf32> -> vector<8x2xf32>
    %cst_157 = arith.constant dense<0.000000e+00> : vector<2xf32>
    %177 = vector.multi_reduction <add>, %176, %cst_157 [0] : vector<8x2xf32> to vector<2xf32>
    %178 = vector.shape_cast %177 : vector<2xf32> to vector<1x2xf32>
    %cst_158 = arith.constant 4.8828125E-4 : f32
    %179 = vector.broadcast %cst_158 : f32 to vector<1x2xf32>
    %180 = arith.mulf %174, %179 : vector<1x2xf32>
    %cst_159 = arith.constant 4.8828125E-4 : f32
    %181 = vector.broadcast %cst_159 : f32 to vector<1x2xf32>
    %182 = arith.mulf %178, %181 : vector<1x2xf32>
    %183 = arith.mulf %180, %180 : vector<1x2xf32>
    %184 = arith.subf %182, %183 : vector<1x2xf32>
    %cst_160 = arith.constant 9.99999974E-6 : f32
    %185 = vector.broadcast %cst_160 : f32 to vector<1x2xf32>
    %186 = arith.addf %184, %185 : vector<1x2xf32>
    %187 = math.rsqrt %186 : vector<1x2xf32>
    %c0_161 = arith.constant 0 : index
    %c0_162 = arith.constant 0 : index
    %188 = vector.load %arg7[%c0_161, %c0_162] : memref<2x512xf32, #tpu.memory_space<vmem>>, vector<2x512xf32>
    %cst_163 = arith.constant dense<0.000000e+00> : vector<1x512xf32>
    %189 = tpu.matmul %180, %188, %cst_163 {dimension_numbers = #tpu.dot_dimension_numbers<[1], [0], [0], [1], [0, 0, 1, 1], [], []>} : vector<1x2xf32>, vector<2x512xf32>, vector<1x512xf32> -> vector<1x512xf32>
    %cst_164 = arith.constant dense<0.000000e+00> : vector<1x512xf32>
    %190 = tpu.matmul %187, %188, %cst_164 {dimension_numbers = #tpu.dot_dimension_numbers<[1], [0], [0], [1], [0, 0, 1, 1], [], []>} : vector<1x2xf32>, vector<2x512xf32>, vector<1x512xf32> -> vector<1x512xf32>
    %191 = vector.broadcast %189 : vector<1x512xf32> to vector<8x512xf32>
    %192 = arith.subf %170, %191 : vector<8x512xf32>
    %193 = vector.broadcast %190 : vector<1x512xf32> to vector<8x512xf32>
    %194 = arith.mulf %193, %127 : vector<8x512xf32>
    %195 = arith.mulf %192, %194 : vector<8x512xf32>
    %196 = arith.addf %195, %128 : vector<8x512xf32>
    %197 = vector.extract_strided_slice %196 {offsets = [0, 0], sizes = [8, 256], strides = [1, 1]} : vector<8x512xf32> to vector<8x256xf32>
    %c0_165 = arith.constant 0 : index
    %c0_166 = arith.constant 0 : index
    %c0_167 = arith.constant 0 : index
    %198 = vector.load %arg18[%c0_165, %c0_166, %c0_167] : memref<2x8x256xf32, #tpu.memory_space<vmem>>, vector<1x8x256xf32>
    %199 = vector.shape_cast %198 : vector<1x8x256xf32> to vector<8x256xf32>
    %200 = vector.shape_cast %197 : vector<8x256xf32> to vector<1x8x256xf32>
    tpu.vector_store %arg18[%c0_165, %c0_166, %c0_167], %200 {strides = array<i32>} : memref<2x8x256xf32, #tpu.memory_space<vmem>>, vector<1x8x256xf32>,
    %201 = vector.extract_strided_slice %196 {offsets = [0, 256], sizes = [8, 256], strides = [1, 1]} : vector<8x512xf32> to vector<8x256xf32>
    %c1_168 = arith.constant 1 : index
    %c0_169 = arith.constant 0 : index
    %c0_170 = arith.constant 0 : index
    %202 = vector.load %arg18[%c1_168, %c0_169, %c0_170] : memref<2x8x256xf32, #tpu.memory_space<vmem>>, vector<1x8x256xf32>
    %203 = vector.shape_cast %202 : vector<1x8x256xf32> to vector<8x256xf32>
    %204 = vector.shape_cast %201 : vector<8x256xf32> to vector<1x8x256xf32>
    tpu.vector_store %arg18[%c1_168, %c0_169, %c0_170], %204 {strides = array<i32>} : memref<2x8x256xf32, #tpu.memory_space<vmem>>, vector<1x8x256xf32>,
    return
  }
  func.func @transform_0(%arg0: i32) -> (i32, i32, i32) {
    %c0_i32 = arith.constant 0 : i32
    %c0_i32_0 = arith.constant 0 : i32
    %c0_i32_1 = arith.constant 0 : i32
    return %arg0, %c0_i32, %c0_i32_0 : i32, i32, i32
  }
  func.func @transform_1(%arg0: i32) -> (i32, i32, i32) {
    %c0_i32 = arith.constant 0 : i32
    %c0_i32_0 = arith.constant 0 : i32
    %c0_i32_1 = arith.constant 0 : i32
    return %arg0, %c0_i32, %c0_i32_0 : i32, i32, i32
  }
  func.func @transform_2(%arg0: i32) -> (i32, i32, i32) {
    %c0_i32 = arith.constant 0 : i32
    %c0_i32_0 = arith.constant 0 : i32
    %c0_i32_1 = arith.constant 0 : i32
    return %arg0, %c0_i32, %c0_i32_0 : i32, i32, i32
  }
  func.func @transform_3(%arg0: i32) -> (i32, i32) {
    %c0_i32 = arith.constant 0 : i32
    %c0_i32_0 = arith.constant 0 : i32
    %c0_i32_1 = arith.constant 0 : i32
    return %c0_i32, %c0_i32_0 : i32, i32
  }
  func.func @transform_4(%arg0: i32) -> (i32, i32) {
    %c0_i32 = arith.constant 0 : i32
    %c0_i32_0 = arith.constant 0 : i32
    %c0_i32_1 = arith.constant 0 : i32
    return %c0_i32, %c0_i32_0 : i32, i32
  }
  func.func @transform_5(%arg0: i32) -> (i32, i32) {
    %c0_i32 = arith.constant 0 : i32
    %c0_i32_0 = arith.constant 0 : i32
    %c0_i32_1 = arith.constant 0 : i32
    return %c0_i32, %c0_i32_0 : i32, i32
  }
  func.func @transform_6(%arg0: i32) -> (i32, i32) {
    %c0_i32 = arith.constant 0 : i32
    %c0_i32_0 = arith.constant 0 : i32
    %c0_i32_1 = arith.constant 0 : i32
    return %c0_i32, %c0_i32_0 : i32, i32
  }
  func.func @transform_7(%arg0: i32) -> (i32, i32) {
    %c0_i32 = arith.constant 0 : i32
    %c0_i32_0 = arith.constant 0 : i32
    %c0_i32_1 = arith.constant 0 : i32
    return %c0_i32, %c0_i32_0 : i32, i32
  }
  func.func @transform_8(%arg0: i32) -> (i32, i32) {
    %c0_i32 = arith.constant 0 : i32
    %c0_i32_0 = arith.constant 0 : i32
    %c0_i32_1 = arith.constant 0 : i32
    return %c0_i32, %c0_i32_0 : i32, i32
  }
  func.func @transform_9(%arg0: i32) -> (i32, i32) {
    %c0_i32 = arith.constant 0 : i32
    %c0_i32_0 = arith.constant 0 : i32
    %c0_i32_1 = arith.constant 0 : i32
    return %c0_i32, %c0_i32_0 : i32, i32
  }
  func.func @transform_10(%arg0: i32) -> (i32, i32) {
    %c0_i32 = arith.constant 0 : i32
    %c0_i32_0 = arith.constant 0 : i32
    %c0_i32_1 = arith.constant 0 : i32
    return %c0_i32, %c0_i32_0 : i32, i32
  }
  func.func @transform_11(%arg0: i32) -> (i32, i32) {
    %c0_i32 = arith.constant 0 : i32
    %c0_i32_0 = arith.constant 0 : i32
    %c0_i32_1 = arith.constant 0 : i32
    return %c0_i32, %c0_i32_0 : i32, i32
  }
  func.func @transform_12(%arg0: i32) -> (i32, i32) {
    %c0_i32 = arith.constant 0 : i32
    %c0_i32_0 = arith.constant 0 : i32
    %c0_i32_1 = arith.constant 0 : i32
    return %c0_i32, %c0_i32_0 : i32, i32
  }
  func.func @transform_13(%arg0: i32) -> (i32, i32) {
    %c0_i32 = arith.constant 0 : i32
    %c0_i32_0 = arith.constant 0 : i32
    %c0_i32_1 = arith.constant 0 : i32
    return %c0_i32, %c0_i32_0 : i32, i32
  }
  func.func @transform_14(%arg0: i32) -> (i32, i32) {
    %c0_i32 = arith.constant 0 : i32
    %c0_i32_0 = arith.constant 0 : i32
    %c0_i32_1 = arith.constant 0 : i32
    return %c0_i32, %c0_i32_0 : i32, i32
  }
  func.func @transform_15(%arg0: i32) -> (i32, i32) {
    %c0_i32 = arith.constant 0 : i32
    %c0_i32_0 = arith.constant 0 : i32
    %c0_i32_1 = arith.constant 0 : i32
    return %c0_i32, %c0_i32_0 : i32, i32
  }
  func.func @transform_16(%arg0: i32) -> (i32, i32) {
    %c0_i32 = arith.constant 0 : i32
    %c0_i32_0 = arith.constant 0 : i32
    %c0_i32_1 = arith.constant 0 : i32
    return %c0_i32, %c0_i32_0 : i32, i32
  }
  func.func @transform_17(%arg0: i32) -> (i32, i32, i32) {
    %c0_i32 = arith.constant 0 : i32
    %c0_i32_0 = arith.constant 0 : i32
    %c0_i32_1 = arith.constant 0 : i32
    return %arg0, %c0_i32, %c0_i32_0 : i32, i32, i32
  }
}

</mosaic_0001>

<bundles_post_ra>
// kernel: forward.1
= control target key start
LH: loop header
LB: loop body
LE: loop exit
PB: predicated region body
PF: predicated region fallthrough
CT: control target
= control target key end

     0   :  { %s8922_s0 = inlined_call_operand.vmem [shape: f32[4,1,1024], index: 0, kind: input, shape index: {}]   ;;  %s8923_s1 = inlined_call_operand.vmem [shape: f32[4,3,64], index: 1, kind: input, shape index: {}]   ;;  %s8924_s2 = inlined_call_operand.vmem [shape: f32[4,4,256], index: 2, kind: input, shape index: {}]   ;;  %s8925_s3 = inlined_call_operand.hbm [shape: f32[1024,256], index: 3, kind: input, shape index: {}]   ;;  %s8926_s4 = inlined_call_operand.hbm [shape: f32[64,256], index: 4, kind: input, shape index: {}]   ;;  %s8927_s5 = inlined_call_operand.vmem [shape: f32[512,2], index: 5, kind: input, shape index: {}]   ;;  %s8928_s6 = inlined_call_operand.hbm [shape: f32[2,512], index: 6, kind: input, shape index: {}]   ;;  %s8929_s7 = inlined_call_operand.hbm [shape: f32[72,512], index: 7, kind: input, shape index: {}]   ;;  %s8930_s8 = inlined_call_operand.hbm [shape: f32[8,512], index: 8, kind: input, shape index: {}]   ;;  %s8931_s9 = inlined_call_operand.hbm [shape: f32[8,512], index: 9, kind: input, shape index: {}]   ;;  %s8932_s10 = inlined_call_operand.hbm [shape: f32[8,512], index: 10, kind: input, shape index: {}]   ;;  %s8933_s11 = inlined_call_operand.vmem [shape: f32[8,73], index: 11, kind: input, shape index: {}]   ;;  %s8934_s12 = inlined_call_operand.hbm [shape: f32[8,512], index: 12, kind: input, shape index: {}]   ;;  %s8935_s13 = inlined_call_operand.hbm [shape: f32[8,512], index: 13, kind: input, shape index: {}]   ;;  %s8936_s14 = inlined_call_operand.vmem [shape: f32[8,73], index: 14, kind: input, shape index: {}]   ;;  %s8937_s15 = inlined_call_operand.vmem [shape: f32[8,512], index: 15, kind: input, shape index: {}]   ;;  %s8938_s16 = inlined_call_operand.vmem [shape: f32[8,512], index: 16, kind: input, shape index: {}]   ;;  %s8939_s17 = inlined_call_operand.vmem [shape: f32[4,8,256], index: 17, kind: output, shape index: {}]  }
   0x1   :  { %8952 = sst [smem:[#allocation22_spill]] %s8922_s0 }
   0x2   :  { %8953 = sst [smem:[#allocation23_spill]] %s8923_s1 }
   0x3   :  { %8954 = sst [smem:[#allocation24_spill]] %s8926_s4 }
   0x4   :  { %8955 = sst [smem:[#allocation25_spill]] %s8936_s14 }
   0x5   :  { %8956 = sst [smem:[#allocation26_spill]] %s8937_s15 }
   0x6   :  { %8957 = sst [smem:[#allocation27_spill]] %s8938_s16 }
   0x7   :  { %8958 = sst [smem:[#allocation28_spill]] %s8939_s17 }
   0x8   :  { %22 = vsyncpa [#allocation4], 0 }
   0x9   :  { %23 = vsyncpa [#allocation6], 0 }
   0xa   :  { %24 = vsyncpa [#allocation9], 0 }
   0xb   :  { %25 = vsyncpa [#allocation12], 0 }
   0xc   :  { %26 = vsyncpa [#allocation15], 0  ;;  %s7148_s24 = smov 0  }
   0xd LB: > { %s8940_s25 = sadd.s32 4294967295, %s7031_s24   ;;  %p5087_p0 = scmp.ge.s32.totalorder %s7031_s24, 1  ;;  %s7031_s24 = sphi %s7148_s24, %s32_s24  }
   0xe   : > { %p435_p1 = scmp.lt.s32.totalorder %s7031_s24, 3  ;;  %p7158_p2 = scmp.eq.s32.totalorder %s8940_s25, 0 }
   0xf   : > { %s7033_s28 = smov [#allocation5]   ;;  %s7034_s0 = smov [#allocation8]  }
  0x10   : > { %s8959_s26 = scalar_select %p7158_p2, 1, 0 }
  0x11   : > { %p7162_p3 = pnand %p5087_p0, %p435_p1  ;;  %s460_s29 = sshll.u32 %s7033_s28, 4  ;;  %s7166_s29 = int_to_ptr.vmem [resolvable:$true] %s460_s29 }
  0x12   : > { %s487_s30 = sshll.u32 %s7034_s0, 4  ;;  %s7035_s19 = smov [#allocation11]   ;;  %s7170_s30 = int_to_ptr.vmem [resolvable:$true] %s487_s30 }
  0x13   : > { %s8960_s27 = scalar_select %p7162_p3, 1, 0 }
  0x14   : > { %p6661_p4 = pneg %p7162_p3  ;;  %s7178_s1 = sshll.u32 %s7035_s19, 4  ;;  %s513_s1 = int_to_ptr.vmem [resolvable:$true] %s7178_s1 }
  0x15   : > { %s8962_s4 = sld [smem:[#allocation24_spill]] }
  0x16   : > { %p7174_p5 = pnand %p7158_p2, %p6661_p4 }
  0x18   : > { %p7188_p7 = pneg %p7174_p5 }
  0x1b   : > { %s6753_s22 = scalar_lea.hbm %s8962_s4, 2048 }
  0x1c   : > { %p6754_p6 = scmp.ne.s32.totalorder %s8962_s4, %s6753_s22  ;;  %p6760_p10 = scmp.lt.u32.totalorder %s6753_s22, %s8962_s4 }
  0x1e   : > { %p6756_p8 = pnand %p7188_p7, %p6754_p6 }
  0x20   : > { %p6757_p9 = pneg %p6756_p8 }
  0x22   : > { %p6762_p11 = pnand %p6760_p10, %p6757_p9 }
  0x24   : > { %6765 = shalt.err (!%p6762_p11)
}
  0x25   : > { %s6766_s20 = scalar_lea.vmem %s7166_s29, 2048  ;;  %p6774_p1 = scmp.lt.s32.totalorder %s7166_s29, %s7166_s29 }
  0x26   : > { %p6767_p12 = scmp.ne.s32.totalorder %s7166_s29, %s6766_s20  ;;  %p6775_p4 = scmp.lt.s32.totalorder %s6766_s20, %s6766_s20 }
  0x28   : > { %p6769_p13 = pnand %p6767_p12, %p7188_p7  ;;  %p6776_p6 = por %p6775_p4, %p6774_p1 }
  0x2a   : > { %p6770_p0 = pneg %p6769_p13 }
  0x2c   : > { %p6777_p8 = pnand %p6776_p6, %p6770_p0 }
  0x2e   : > { %6780 = shalt.err (!%p6777_p8)
}
  0x2f   : > { %s8943_s21 = smov 256   ;;  %s8944_s25 = smov 16  }
  0x30   : > { %6667 = dma.hbm_to_vmem [thread:$0]  (!%p7174_p5), %s8962_s4, 2048, %s7166_s29, [#allocation6], %s8943_s21, %s8943_s21, %s8944_s25  }
  0x31   : > { %s6781_s20 = scalar_lea.hbm %s8929_s7, 4608 }
  0x32   : > { %p6782_p9 = scmp.ne.s32.totalorder %s8929_s7, %s6781_s20  ;;  %p6788_p12 = scmp.lt.u32.totalorder %s6781_s20, %s8929_s7 }
  0x34   : > { %p6784_p10 = pnand %p6782_p9, %p7188_p7 }
  0x36   : > { %p6785_p11 = pneg %p6784_p10 }
  0x38   : > { %p6790_p13 = pnand %p6788_p12, %p6785_p11 }
  0x3a   : > { %6793 = shalt.err (!%p6790_p13)
}
  0x3b   : > { %s6794_s29 = scalar_lea.vmem %s7170_s30, 4608  ;;  %p6802_p6 = scmp.lt.s32.totalorder %s7170_s30, %s7170_s30 }
  0x3c   : > { %p6795_p0 = scmp.ne.s32.totalorder %s7170_s30, %s6794_s29  ;;  %p6803_p8 = scmp.lt.s32.totalorder %s6794_s29, %s6794_s29 }
  0x3e   : > { %p6797_p1 = pnand %p6795_p0, %p7188_p7  ;;  %p6804_p9 = por %p6803_p8, %p6802_p6 }
  0x40   : > { %p6798_p4 = pneg %p6797_p1 }
  0x42   : > { %p6805_p10 = pnand %p6804_p9, %p6798_p4 }
  0x44   : > { %6808 = shalt.err (!%p6805_p10)
}
  0x45   : > { %s7038_s16 = smov 512   ;;  %s7039_s14 = smov 32  }
  0x46   : > { %6673 = dma.hbm_to_vmem [thread:$0]  (!%p7174_p5), %s8929_s7, 4608, %s7170_s30, [#allocation9], %s7038_s16, %s7038_s16, %s7039_s14  }
  0x47   : > { %s7040_s22 = smov [#allocation14]   ;;  %s6809_s20 = scalar_lea.hbm %s8931_s9, 512 }
  0x48   : > { %s537_s23 = sshll.u32 %s7040_s22, 4  ;;  %p6810_p11 = scmp.ne.s32.totalorder %s8931_s9, %s6809_s20  ;;  %s538_s23 = int_to_ptr.vmem [resolvable:$true] %s537_s23 }
  0x49   : > { %p6816_p0 = scmp.lt.u32.totalorder %s6809_s20, %s8931_s9 }
  0x4a   : > { %p6812_p12 = pnand %p6810_p11, %p7188_p7 }
  0x4c   : > { %p6813_p13 = pneg %p6812_p12 }
  0x4e   : > { %p6818_p1 = pnand %p6816_p0, %p6813_p13 }
  0x50   : > { %6821 = shalt.err (!%p6818_p1)
}
  0x51   : > { %s6822_s30 = scalar_lea.vmem %s513_s1, 512  ;;  %p6830_p9 = scmp.lt.s32.totalorder %s513_s1, %s513_s1 }
  0x52   : > { %p6823_p4 = scmp.ne.s32.totalorder %s513_s1, %s6822_s30  ;;  %p6831_p10 = scmp.lt.s32.totalorder %s6822_s30, %s6822_s30 }
  0x54   : > { %p6825_p6 = pnand %p6823_p4, %p7188_p7  ;;  %p6832_p2 = por %p6831_p10, %p6830_p9 }
  0x56   : > { %p6826_p8 = pneg %p6825_p6 }
  0x58   : > { %p6833_p3 = pnand %p6832_p2, %p6826_p8 }
  0x5a   : > { %6836 = shalt.err (!%p6833_p3)
}
  0x5b   : > { %6679 = dma.hbm_to_vmem [thread:$0]  (!%p7174_p5), %s8931_s9, 512, %s513_s1, [#allocation12]  }
  0x5c   : > { %s6837_s14 = scalar_lea.hbm %s8934_s12, 512 }
  0x5d   : > { %p6838_p11 = scmp.ne.s32.totalorder %s8934_s12, %s6837_s14  ;;  %p6844_p3 = scmp.lt.u32.totalorder %s6837_s14, %s8934_s12 }
  0x5f   : > { %p6840_p12 = pnand %p6838_p11, %p7188_p7 }
  0x61   : > { %p6841_p2 = pneg %p6840_p12 }
  0x63   : > { %p6846_p13 = pnand %p6844_p3, %p6841_p2 }
  0x65   : > { %6849 = shalt.err (!%p6846_p13)
}
  0x66   : > { %s6850_s19 = scalar_lea.vmem %s538_s23, 512  ;;  %p6858_p6 = scmp.lt.s32.totalorder %s538_s23, %s538_s23 }
  0x67   : > { %p6851_p0 = scmp.ne.s32.totalorder %s538_s23, %s6850_s19  ;;  %p6859_p8 = scmp.lt.s32.totalorder %s6850_s19, %s6850_s19 }
  0x69   : > { %p6853_p1 = pnand %p6851_p0, %p7188_p7  ;;  %p6860_p9 = por %p6859_p8, %p6858_p6 }
  0x6b   : > { %p6854_p4 = pneg %p6853_p1 }
  0x6d   : > { %p6861_p10 = pnand %p6860_p9, %p6854_p4 }
  0x6f   : > { %6864 = shalt.err (!%p6861_p10)
}
  0x70   : > { %6685 = dma.hbm_to_vmem [thread:$0]  (!%p7174_p5), %s8934_s12, 512, %s538_s23, [#allocation15]  }
  0x71   : > { %s7041_s29 = smov [#allocation3]   ;;  %s7042_s21 = smov [#allocation7]  }
  0x72   : > { %s447_s30 = sshll.u32 %s7041_s29, 4  ;;  %s477_s16 = sshll.u32 %s7042_s21, 4  ;;  %s448_s30 = int_to_ptr.vmem [resolvable:$true] %s447_s30  ;;  %s478_s16 = int_to_ptr.vmem [resolvable:$true] %s477_s16 }
  0x73   : > { %s6865_s14 = scalar_lea.hbm %s8925_s3, 32768 }
  0x74   : > { %p6866_p11 = scmp.ne.s32.totalorder %s8925_s3, %s6865_s14  ;;  %p6872_p3 = scmp.lt.u32.totalorder %s6865_s14, %s8925_s3 }
  0x76   : > { %p6868_p12 = pnand %p6866_p11, %p7188_p7 }
  0x78   : > { %p6869_p2 = pneg %p6868_p12 }
  0x7a   : > { %p6874_p13 = pnand %p6872_p3, %p6869_p2 }
  0x7c   : > { %6877 = shalt.err (!%p6874_p13)
}
  0x7d   : > { %s6878_s23 = scalar_lea.vmem %s448_s30, 32768  ;;  %p6886_p6 = scmp.lt.s32.totalorder %s448_s30, %s448_s30 }
  0x7e   : > { %p6879_p0 = scmp.ne.s32.totalorder %s448_s30, %s6878_s23  ;;  %p6887_p8 = scmp.lt.s32.totalorder %s6878_s23, %s6878_s23 }
  0x80   : > { %p6881_p1 = pnand %p6879_p0, %p7188_p7  ;;  %p6888_p9 = por %p6887_p8, %p6886_p6 }
  0x82   : > { %p6882_p4 = pneg %p6881_p1 }
  0x84   : > { %p6889_p10 = pnand %p6888_p9, %p6882_p4 }
  0x86   : > { %6892 = shalt.err (!%p6889_p10)
}
  0x87   : > { %s8964_s19 = smov 16   ;;  %s8965_s1 = smov 256  }
  0x88   : > { %6664 = dma.hbm_to_vmem [thread:$0]  (!%p7174_p5), %s8925_s3, 32768, %s448_s30, [#allocation4], %s8965_s1, %s8965_s1, %s8964_s19  }
  0x89   : > { %s6893_s25 = scalar_lea.hbm %s8928_s6, 128 }
  0x8a   : > { %p6894_p11 = scmp.ne.s32.totalorder %s8928_s6, %s6893_s25  ;;  %p6900_p3 = scmp.lt.u32.totalorder %s6893_s25, %s8928_s6 }
  0x8c   : > { %p6896_p12 = pnand %p6894_p11, %p7188_p7 }
  0x8e   : > { %p6897_p2 = pneg %p6896_p12 }
  0x90   : > { %p6902_p13 = pnand %p6900_p3, %p6897_p2 }
  0x92   : > { %6905 = shalt.err (!%p6902_p13)
}
  0x93   : > { %s6906_s28 = scalar_lea.vmem %s478_s16, 128  ;;  %p6914_p6 = scmp.lt.s32.totalorder %s478_s16, %s478_s16 }
  0x94   : > { %p6907_p0 = scmp.ne.s32.totalorder %s478_s16, %s6906_s28  ;;  %p6915_p8 = scmp.lt.s32.totalorder %s6906_s28, %s6906_s28 }
  0x96   : > { %p6909_p1 = pnand %p6907_p0, %p7188_p7  ;;  %p6916_p9 = por %p6915_p8, %p6914_p6 }
  0x98   : > { %p6910_p4 = pneg %p6909_p1 }
  0x9a   : > { %p6917_p10 = pnand %p6916_p9, %p6910_p4 }
  0x9c   : > { %6920 = shalt.err (!%p6917_p10)
}
  0x9d   : > { %6670 = dma.hbm_to_vmem [thread:$0]  (!%p7174_p5), %s8928_s6, 128, %s478_s16, [#allocation6]  }
  0x9e   : > { %s7043_s19 = smov [#allocation10]   ;;  %s7044_s20 = smov [#allocation13]  }
  0x9f   : > { %s501_s1 = sshll.u32 %s7043_s19, 4  ;;  %s523_s29 = sshll.u32 %s7044_s20, 4  ;;  %s502_s1 = int_to_ptr.vmem [resolvable:$true] %s501_s1  ;;  %s524_s29 = int_to_ptr.vmem [resolvable:$true] %s523_s29 }
  0xa0   : > { %s6921_s25 = scalar_lea.hbm %s8930_s8, 512 }
  0xa1   : > { %p6922_p11 = scmp.ne.s32.totalorder %s8930_s8, %s6921_s25  ;;  %p6928_p3 = scmp.lt.u32.totalorder %s6921_s25, %s8930_s8 }
  0xa3   : > { %p6924_p12 = pnand %p6922_p11, %p7188_p7 }
  0xa5   : > { %p6925_p2 = pneg %p6924_p12 }
  0xa7   : > { %p6930_p13 = pnand %p6928_p3, %p6925_p2 }
  0xa9   : > { %6933 = shalt.err (!%p6930_p13)
}
  0xaa   : > { %s6934_s16 = scalar_lea.vmem %s502_s1, 512  ;;  %p6942_p6 = scmp.lt.s32.totalorder %s502_s1, %s502_s1 }
  0xab   : > { %p6935_p0 = scmp.ne.s32.totalorder %s502_s1, %s6934_s16  ;;  %p6943_p8 = scmp.lt.s32.totalorder %s6934_s16, %s6934_s16 }
  0xad   : > { %p6937_p1 = pnand %p6935_p0, %p7188_p7  ;;  %p6944_p9 = por %p6943_p8, %p6942_p6 }
  0xaf   : > { %p6938_p4 = pneg %p6937_p1 }
  0xb1   : > { %p6945_p10 = pnand %p6944_p9, %p6938_p4 }
  0xb3   : > { %6948 = shalt.err (!%p6945_p10)
}
  0xb4   : > { %6676 = dma.hbm_to_vmem [thread:$0]  (!%p7174_p5), %s8930_s8, 512, %s502_s1, [#allocation9]  }
  0xb5   : > { %s6949_s20 = scalar_lea.hbm %s8932_s10, 512 }
  0xb6   : > { %p6950_p11 = scmp.ne.s32.totalorder %s8932_s10, %s6949_s20  ;;  %p6956_p3 = scmp.lt.u32.totalorder %s6949_s20, %s8932_s10 }
  0xb8   : > { %p6952_p12 = pnand %p6950_p11, %p7188_p7 }
  0xba   : > { %p6953_p2 = pneg %p6952_p12 }
  0xbc   : > { %p6958_p13 = pnand %p6956_p3, %p6953_p2 }
  0xbe   : > { %6961 = shalt.err (!%p6958_p13)
}
  0xbf   : > { %s6962_s15 = scalar_lea.vmem %s524_s29, 512  ;;  %p6970_p6 = scmp.lt.s32.totalorder %s524_s29, %s524_s29 }
  0xc0   : > { %p6963_p0 = scmp.ne.s32.totalorder %s524_s29, %s6962_s15  ;;  %p6971_p8 = scmp.lt.s32.totalorder %s6962_s15, %s6962_s15 }
  0xc2   : > { %p6965_p1 = pnand %p6963_p0, %p7188_p7  ;;  %p6972_p9 = por %p6971_p8, %p6970_p6 }
  0xc4   : > { %p6966_p4 = pneg %p6965_p1 }
  0xc6   : > { %p6973_p10 = pnand %p6972_p9, %p6966_p4 }
  0xc8   : > { %6976 = shalt.err (!%p6973_p10)
}
  0xc9   : > { %6682 = dma.hbm_to_vmem [thread:$0]  (!%p7174_p5), %s8932_s10, 512, %s524_s29, [#allocation12]  }
  0xca   : > { %s7045_s22 = smov [#allocation16]   ;;  %s6977_s23 = scalar_lea.hbm %s8935_s13, 512 }
  0xcb   : > { %s548_s16 = sshll.u32 %s7045_s22, 4  ;;  %p6978_p11 = scmp.ne.s32.totalorder %s8935_s13, %s6977_s23  ;;  %s549_s16 = int_to_ptr.vmem [resolvable:$true] %s548_s16 }
  0xcc   : > { %p6984_p3 = scmp.lt.u32.totalorder %s6977_s23, %s8935_s13 }
  0xcd   : > { %p6980_p12 = pnand %p6978_p11, %p7188_p7 }
  0xcf   : > { %p6981_p2 = pneg %p6980_p12 }
  0xd1   : > { %p6986_p13 = pnand %p6984_p3, %p6981_p2 }
  0xd3   : > { %6989 = shalt.err (!%p6986_p13)
}
  0xd4   : > { %s6990_s29 = scalar_lea.vmem %s549_s16, 512  ;;  %p6998_p6 = scmp.lt.s32.totalorder %s549_s16, %s549_s16 }
  0xd5   : > { %p6991_p0 = scmp.ne.s32.totalorder %s549_s16, %s6990_s29  ;;  %p6999_p8 = scmp.lt.s32.totalorder %s6990_s29, %s6990_s29 }
  0xd7   : > { %p6993_p1 = pnand %p6991_p0, %p7188_p7  ;;  %p7000_p9 = por %p6999_p8, %p6998_p6 }
  0xd9   : > { %p6994_p4 = pneg %p6993_p1 }
  0xdb   : > { %p7001_p10 = pnand %p7000_p9, %p6994_p4 }
  0xdd   : > { %7004 = shalt.err (!%p7001_p10)
}
  0xde   : > { %6688 = dma.hbm_to_vmem [thread:$0]  (!%p7174_p5), %s8935_s13, 512, %s549_s16, [#allocation15]  }
  0xdf   : > { %p8966_p11 = scmp.ne.s32.totalorder %s8960_s27, 0 }
  0xe0   : > { %p8967_p12 = scmp.ne.s32.totalorder (!%p8966_p11), %s8959_s26, 0 }
  0xe1   : > { %598 = sbr.rel (%p8966_p11) target bundleno = 2853 (0xb25), region = 88 }
  0xe8   : > { %7010 = dma.done.wait (%p8967_p12), [#allocation4], 32768  }
  0xe9   : > { %7012 = vsyncadd (%p8967_p12), [#allocation4], 4294934528 }
  0xea   : > { %7014 = dma.done.wait (%p8967_p12), [#allocation6], 2176  }
  0xeb   : > { %7016 = vsyncadd (%p8967_p12), [#allocation6], 4294965120 }
  0xec   : > { %7018 = dma.done.wait (%p8967_p12), [#allocation9], 5120  }
  0xed   : > { %7020 = vsyncadd (%p8967_p12), [#allocation9], 4294962176 }
  0xee   : > { %7022 = dma.done.wait (%p8967_p12), [#allocation12], 1024  }
  0xef   : > { %7024 = vsyncadd (%p8967_p12), [#allocation12], 4294966272 }
  0xf0   : > { %7026 = dma.done.wait (%p8967_p12), [#allocation15], 1024  }
  0xf1   : > { %7028 = vsyncadd (%p8967_p12), [#allocation15], 4294966272  ;;  %v721_v0 = vld [vmem:[#allocation3 + $0x8] sm:$0xff]  ;;  %v723_v1 = vld [vmem:[#allocation3 + $0x18] sm:$0xff]  ;;  %s8968_s26 = sadd.s32 4294967295, %s7031_s24   ;;  %v994_v25 = vlaneseq  ;;  %s8969_s1 = sld [smem:[#allocation22_spill]] }
  0xf2   : > { %v720_v2 = vld [vmem:[#allocation3] sm:$0xff]  ;;  %v5597_v3 = vpack.c.bf16 %v723_v1, %v721_v0  ;;  %v722_v4 = vld [vmem:[#allocation3 + $0x10] sm:$0xff]  ;;  %v725_v5 = vld [vmem:[#allocation3 + $0x28] sm:$0xff]  ;;  %s5108_s27 = sshll.u32 %s8968_s26, 1  ;;  %s8970_s14 = sld [smem:[#allocation23_spill]]  ;;  %vm1646_vm0 = vcmask 523264  }
  0xf3   : > { %v727_v6 = vld [vmem:[#allocation3 + $0x38] sm:$0xff]  ;;  %v5599_v7 = vpack.c.bf16 %v722_v4, %v720_v2  ;;  %v724_v9 = vld [vmem:[#allocation3 + $0x20] sm:$0xff]  ;;  %v726_v10 = vld [vmem:[#allocation3 + $0x30] sm:$0xff]  ;;  %p695_p5 = scmp.lt.s32.totalorder %s5108_s27, 3  ;;  %v7392_v32 = vshrl.u32 %v994_v25, 7  ;;  %vm2228_vm1 = vcmask 1041408  }
  0xf4   : > { %v5601_v8 = vpack.c.bf16 %v727_v6, %v725_v5  ;;  %v729_v11 = vld [vmem:[#allocation3 + $0x48] sm:$0xff]  ;;  %5598 = vmatprep.subr.bf16.mxu0 %v5597_v3  ;;  %5854 = vmatprep.subr.bf16.mxu1 %v5597_v3  ;;  %v731_v12 = vld [vmem:[#allocation3 + $0x58] sm:$0xff]  ;;  %v5603_v13 = vpack.c.bf16 %v726_v10, %v724_v9  ;;  %v728_v15 = vld [vmem:[#allocation3 + $0x40] sm:$0xff]  ;;  %vm1826_vm2 = vcmask 1040384   ;;  %vm2040_vm3 = vcmask 11264   ;;  %s7048_s25 = smov 17  }
  0xf5   : > { %5600 = vmatpush1.bf16.msra.mxu0 %v5599_v7  ;;  %5856 = vmatpush1.bf16.msra.mxu1 %v5599_v7  ;;  %v5605_v14 = vpack.c.bf16 %v731_v12, %v729_v11  ;;  %v730_v16 = vld [vmem:[#allocation3 + $0x50] sm:$0xff]  ;;  %v733_v17 = vld [vmem:[#allocation3 + $0x68] sm:$0xff]  ;;  %v735_v18 = vld [vmem:[#allocation3 + $0x78] sm:$0xff]  ;;  %s8980_s27 = smov (!%p695_p5, %s5108_s27), 3  ;;  %v1000_v39 = vsub.s32 1, %v7392_v32  ;;  %vm2224_vm4 = vcmask 15360  }
  0xf6   : > { %5602 = vmatprep.subr.bf16.mxu0 %v5601_v8  ;;  %5858 = vmatprep.subr.bf16.mxu1 %v5601_v8  ;;  %v5607_v19 = vpack.c.bf16 %v730_v16, %v728_v15  ;;  %v5609_v20 = vpack.c.bf16 %v735_v18, %v733_v17  ;;  %v732_v21 = vld [vmem:[#allocation3 + $0x60] sm:$0xff]  ;;  %v734_v22 = vld [vmem:[#allocation3 + $0x70] sm:$0xff]  ;;  %v737_v23 = vld [vmem:[#allocation3 + $0x88] sm:$0xff]  ;;  %s5109_s18 = sshll.u32 %s8980_s27, 3  ;;  %s5111_s22 = sshll.u32 %s8980_s27, 2  ;;  %vm1831_vm5 = vcmask 1043456  }
  0xf7   : > { %v739_v24 = vld [vmem:[#allocation3 + $0x98] sm:$0xff]  ;;  %v5611_v26 = vpack.c.bf16 %v734_v22, %v732_v21  ;;  %v736_v28 = vld [vmem:[#allocation3 + $0x80] sm:$0xff]  ;;  %v738_v29 = vld [vmem:[#allocation3 + $0x90] sm:$0xff]  ;;  %s7400_s17 = scalar_lea.vmem %s8969_s1, %s5109_s18  ;;  %s711_s30 = scalar_lea.vmem %s8924_s2, %s5109_s18  ;;  %vm2813_vm6 = vcmp.lt.s32.totalorder %v994_v25, 512  ;;  %vm7057_vm15 = vmmov 1  }
  0xf8   : > { %v5613_v27 = vpack.c.bf16 %v739_v24, %v737_v23  ;;  %v741_v30 = vld [vmem:[#allocation3 + $0xa8] sm:$0xff]  ;;  %v743_v31 = vld [vmem:[#allocation3 + $0xb8] sm:$0xff]  ;;  %v5615_v33 = vpack.c.bf16 %v738_v29, %v736_v28  ;;  %v740_v35 = vld [vmem:[#allocation3 + $0xa0] sm:$0xff]  ;;  %s704_s26 = scalar_lea.vmem %s8970_s14, %s5111_s22  ;;  %s7049_s14 = smov 16  }
  0xf9   : > { %5604 = vmatpush1.bf16.msra.mxu0 %v5603_v13  ;;  %5860 = vmatpush1.bf16.msra.mxu1 %v5603_v13  ;;  %v5617_v34 = vpack.c.bf16 %v743_v31, %v741_v30  ;;  %v742_v36 = vld [vmem:[#allocation3 + $0xb0] sm:$0xff]  ;;  %v745_v37 = vld [vmem:[#allocation3 + $0xc8] sm:$0xff]  ;;  %v747_v38 = vld [vmem:[#allocation3 + $0xd8] sm:$0xff]  ;;  %s7050_s0 = smov 15   ;;  %s7051_s15 = smov 1  }
  0xfa   : > { %5606 = vmatprep.subr.bf16.mxu0 %v5605_v14  ;;  %5862 = vmatprep.subr.bf16.mxu1 %v5605_v14  ;;  %v5619_v40 = vpack.c.bf16 %v742_v36, %v740_v35  ;;  %v5621_v41 = vpack.c.bf16 %v747_v38, %v745_v37  ;;  %v744_v42 = vld [vmem:[#allocation3 + $0xc0] sm:$0xff]  ;;  %v746_v43 = vld [vmem:[#allocation3 + $0xd0] sm:$0xff]  ;;  %v749_v45 = vld [vmem:[#allocation3 + $0xe8] sm:$0xff]  ;;  %s7052_s1 = smov 127   ;;  %s8950_s16 = smov 112  }
  0xfb   : > { %v7404_v44 = vld [vmem:[%s7400_s17] sm:$0xff]  ;;  %v751_v46 = vld [vmem:[#allocation3 + $0xf8] sm:$0xff]  ;;  %v7408_v48 = vld [vmem:[%s7400_s17 + $0x8] sm:$0xff]  ;;  %v5623_v50 = vpack.c.bf16 %v746_v43, %v744_v42  ;;  %v7412_v42 = vsub.s32 0, %v7392_v32  ;;  %s8948_s28 = smov 111   ;;  %s8975_s21 = sld [smem:[#allocation25_spill]] }
  0xfc   : > { %v1001_v47 = vrot.slane %v7404_v44, %v1000_v39  ;;  %v1328_v49 = vrot.slane %v7408_v48, %v1000_v39  ;;  %v5625_v51 = vpack.c.bf16 %v751_v46, %v749_v45  ;;  %v748_v52 = vld [vmem:[#allocation3 + $0xe0] sm:$0xff]  ;;  %v750_v53 = vld [vmem:[#allocation3 + $0xf0] sm:$0xff]  ;;  %v753_v54 = vld [vmem:[#allocation3 + $0x108] sm:$0xff]  ;;  %s8976_s20 = sld [smem:[#allocation26_spill]]  ;;  %s5176_s22 = sshll.u32 %s8980_s27, 4 }
  0xfd   : > { %5608 = vmatpush1.bf16.msra.mxu0 %v5607_v19  ;;  %5864 = vmatpush1.bf16.msra.mxu1 %v5607_v19  ;;  %v755_v55 = vld [vmem:[#allocation3 + $0x118] sm:$0xff]  ;;  %v5627_v56 = vpack.c.bf16 %v750_v53, %v748_v52  ;;  %v752_v58 = vld [vmem:[#allocation3 + $0x100] sm:$0xff]  ;;  %v754_v59 = vld [vmem:[#allocation3 + $0x110] sm:$0xff]  ;;  %v997_v52 = vrot.slane %v7404_v44, %v7412_v42  ;;  %v1324_v53 = vrot.slane %v7408_v48, %v7412_v42 }
  0xfe   : > { %5610 = vmatprep.subr.bf16.mxu0 %v5609_v20  ;;  %5866 = vmatprep.subr.bf16.mxu1 %v5609_v20  ;;  %v5629_v57 = vpack.c.bf16 %v755_v55, %v753_v54  ;;  %v757_v60 = vld [vmem:[#allocation3 + $0x128] sm:$0xff]  ;;  %v759_v61 = vld [vmem:[#allocation3 + $0x138] sm:$0xff]  ;;  %v5631_v62 = vpack.c.bf16 %v754_v59, %v752_v58  ;;  %v756_v0 = vld [vmem:[#allocation3 + $0x120] sm:$0xff] }
  0xff   : > { %1098 = vmatprep.mubr.f32.mxu0 %v1001_v47  ;;  %1425 = vmatprep.mubr.f32.mxu1 %v1328_v49  ;;  %v5633_v63 = vpack.c.bf16 %v759_v61, %v757_v60  ;;  %v758_v1 = vld [vmem:[#allocation3 + $0x130] sm:$0xff]  ;;  %v761_v2 = vld [vmem:[#allocation3 + $0x148] sm:$0xff]  ;;  %v763_v3 = vld [vmem:[#allocation3 + $0x158] sm:$0xff] }
 0x100   : > { %v5635_v4 = vpack.c.bf16 %v758_v1, %v756_v0  ;;  %v5637_v5 = vpack.c.bf16 %v763_v3, %v761_v2  ;;  %v760_v6 = vld [vmem:[#allocation3 + $0x140] sm:$0xff]  ;;  %v762_v7 = vld [vmem:[#allocation3 + $0x150] sm:$0xff]  ;;  %v765_v8 = vld [vmem:[#allocation3 + $0x168] sm:$0xff] }
 0x101   : > { %5612 = vmatpush1.bf16.msra.mxu0 %v5611_v26  ;;  %5868 = vmatpush1.bf16.msra.mxu1 %v5611_v26  ;;  %v767_v9 = vld [vmem:[#allocation3 + $0x178] sm:$0xff]  ;;  %v5639_v10 = vpack.c.bf16 %v762_v7, %v760_v6  ;;  %v764_v12 = vld [vmem:[#allocation3 + $0x160] sm:$0xff]  ;;  %v766_v13 = vld [vmem:[#allocation3 + $0x170] sm:$0xff] }
 0x102   : > { %5614 = vmatprep.subr.bf16.mxu0 %v5613_v27  ;;  %5870 = vmatprep.subr.bf16.mxu1 %v5613_v27  ;;  %v5641_v11 = vpack.c.bf16 %v767_v9, %v765_v8  ;;  %v769_v14 = vld [vmem:[#allocation3 + $0x188] sm:$0xff]  ;;  %v771_v15 = vld [vmem:[#allocation3 + $0x198] sm:$0xff]  ;;  %v5643_v16 = vpack.c.bf16 %v766_v13, %v764_v12  ;;  %v768_v18 = vld [vmem:[#allocation3 + $0x180] sm:$0xff] }
 0x103   : > { %v5645_v17 = vpack.c.bf16 %v771_v15, %v769_v14  ;;  %v770_v19 = vld [vmem:[#allocation3 + $0x190] sm:$0xff]  ;;  %v773_v20 = vld [vmem:[#allocation3 + $0x1a8] sm:$0xff]  ;;  %v775_v21 = vld [vmem:[#allocation3 + $0x1b8] sm:$0xff] }
 0x104   : > { %v5647_v22 = vpack.c.bf16 %v770_v19, %v768_v18  ;;  %v5649_v23 = vpack.c.bf16 %v775_v21, %v773_v20  ;;  %v772_v24 = vld [vmem:[#allocation3 + $0x1a0] sm:$0xff]  ;;  %v774_v26 = vld [vmem:[#allocation3 + $0x1b0] sm:$0xff]  ;;  %v777_v27 = vld [vmem:[#allocation3 + $0x1c8] sm:$0xff] }
 0x105   : > { %5616 = vmatpush1.bf16.msra.mxu0 %v5615_v33  ;;  %5872 = vmatpush1.bf16.msra.mxu1 %v5615_v33  ;;  %v779_v28 = vld [vmem:[#allocation3 + $0x1d8] sm:$0xff]  ;;  %v5651_v29 = vpack.c.bf16 %v774_v26, %v772_v24  ;;  %v776_v31 = vld [vmem:[#allocation3 + $0x1c0] sm:$0xff]  ;;  %v778_v33 = vld [vmem:[#allocation3 + $0x1d0] sm:$0xff] }
 0x106   : > { %5618 = vmatprep.subr.bf16.mxu0 %v5617_v34  ;;  %5874 = vmatprep.subr.bf16.mxu1 %v5617_v34  ;;  %v5653_v30 = vpack.c.bf16 %v779_v28, %v777_v27  ;;  %v781_v34 = vld [vmem:[#allocation3 + $0x1e8] sm:$0xff]  ;;  %v783_v35 = vld [vmem:[#allocation3 + $0x1f8] sm:$0xff]  ;;  %v5655_v36 = vpack.c.bf16 %v778_v33, %v776_v31  ;;  %v780_v38 = vld [vmem:[#allocation3 + $0x1e0] sm:$0xff] }
 0x107   : > { %v5657_v37 = vpack.c.bf16 %v783_v35, %v781_v34  ;;  %v782_v39 = vld [vmem:[#allocation3 + $0x1f0] sm:$0xff]  ;;  %v784_v46 = vld [vmem:[#allocation3 + $0x200] sm:$0xff]  ;;  %v789_v49 = vld [vmem:[#allocation3 + $0x228] sm:$0xff] }
 0x108   : > { %v5659_v43 = vpack.c.bf16 %v782_v39, %v780_v38  ;;  %v786_v47 = vld [vmem:[#allocation3 + $0x210] sm:$0xff]  ;;  %v793_v58 = vld [vmem:[#allocation3 + $0x248] sm:$0xff]  ;;  %v795_v59 = vld [vmem:[#allocation3 + $0x258] sm:$0xff] }
 0x109   : > { %5620 = vmatpush1.bf16.msra.mxu0 %v5619_v40  ;;  %5876 = vmatpush1.bf16.msra.mxu1 %v5619_v40  ;;  %v785_v40 = vld [vmem:[#allocation3 + $0x208] sm:$0xff]  ;;  %v5663_v54 = vpack.c.bf16 %v786_v47, %v784_v46  ;;  %v792_v0 = vld [vmem:[#allocation3 + $0x240] sm:$0xff]  ;;  %v794_v1 = vld [vmem:[#allocation3 + $0x250] sm:$0xff] }
 0x10a   : > { %5622 = vmatprep.subr.bf16.mxu0 %v5621_v41  ;;  %5878 = vmatprep.subr.bf16.mxu1 %v5621_v41  ;;  %v787_v41 = vld [vmem:[#allocation3 + $0x218] sm:$0xff]  ;;  %v797_v2 = vld [vmem:[#allocation3 + $0x268] sm:$0xff]  ;;  %v796_v6 = vld [vmem:[#allocation3 + $0x260] sm:$0xff] }
 0x10b   : > { %v5661_v45 = vpack.c.bf16 %v787_v41, %v785_v40  ;;  %v799_v3 = vld [vmem:[#allocation3 + $0x278] sm:$0xff]  ;;  %v798_v7 = vld [vmem:[#allocation3 + $0x270] sm:$0xff]  ;;  %v801_v8 = vld [vmem:[#allocation3 + $0x288] sm:$0xff] }
 0x10c   : > { %v803_v9 = vld [vmem:[#allocation3 + $0x298] sm:$0xff]  ;;  %v800_v12 = vld [vmem:[#allocation3 + $0x280] sm:$0xff]  ;;  %v802_v13 = vld [vmem:[#allocation3 + $0x290] sm:$0xff] }
 0x10d   : > { %5624 = vmatpush1.bf16.msra.mxu0 %v5623_v50  ;;  %5880 = vmatpush1.bf16.msra.mxu1 %v5623_v50  ;;  %v791_v50 = vld [vmem:[#allocation3 + $0x238] sm:$0xff]  ;;  %v805_v14 = vld [vmem:[#allocation3 + $0x2a8] sm:$0xff]  ;;  %v804_v18 = vld [vmem:[#allocation3 + $0x2a0] sm:$0xff] }
 0x10e   : > { %5626 = vmatprep.subr.bf16.mxu0 %v5625_v51  ;;  %5882 = vmatprep.subr.bf16.mxu1 %v5625_v51  ;;  %v1008_v51 = vsub.s32 3, %v7392_v32  ;;  %v5665_v55 = vpack.c.bf16 %v791_v50, %v789_v49  ;;  %v807_v15 = vld [vmem:[#allocation3 + $0x2b8] sm:$0xff]  ;;  %v806_v19 = vld [vmem:[#allocation3 + $0x2b0] sm:$0xff]  ;;  %v809_v20 = vld [vmem:[#allocation3 + $0x2c8] sm:$0xff] }
 0x10f   : > { %v811_v21 = vld [vmem:[#allocation3 + $0x2d8] sm:$0xff]  ;;  %v808_v24 = vld [vmem:[#allocation3 + $0x2c0] sm:$0xff]  ;;  %v810_v26 = vld [vmem:[#allocation3 + $0x2d0] sm:$0xff] }
 0x110   : > { %v1009_v60 = vrot.slane %v7404_v44, %v1008_v51  ;;  %v1336_v61 = vrot.slane %v7408_v48, %v1008_v51  ;;  %v813_v27 = vld [vmem:[#allocation3 + $0x2e8] sm:$0xff]  ;;  %v815_v28 = vld [vmem:[#allocation3 + $0x2f8] sm:$0xff]  ;;  %v812_v31 = vld [vmem:[#allocation3 + $0x2e0] sm:$0xff] }
 0x111   : > { %5628 = vmatpush1.bf16.msra.mxu0 %v5627_v56  ;;  %5884 = vmatpush1.bf16.msra.mxu1 %v5627_v56  ;;  %v788_v56 = vld [vmem:[#allocation3 + $0x220] sm:$0xff]  ;;  %v814_v33 = vld [vmem:[#allocation3 + $0x2f0] sm:$0xff]  ;;  %v817_v34 = vld [vmem:[#allocation3 + $0x308] sm:$0xff] }
 0x112   : > { %5630 = vmatprep.subr.bf16.mxu0 %v5629_v57  ;;  %5886 = vmatprep.subr.bf16.mxu1 %v5629_v57  ;;  %v790_v57 = vld [vmem:[#allocation3 + $0x230] sm:$0xff]  ;;  %v819_v35 = vld [vmem:[#allocation3 + $0x318] sm:$0xff]  ;;  %v816_v38 = vld [vmem:[#allocation3 + $0x300] sm:$0xff] }
 0x113   : > { %v818_v39 = vld [vmem:[#allocation3 + $0x310] sm:$0xff]  ;;  %v821_v40 = vld [vmem:[#allocation3 + $0x328] sm:$0xff]  ;;  %v823_v41 = vld [vmem:[#allocation3 + $0x338] sm:$0xff] }
 0x114   : > { %v820_v46 = vld [vmem:[#allocation3 + $0x320] sm:$0xff]  ;;  %v822_v47 = vld [vmem:[#allocation3 + $0x330] sm:$0xff]  ;;  %v825_v49 = vld [vmem:[#allocation3 + $0x348] sm:$0xff] }
 0x115   : > { %5632 = vmatpush1.bf16.msra.mxu0 %v5631_v62  ;;  %5888 = vmatpush1.bf16.msra.mxu1 %v5631_v62  ;;  %v5667_v62 = vpack.c.bf16 %v790_v57, %v788_v56  ;;  %v827_v50 = vld [vmem:[#allocation3 + $0x358] sm:$0xff]  ;;  %v5699_v51 = vpack.c.bf16 %v822_v47, %v820_v46  ;;  %v856_v47 = vld [vmem:[#allocation3 + $0x440] sm:$0xff] }
 0x116   : > { %5634 = vmatprep.subr.bf16.mxu0 %v5633_v63  ;;  %5890 = vmatprep.subr.bf16.mxu1 %v5633_v63  ;;  %v5669_v63 = vpack.c.bf16 %v795_v59, %v793_v58  ;;  %v831_v56 = vld [vmem:[#allocation3 + $0x378] sm:$0xff]  ;;  %v828_v59 = vld [vmem:[#allocation3 + $0x360] sm:$0xff] }
 0x119   : > { %5636 = vmatpush1.bf16.msra.mxu0 %v5635_v4  ;;  %5892 = vmatpush1.bf16.msra.mxu1 %v5635_v4  ;;  %v5671_v4 = vpack.c.bf16 %v794_v1, %v792_v0  ;;  %v832_v1 = vld [vmem:[#allocation3 + $0x380] sm:$0xff] }
 0x11a   : > { %5638 = vmatprep.subr.bf16.mxu0 %v5637_v5  ;;  %5894 = vmatprep.subr.bf16.mxu1 %v5637_v5  ;;  %v5673_v5 = vpack.c.bf16 %v799_v3, %v797_v2  ;;  %v834_v2 = vld [vmem:[#allocation3 + $0x390] sm:$0xff]  ;;  %v837_v3 = vld [vmem:[#allocation3 + $0x3a8] sm:$0xff] }
 0x11d   : > { %5640 = vmatpush1.bf16.msra.mxu0 %v5639_v10  ;;  %5896 = vmatpush1.bf16.msra.mxu1 %v5639_v10  ;;  %v5675_v10 = vpack.c.bf16 %v798_v7, %v796_v6  ;;  %v836_v7 = vld [vmem:[#allocation3 + $0x3a0] sm:$0xff] }
 0x11e   : > { %5642 = vmatprep.subr.bf16.mxu0 %v5641_v11  ;;  %5898 = vmatprep.subr.bf16.mxu1 %v5641_v11  ;;  %v5677_v11 = vpack.c.bf16 %v803_v9, %v801_v8  ;;  %v838_v8 = vld [vmem:[#allocation3 + $0x3b0] sm:$0xff]  ;;  %v841_v9 = vld [vmem:[#allocation3 + $0x3c8] sm:$0xff] }
 0x121   : > { %5644 = vmatpush1.bf16.msra.mxu0 %v5643_v16  ;;  %5900 = vmatpush1.bf16.msra.mxu1 %v5643_v16  ;;  %v5679_v16 = vpack.c.bf16 %v802_v13, %v800_v12  ;;  %v840_v13 = vld [vmem:[#allocation3 + $0x3c0] sm:$0xff] }
 0x122   : > { %5646 = vmatprep.subr.bf16.mxu0 %v5645_v17  ;;  %5902 = vmatprep.subr.bf16.mxu1 %v5645_v17  ;;  %v5681_v17 = vpack.c.bf16 %v807_v15, %v805_v14  ;;  %v842_v14 = vld [vmem:[#allocation3 + $0x3d0] sm:$0xff]  ;;  %v845_v15 = vld [vmem:[#allocation3 + $0x3e8] sm:$0xff] }
 0x125   : > { %5648 = vmatpush1.bf16.msra.mxu0 %v5647_v22  ;;  %5904 = vmatpush1.bf16.msra.mxu1 %v5647_v22  ;;  %v5683_v22 = vpack.c.bf16 %v806_v19, %v804_v18  ;;  %v844_v19 = vld [vmem:[#allocation3 + $0x3e0] sm:$0xff] }
 0x126   : > { %5650 = vmatprep.subr.bf16.mxu0 %v5649_v23  ;;  %5906 = vmatprep.subr.bf16.mxu1 %v5649_v23  ;;  %v5685_v23 = vpack.c.bf16 %v811_v21, %v809_v20  ;;  %v846_v20 = vld [vmem:[#allocation3 + $0x3f0] sm:$0xff]  ;;  %v849_v21 = vld [vmem:[#allocation3 + $0x408] sm:$0xff] }
 0x129   : > { %5652 = vmatpush1.bf16.msra.mxu0 %v5651_v29  ;;  %5908 = vmatpush1.bf16.msra.mxu1 %v5651_v29  ;;  %v5687_v29 = vpack.c.bf16 %v810_v26, %v808_v24  ;;  %v5723_v24 = vpack.c.bf16 %v846_v20, %v844_v19  ;;  %v880_v20 = vld [vmem:[#allocation3 + $0x500] sm:$0xff] }
 0x12a   : > { %5654 = vmatprep.subr.bf16.mxu0 %v5653_v30  ;;  %5910 = vmatprep.subr.bf16.mxu1 %v5653_v30  ;;  %v5689_v30 = vpack.c.bf16 %v815_v28, %v813_v27  ;;  %v848_v27 = vld [vmem:[#allocation3 + $0x400] sm:$0xff]  ;;  %v850_v28 = vld [vmem:[#allocation3 + $0x410] sm:$0xff] }
 0x12d   : > { %5656 = vmatpush1.bf16.msra.mxu0 %v5655_v36  ;;  %5912 = vmatpush1.bf16.msra.mxu1 %v5655_v36  ;;  %v5691_v36 = vpack.c.bf16 %v814_v33, %v812_v31  ;;  %v1016_v31 = vsub.s32 5, %v7392_v32 }
 0x12e   : > { %5658 = vmatprep.subr.bf16.mxu0 %v5657_v37  ;;  %5914 = vmatprep.subr.bf16.mxu1 %v5657_v37  ;;  %v5693_v37 = vpack.c.bf16 %v819_v35, %v817_v34  ;;  %v5727_v35 = vpack.c.bf16 %v850_v28, %v848_v27  ;;  %v884_v27 = vld [vmem:[#allocation3 + $0x520] sm:$0xff]  ;;  %v886_v28 = vld [vmem:[#allocation3 + $0x530] sm:$0xff] }
 0x131   : > { %5660 = vmatpush1.bf16.msra.mxu0 %v5659_v43  ;;  %5916 = vmatpush1.bf16.msra.mxu1 %v5659_v43  ;;  %v5695_v43 = vpack.c.bf16 %v818_v39, %v816_v38  ;;  %v854_v38 = vld [vmem:[#allocation3 + $0x430] sm:$0xff]  ;;  %v857_v39 = vld [vmem:[#allocation3 + $0x448] sm:$0xff] }
 0x132   : > { %5662 = vmatprep.subr.bf16.mxu0 %v5661_v45  ;;  %5918 = vmatprep.subr.bf16.mxu1 %v5661_v45  ;;  %v5697_v45 = vpack.c.bf16 %v823_v41, %v821_v40  ;;  %v859_v40 = vld [vmem:[#allocation3 + $0x458] sm:$0xff]  ;;  %v1017_v41 = vrot.slane %v7404_v44, %v1016_v31 }
 0x133   : > { %v5733_v46 = vpack.c.bf16 %v859_v40, %v857_v39  ;;  %v892_v40 = vld [vmem:[#allocation3 + $0x560] sm:$0xff] }
 0x134   : > { %1099 = vmatmul.mubr.f32.vlgmr.msra.gmra.mrb[0].mxu0 %v997_v52  ;;  %1426 = vmatmul.mubr.f32.vlgmr.msra.gmra.mrb[0].mxu1 %v1324_v53  ;;  %v5701_v52 = vpack.c.bf16 %v827_v50, %v825_v49  ;;  %v824_v53 = vld [vmem:[#allocation3 + $0x340] sm:$0xff]  ;;  %v858_v49 = vld [vmem:[#allocation3 + $0x450] sm:$0xff]  ;;  %v861_v50 = vld [vmem:[#allocation3 + $0x468] sm:$0xff] }
 0x135   : > { %5664 = vmatpush1.bf16.msra.mxu0 %v5663_v54  ;;  %5920 = vmatpush1.bf16.msra.mxu1 %v5663_v54  ;;  %v826_v54 = vld [vmem:[#allocation3 + $0x350] sm:$0xff] }
 0x136   : > { %5666 = vmatprep.subr.bf16.mxu0 %v5665_v55  ;;  %5922 = vmatprep.subr.bf16.mxu1 %v5665_v55  ;;  %v829_v55 = vld [vmem:[#allocation3 + $0x368] sm:$0xff]  ;;  %v5703_v57 = vpack.c.bf16 %v826_v54, %v824_v53  ;;  %v860_v54 = vld [vmem:[#allocation3 + $0x460] sm:$0xff] }
 0x137   : > { %1169 = vmatprep.mubr.f32.mxu0 %v1009_v60  ;;  %1496 = vmatprep.mubr.f32.mxu1 %v1336_v61  ;;  %v5705_v58 = vpack.c.bf16 %v831_v56, %v829_v55  ;;  %v830_v60 = vld [vmem:[#allocation3 + $0x370] sm:$0xff]  ;;  %v833_v61 = vld [vmem:[#allocation3 + $0x388] sm:$0xff] }
 0x138   : > { %v862_v55 = vld [vmem:[#allocation3 + $0x470] sm:$0xff]  ;;  %v865_v56 = vld [vmem:[#allocation3 + $0x488] sm:$0xff] }
 0x139   : > { %5668 = vmatpush1.bf16.msra.mxu0 %v5667_v62  ;;  %5924 = vmatpush1.bf16.msra.mxu1 %v5667_v62  ;;  %v835_v62 = vld [vmem:[#allocation3 + $0x398] sm:$0xff] }
 0x13a   : > { %5670 = vmatprep.subr.bf16.mxu0 %v5669_v63  ;;  %5926 = vmatprep.subr.bf16.mxu1 %v5669_v63  ;;  %v5707_v63 = vpack.c.bf16 %v830_v60, %v828_v59  ;;  %v5709_v0 = vpack.c.bf16 %v835_v62, %v833_v61  ;;  %v864_v60 = vld [vmem:[#allocation3 + $0x480] sm:$0xff]  ;;  %v866_v61 = vld [vmem:[#allocation3 + $0x490] sm:$0xff]  ;;  %v869_v62 = vld [vmem:[#allocation3 + $0x4a8] sm:$0xff] }
 0x13d   : > { %5672 = vmatpush1.bf16.msra.mxu0 %v5671_v4  ;;  %5928 = vmatpush1.bf16.msra.mxu1 %v5671_v4  ;;  %v839_v4 = vld [vmem:[#allocation3 + $0x3b8] sm:$0xff] }
 0x13e   : > { %5674 = vmatprep.subr.bf16.mxu0 %v5673_v5  ;;  %5930 = vmatprep.subr.bf16.mxu1 %v5673_v5  ;;  %v5711_v5 = vpack.c.bf16 %v834_v2, %v832_v1  ;;  %v5713_v6 = vpack.c.bf16 %v839_v4, %v837_v3  ;;  %v868_v2 = vld [vmem:[#allocation3 + $0x4a0] sm:$0xff]  ;;  %v870_v3 = vld [vmem:[#allocation3 + $0x4b0] sm:$0xff]  ;;  %v873_v4 = vld [vmem:[#allocation3 + $0x4c8] sm:$0xff] }
 0x141   : > { %5676 = vmatpush1.bf16.msra.mxu0 %v5675_v10  ;;  %5932 = vmatpush1.bf16.msra.mxu1 %v5675_v10  ;;  %v843_v10 = vld [vmem:[#allocation3 + $0x3d8] sm:$0xff] }
 0x142   : > { %5678 = vmatprep.subr.bf16.mxu0 %v5677_v11  ;;  %5934 = vmatprep.subr.bf16.mxu1 %v5677_v11  ;;  %v5715_v11 = vpack.c.bf16 %v838_v8, %v836_v7  ;;  %v5717_v12 = vpack.c.bf16 %v843_v10, %v841_v9  ;;  %v872_v8 = vld [vmem:[#allocation3 + $0x4c0] sm:$0xff]  ;;  %v874_v9 = vld [vmem:[#allocation3 + $0x4d0] sm:$0xff]  ;;  %v877_v10 = vld [vmem:[#allocation3 + $0x4e8] sm:$0xff] }
 0x145   : > { %5680 = vmatpush1.bf16.msra.mxu0 %v5679_v16  ;;  %5936 = vmatpush1.bf16.msra.mxu1 %v5679_v16  ;;  %v847_v16 = vld [vmem:[#allocation3 + $0x3f8] sm:$0xff] }
 0x146   : > { %5682 = vmatprep.subr.bf16.mxu0 %v5681_v17  ;;  %5938 = vmatprep.subr.bf16.mxu1 %v5681_v17  ;;  %v5719_v17 = vpack.c.bf16 %v842_v14, %v840_v13  ;;  %v5721_v18 = vpack.c.bf16 %v847_v16, %v845_v15  ;;  %v876_v14 = vld [vmem:[#allocation3 + $0x4e0] sm:$0xff]  ;;  %v878_v15 = vld [vmem:[#allocation3 + $0x4f0] sm:$0xff]  ;;  %v881_v16 = vld [vmem:[#allocation3 + $0x508] sm:$0xff] }
 0x149   : > { %5684 = vmatpush1.bf16.msra.mxu0 %v5683_v22  ;;  %5940 = vmatpush1.bf16.msra.mxu1 %v5683_v22  ;;  %v851_v22 = vld [vmem:[#allocation3 + $0x418] sm:$0xff] }
 0x14a   : > { %5686 = vmatprep.subr.bf16.mxu0 %v5685_v23  ;;  %5942 = vmatprep.subr.bf16.mxu1 %v5685_v23  ;;  %v1004_v23 = vsub.s32 2, %v7392_v32  ;;  %v5725_v26 = vpack.c.bf16 %v851_v22, %v849_v21  ;;  %v882_v21 = vld [vmem:[#allocation3 + $0x510] sm:$0xff]  ;;  %v885_v22 = vld [vmem:[#allocation3 + $0x528] sm:$0xff] }
 0x14c   : > { %v1005_v33 = vrot.slane %v7404_v44, %v1004_v23  ;;  %v1332_v34 = vrot.slane %v7408_v48, %v1004_v23  ;;  %v887_v23 = vld [vmem:[#allocation3 + $0x538] sm:$0xff] }
 0x14d   : > { %5688 = vmatpush1.bf16.msra.mxu0 %v5687_v29  ;;  %5944 = vmatpush1.bf16.msra.mxu1 %v5687_v29  ;;  %v853_v29 = vld [vmem:[#allocation3 + $0x428] sm:$0xff] }
 0x14e   : > { %5690 = vmatprep.subr.bf16.mxu0 %v5689_v30  ;;  %5946 = vmatprep.subr.bf16.mxu1 %v5689_v30  ;;  %v855_v30 = vld [vmem:[#allocation3 + $0x438] sm:$0xff] }
 0x151   : > { %5692 = vmatpush1.bf16.msra.mxu0 %v5691_v36  ;;  %5948 = vmatpush1.bf16.msra.mxu1 %v5691_v36  ;;  %v5729_v36 = vpack.c.bf16 %v855_v30, %v853_v29  ;;  %v889_v29 = vld [vmem:[#allocation3 + $0x548] sm:$0xff]  ;;  %v891_v30 = vld [vmem:[#allocation3 + $0x558] sm:$0xff] }
 0x152   : > { %5694 = vmatprep.subr.bf16.mxu0 %v5693_v37  ;;  %5950 = vmatprep.subr.bf16.mxu1 %v5693_v37  ;;  %v852_v37 = vld [vmem:[#allocation3 + $0x420] sm:$0xff] }
 0x155   : > { %5696 = vmatpush1.bf16.msra.mxu0 %v5695_v43  ;;  %5952 = vmatpush1.bf16.msra.mxu1 %v5695_v43  ;;  %v1344_v43 = vrot.slane %v7408_v48, %v1016_v31  ;;  %v5763_v31 = vpack.c.bf16 %v886_v28, %v884_v27  ;;  %v920_v28 = vld [vmem:[#allocation3 + $0x640] sm:$0xff] }
 0x156   : > { %5698 = vmatprep.subr.bf16.mxu0 %v5697_v45  ;;  %5954 = vmatprep.subr.bf16.mxu1 %v5697_v45  ;;  %v5731_v45 = vpack.c.bf16 %v854_v38, %v852_v37  ;;  %v895_v37 = vld [vmem:[#allocation3 + $0x578] sm:$0xff] }
 0x159   : > { %5700 = vmatpush1.bf16.msra.mxu0 %v5699_v51  ;;  %5956 = vmatpush1.bf16.msra.mxu1 %v5699_v51  ;;  %v863_v51 = vld [vmem:[#allocation3 + $0x478] sm:$0xff] }
 0x15a   : > { %5702 = vmatprep.subr.bf16.mxu0 %v5701_v52  ;;  %5958 = vmatprep.subr.bf16.mxu1 %v5701_v52  ;;  %v5735_v52 = vpack.c.bf16 %v858_v49, %v856_v47  ;;  %v5737_v53 = vpack.c.bf16 %v863_v51, %v861_v50  ;;  %v896_v49 = vld [vmem:[#allocation3 + $0x580] sm:$0xff]  ;;  %v898_v50 = vld [vmem:[#allocation3 + $0x590] sm:$0xff]  ;;  %v901_v51 = vld [vmem:[#allocation3 + $0x5a8] sm:$0xff] }
 0x15d   : > { %5704 = vmatpush1.bf16.msra.mxu0 %v5703_v57  ;;  %5960 = vmatpush1.bf16.msra.mxu1 %v5703_v57  ;;  %v867_v57 = vld [vmem:[#allocation3 + $0x498] sm:$0xff] }
 0x15e   : > { %5706 = vmatprep.subr.bf16.mxu0 %v5705_v58  ;;  %5962 = vmatprep.subr.bf16.mxu1 %v5705_v58  ;;  %v5739_v58 = vpack.c.bf16 %v862_v55, %v860_v54  ;;  %v5741_v59 = vpack.c.bf16 %v867_v57, %v865_v56  ;;  %v900_v55 = vld [vmem:[#allocation3 + $0x5a0] sm:$0xff]  ;;  %v902_v56 = vld [vmem:[#allocation3 + $0x5b0] sm:$0xff]  ;;  %v905_v57 = vld [vmem:[#allocation3 + $0x5c8] sm:$0xff] }
 0x161   : > { %5708 = vmatpush1.bf16.msra.mxu0 %v5707_v63  ;;  %5964 = vmatpush1.bf16.msra.mxu1 %v5707_v63  ;;  %v871_v63 = vld [vmem:[#allocation3 + $0x4b8] sm:$0xff] }
 0x162   : > { %5710 = vmatprep.subr.bf16.mxu0 %v5709_v0  ;;  %5966 = vmatprep.subr.bf16.mxu1 %v5709_v0  ;;  %v5743_v0 = vpack.c.bf16 %v866_v61, %v864_v60  ;;  %v5745_v1 = vpack.c.bf16 %v871_v63, %v869_v62  ;;  %v904_v61 = vld [vmem:[#allocation3 + $0x5c0] sm:$0xff]  ;;  %v906_v62 = vld [vmem:[#allocation3 + $0x5d0] sm:$0xff]  ;;  %v909_v63 = vld [vmem:[#allocation3 + $0x5e8] sm:$0xff] }
 0x165   : > { %5712 = vmatpush1.bf16.msra.mxu0 %v5711_v5  ;;  %5968 = vmatpush1.bf16.msra.mxu1 %v5711_v5  ;;  %v875_v5 = vld [vmem:[#allocation3 + $0x4d8] sm:$0xff] }
 0x166   : > { %5714 = vmatprep.subr.bf16.mxu0 %v5713_v6  ;;  %5970 = vmatprep.subr.bf16.mxu1 %v5713_v6  ;;  %v5747_v6 = vpack.c.bf16 %v870_v3, %v868_v2  ;;  %v5749_v7 = vpack.c.bf16 %v875_v5, %v873_v4  ;;  %v908_v3 = vld [vmem:[#allocation3 + $0x5e0] sm:$0xff]  ;;  %v910_v4 = vld [vmem:[#allocation3 + $0x5f0] sm:$0xff]  ;;  %v913_v5 = vld [vmem:[#allocation3 + $0x608] sm:$0xff] }
 0x169   : > { %5716 = vmatpush1.bf16.msra.mxu0 %v5715_v11  ;;  %5972 = vmatpush1.bf16.msra.mxu1 %v5715_v11  ;;  %v879_v11 = vld [vmem:[#allocation3 + $0x4f8] sm:$0xff] }
 0x16a   : > { %5718 = vmatprep.subr.bf16.mxu0 %v5717_v12  ;;  %5974 = vmatprep.subr.bf16.mxu1 %v5717_v12  ;;  %v5751_v12 = vpack.c.bf16 %v874_v9, %v872_v8  ;;  %v5753_v13 = vpack.c.bf16 %v879_v11, %v877_v10  ;;  %v5787_v8 = vpack.c.bf16 %v910_v4, %v908_v3  ;;  %v912_v10 = vld [vmem:[#allocation3 + $0x600] sm:$0xff]  ;;  %v914_v11 = vld [vmem:[#allocation3 + $0x610] sm:$0xff]  ;;  %v949_v4 = vld [vmem:[#allocation3 + $0x728] sm:$0xff] }
 0x16b   : > { %v946_v3 = vld [vmem:[#allocation3 + $0x710] sm:$0xff] }
 0x16d   : > { %5720 = vmatpush1.bf16.msra.mxu0 %v5719_v17  ;;  %5976 = vmatpush1.bf16.msra.mxu1 %v5719_v17  ;;  %v883_v17 = vld [vmem:[#allocation3 + $0x518] sm:$0xff] }
 0x16e   : > { %5722 = vmatprep.subr.bf16.mxu0 %v5721_v18  ;;  %5978 = vmatprep.subr.bf16.mxu1 %v5721_v18  ;;  %v5755_v18 = vpack.c.bf16 %v878_v15, %v876_v14  ;;  %v5757_v19 = vpack.c.bf16 %v883_v17, %v881_v16  ;;  %v1024_v14 = vsub.s32 7, %v7392_v32  ;;  %v5791_v17 = vpack.c.bf16 %v914_v11, %v912_v10  ;;  %v953_v10 = vld [vmem:[#allocation3 + $0x748] sm:$0xff]  ;;  %v955_v11 = vld [vmem:[#allocation3 + $0x758] sm:$0xff] }
 0x171   : > { %5724 = vmatpush1.bf16.msra.mxu0 %v5723_v24  ;;  %5980 = vmatpush1.bf16.msra.mxu1 %v5723_v24  ;;  %v5759_v24 = vpack.c.bf16 %v882_v21, %v880_v20  ;;  %v918_v20 = vld [vmem:[#allocation3 + $0x630] sm:$0xff]  ;;  %v921_v21 = vld [vmem:[#allocation3 + $0x648] sm:$0xff] }
 0x172   : > { %5726 = vmatprep.subr.bf16.mxu0 %v5725_v26  ;;  %5982 = vmatprep.subr.bf16.mxu1 %v5725_v26  ;;  %v5761_v26 = vpack.c.bf16 %v887_v23, %v885_v22  ;;  %v923_v22 = vld [vmem:[#allocation3 + $0x658] sm:$0xff]  ;;  %v1025_v23 = vrot.slane %v7404_v44, %v1024_v14 }
 0x173   : > { %v5797_v27 = vpack.c.bf16 %v923_v22, %v921_v21  ;;  %v958_v21 = vld [vmem:[#allocation3 + $0x770] sm:$0xff]  ;;  %v961_v22 = vld [vmem:[#allocation3 + $0x788] sm:$0xff] }
 0x174   : > { %1170 = vmatmul.mubr.f32.vlgmr.msra.gmra.mrb[0].mxu0 %v1005_v33  ;;  %1497 = vmatmul.mubr.f32.vlgmr.msra.gmra.mrb[0].mxu1 %v1332_v34  ;;  %v5765_v33 = vpack.c.bf16 %v891_v30, %v889_v29  ;;  %v888_v34 = vld [vmem:[#allocation3 + $0x540] sm:$0xff]  ;;  %v922_v29 = vld [vmem:[#allocation3 + $0x650] sm:$0xff]  ;;  %v925_v30 = vld [vmem:[#allocation3 + $0x668] sm:$0xff] }
 0x175   : > { %5728 = vmatpush1.bf16.msra.mxu0 %v5727_v35  ;;  %5984 = vmatpush1.bf16.msra.mxu1 %v5727_v35  ;;  %v890_v35 = vld [vmem:[#allocation3 + $0x550] sm:$0xff] }
 0x176   : > { %5730 = vmatprep.subr.bf16.mxu0 %v5729_v36  ;;  %5986 = vmatprep.subr.bf16.mxu1 %v5729_v36  ;;  %v893_v36 = vld [vmem:[#allocation3 + $0x568] sm:$0xff]  ;;  %v5767_v38 = vpack.c.bf16 %v890_v35, %v888_v34  ;;  %v926_v34 = vld [vmem:[#allocation3 + $0x670] sm:$0xff] }
 0x177   : > { %1240 = vmatprep.mubr.f32.mxu0 %v1017_v41  ;;  %1567 = vmatprep.mubr.f32.mxu1 %v1344_v43  ;;  %v5769_v39 = vpack.c.bf16 %v895_v37, %v893_v36  ;;  %v894_v41 = vld [vmem:[#allocation3 + $0x570] sm:$0xff]  ;;  %v897_v43 = vld [vmem:[#allocation3 + $0x588] sm:$0xff]  ;;  %v931_v36 = vld [vmem:[#allocation3 + $0x698] sm:$0xff] }
 0x178   : > { %v929_v35 = vld [vmem:[#allocation3 + $0x688] sm:$0xff] }
 0x179   : > { %5732 = vmatpush1.bf16.msra.mxu0 %v5731_v45  ;;  %5988 = vmatpush1.bf16.msra.mxu1 %v5731_v45  ;;  %v899_v45 = vld [vmem:[#allocation3 + $0x598] sm:$0xff] }
 0x17a   : > { %5734 = vmatprep.subr.bf16.mxu0 %v5733_v46  ;;  %5990 = vmatprep.subr.bf16.mxu1 %v5733_v46  ;;  %v5771_v46 = vpack.c.bf16 %v894_v41, %v892_v40  ;;  %v5773_v47 = vpack.c.bf16 %v899_v45, %v897_v43  ;;  %v930_v40 = vld [vmem:[#allocation3 + $0x690] sm:$0xff]  ;;  %v933_v41 = vld [vmem:[#allocation3 + $0x6a8] sm:$0xff]  ;;  %v935_v43 = vld [vmem:[#allocation3 + $0x6b8] sm:$0xff] }
 0x17d   : > { %5736 = vmatpush1.bf16.msra.mxu0 %v5735_v52  ;;  %5992 = vmatpush1.bf16.msra.mxu1 %v5735_v52  ;;  %v903_v52 = vld [vmem:[#allocation3 + $0x5b8] sm:$0xff] }
 0x17e   : > { %5738 = vmatprep.subr.bf16.mxu0 %v5737_v53  ;;  %5994 = vmatprep.subr.bf16.mxu1 %v5737_v53  ;;  %v5775_v53 = vpack.c.bf16 %v898_v50, %v896_v49  ;;  %v5777_v54 = vpack.c.bf16 %v903_v52, %v901_v51  ;;  %v934_v49 = vld [vmem:[#allocation3 + $0x6b0] sm:$0xff]  ;;  %v937_v50 = vld [vmem:[#allocation3 + $0x6c8] sm:$0xff]  ;;  %v939_v51 = vld [vmem:[#allocation3 + $0x6d8] sm:$0xff] }
 0x181   : > { %5740 = vmatpush1.bf16.msra.mxu0 %v5739_v58  ;;  %5996 = vmatpush1.bf16.msra.mxu1 %v5739_v58  ;;  %v907_v58 = vld [vmem:[#allocation3 + $0x5d8] sm:$0xff] }
 0x182   : > { %5742 = vmatprep.subr.bf16.mxu0 %v5741_v59  ;;  %5998 = vmatprep.subr.bf16.mxu1 %v5741_v59  ;;  %v5779_v59 = vpack.c.bf16 %v902_v56, %v900_v55  ;;  %v5781_v60 = vpack.c.bf16 %v907_v58, %v905_v57  ;;  %v938_v55 = vld [vmem:[#allocation3 + $0x6d0] sm:$0xff]  ;;  %v941_v56 = vld [vmem:[#allocation3 + $0x6e8] sm:$0xff]  ;;  %v943_v57 = vld [vmem:[#allocation3 + $0x6f8] sm:$0xff] }
 0x185   : > { %5744 = vmatpush1.bf16.msra.mxu0 %v5743_v0  ;;  %6000 = vmatpush1.bf16.msra.mxu1 %v5743_v0  ;;  %v911_v0 = vld [vmem:[#allocation3 + $0x5f8] sm:$0xff] }
 0x186   : > { %5746 = vmatprep.subr.bf16.mxu0 %v5745_v1  ;;  %6002 = vmatprep.subr.bf16.mxu1 %v5745_v1  ;;  %v5783_v1 = vpack.c.bf16 %v906_v62, %v904_v61  ;;  %v5785_v2 = vpack.c.bf16 %v911_v0, %v909_v63  ;;  %v942_v61 = vld [vmem:[#allocation3 + $0x6f0] sm:$0xff]  ;;  %v945_v62 = vld [vmem:[#allocation3 + $0x708] sm:$0xff]  ;;  %v947_v63 = vld [vmem:[#allocation3 + $0x718] sm:$0xff] }
 0x189   : > { %5748 = vmatpush1.bf16.msra.mxu0 %v5747_v6  ;;  %6004 = vmatpush1.bf16.msra.mxu1 %v5747_v6  ;;  %v915_v6 = vld [vmem:[#allocation3 + $0x618] sm:$0xff] }
 0x18a   : > { %5750 = vmatprep.subr.bf16.mxu0 %v5749_v7  ;;  %6006 = vmatprep.subr.bf16.mxu1 %v5749_v7  ;;  %v1012_v7 = vsub.s32 4, %v7392_v32  ;;  %v5789_v9 = vpack.c.bf16 %v915_v6, %v913_v5  ;;  %v951_v5 = vld [vmem:[#allocation3 + $0x738] sm:$0xff] }
 0x18c   : > { %v1013_v15 = vrot.slane %v7404_v44, %v1012_v7  ;;  %v1340_v16 = vrot.slane %v7408_v48, %v1012_v7  ;;  %v5825_v7 = vpack.c.bf16 %v951_v5, %v949_v4 }
 0x18d   : > { %5752 = vmatpush1.bf16.msra.mxu0 %v5751_v12  ;;  %6008 = vmatpush1.bf16.msra.mxu1 %v5751_v12  ;;  %v917_v12 = vld [vmem:[#allocation3 + $0x628] sm:$0xff] }
 0x18e   : > { %5754 = vmatprep.subr.bf16.mxu0 %v5753_v13  ;;  %6010 = vmatprep.subr.bf16.mxu1 %v5753_v13  ;;  %v919_v13 = vld [vmem:[#allocation3 + $0x638] sm:$0xff] }
 0x191   : > { %5756 = vmatpush1.bf16.msra.mxu0 %v5755_v18  ;;  %6012 = vmatpush1.bf16.msra.mxu1 %v5755_v18  ;;  %v5793_v18 = vpack.c.bf16 %v919_v13, %v917_v12  ;;  %v5829_v13 = vpack.c.bf16 %v955_v11, %v953_v10  ;;  %v7046_v10 = vmov 0.0  }
 0x192   : > { %5758 = vmatprep.subr.bf16.mxu0 %v5757_v19  ;;  %6014 = vmatprep.subr.bf16.mxu1 %v5757_v19  ;;  %v916_v19 = vld [vmem:[#allocation3 + $0x620] sm:$0xff] }
 0x195   : > { %5760 = vmatpush1.bf16.msra.mxu0 %v5759_v24  ;;  %6016 = vmatpush1.bf16.msra.mxu1 %v5759_v24  ;;  %v1352_v24 = vrot.slane %v7408_v48, %v1024_v14  ;;  %v924_v48 = vld [vmem:[#allocation3 + $0x660] sm:$0xff] }
 0x196   : > { %5762 = vmatprep.subr.bf16.mxu0 %v5761_v26  ;;  %6018 = vmatprep.subr.bf16.mxu1 %v5761_v26  ;;  %v5795_v26 = vpack.c.bf16 %v918_v20, %v916_v19  ;;  %v5803_v37 = vpack.c.bf16 %v926_v34, %v924_v48  ;;  %v952_v14 = vld [vmem:[#allocation3 + $0x740] sm:$0xff]  ;;  %v966_v48 = vld [vmem:[#allocation3 + $0x7b0] sm:$0xff]  ;;  %v969_v34 = vld [vmem:[#allocation3 + $0x7c8] sm:$0xff] }
 0x197   : > { %v956_v20 = vld [vmem:[#allocation3 + $0x760] sm:$0xff] }
 0x199   : > { %5764 = vmatpush1.bf16.msra.mxu0 %v5763_v31  ;;  %6020 = vmatpush1.bf16.msra.mxu1 %v5763_v31  ;;  %v927_v31 = vld [vmem:[#allocation3 + $0x678] sm:$0xff] }
 0x19a   : > { %5766 = vmatprep.subr.bf16.mxu0 %v5765_v33  ;;  %6022 = vmatprep.subr.bf16.mxu1 %v5765_v33  ;;  %v5799_v33 = vpack.c.bf16 %v922_v29, %v920_v28  ;;  %v5801_v44 = vpack.c.bf16 %v927_v31, %v925_v30  ;;  %v962_v28 = vld [vmem:[#allocation3 + $0x790] sm:$0xff]  ;;  %v965_v29 = vld [vmem:[#allocation3 + $0x7a8] sm:$0xff]  ;;  %v967_v30 = vld [vmem:[#allocation3 + $0x7b8] sm:$0xff] }
 0x19d   : > { %5768 = vmatpush1.bf16.msra.mxu0 %v5767_v38  ;;  %6024 = vmatpush1.bf16.msra.mxu1 %v5767_v38  ;;  %v5805_v38 = vpack.c.bf16 %v931_v36, %v929_v35  ;;  %v971_v35 = vld [vmem:[#allocation3 + $0x7d8] sm:$0xff] }
 0x19e   : > { %5770 = vmatprep.subr.bf16.mxu0 %v5769_v39  ;;  %6026 = vmatprep.subr.bf16.mxu1 %v5769_v39  ;;  %v928_v39 = vld [vmem:[#allocation3 + $0x680] sm:$0xff] }
 0x19f   : > { %v5807_v45 = vpack.c.bf16 %v930_v40, %v928_v39  ;;  %v970_v39 = vld [vmem:[#allocation3 + $0x7d0] sm:$0xff]  ;;  %v973_v40 = vld [vmem:[#allocation3 + $0x7e8] sm:$0xff] }
 0x1a1   : > { %5772 = vmatpush1.bf16.msra.mxu0 %v5771_v46  ;;  %6028 = vmatpush1.bf16.msra.mxu1 %v5771_v46  ;;  %v5809_v46 = vpack.c.bf16 %v935_v43, %v933_v41  ;;  %v975_v41 = vld [vmem:[#allocation3 + $0x7f8] sm:$0xff] }
 0x1a2   : > { %5774 = vmatprep.subr.bf16.mxu0 %v5773_v47  ;;  %6030 = vmatprep.subr.bf16.mxu1 %v5773_v47  ;;  %v932_v47 = vld [vmem:[#allocation3 + $0x6a0] sm:$0xff] }
 0x1a3   : > { %v5811_v52 = vpack.c.bf16 %v934_v49, %v932_v47  ;;  %v974_v47 = vld [vmem:[#allocation3 + $0x7f0] sm:$0xff]  ;;  %v977_v49 = vld [vmem:[#allocation5 + $0x8] sm:$0xff] }
 0x1a5   : > { %5776 = vmatpush1.bf16.msra.mxu0 %v5775_v53  ;;  %6032 = vmatpush1.bf16.msra.mxu1 %v5775_v53  ;;  %v5813_v53 = vpack.c.bf16 %v939_v51, %v937_v50  ;;  %v979_v50 = vld [vmem:[#allocation5 + $0x18] sm:$0xff]  ;;  %v1020_v51 = vsub.s32 6, %v7392_v32 }
 0x1a6   : > { %5778 = vmatprep.subr.bf16.mxu0 %v5777_v54  ;;  %6034 = vmatprep.subr.bf16.mxu1 %v5777_v54  ;;  %v936_v54 = vld [vmem:[#allocation3 + $0x6c0] sm:$0xff] }
 0x1a7   : > { %v5815_v58 = vpack.c.bf16 %v938_v55, %v936_v54  ;;  %v976_v54 = vld [vmem:[#allocation5] sm:$0xff]  ;;  %v978_v55 = vld [vmem:[#allocation5 + $0x10] sm:$0xff] }
 0x1a9   : > { %5780 = vmatpush1.bf16.msra.mxu0 %v5779_v59  ;;  %6036 = vmatpush1.bf16.msra.mxu1 %v5779_v59  ;;  %v5817_v59 = vpack.c.bf16 %v943_v57, %v941_v56  ;;  %v981_v56 = vld [vmem:[#allocation5 + $0x28] sm:$0xff]  ;;  %v983_v57 = vld [vmem:[#allocation5 + $0x38] sm:$0xff] }
 0x1aa   : > { %5782 = vmatprep.subr.bf16.mxu0 %v5781_v60  ;;  %6038 = vmatprep.subr.bf16.mxu1 %v5781_v60  ;;  %v940_v60 = vld [vmem:[#allocation3 + $0x6e0] sm:$0xff] }
 0x1ab   : > { %v5819_v0 = vpack.c.bf16 %v942_v61, %v940_v60  ;;  %v6752_v60 = vld [vmem:[%s7400_s17 + $0x8] sm:$0xff] }
 0x1ac   : > { %v1348_v61 = vrot.slane %v6752_v60, %v1020_v51  ;;  %v1859_v60 = vld [vmem:[%s8927_s5 + $0xb8] sm:$0xff] }
 0x1ad   : > { %5784 = vmatpush1.bf16.msra.mxu0 %v5783_v1  ;;  %6040 = vmatpush1.bf16.msra.mxu1 %v5783_v1  ;;  %v5821_v1 = vpack.c.bf16 %v947_v63, %v945_v62  ;;  %v6111_v62 = vpack.c.bf16 %v978_v55, %v976_v54  ;;  %v6113_v63 = vpack.c.bf16 %v983_v57, %v981_v56  ;;  %v1841_v54 = vld [vmem:[%s8927_s5 + $0x28] sm:$0xff]  ;;  %v1872_v57 = vld [vmem:[%s8927_s5 + $0x120] sm:$0xff] }
 0x1ae   : > { %5786 = vmatprep.subr.bf16.mxu0 %v5785_v2  ;;  %6042 = vmatprep.subr.bf16.mxu1 %v5785_v2  ;;  %v944_v2 = vld [vmem:[#allocation3 + $0x700] sm:$0xff] }
 0x1af   : > { %v5823_v6 = vpack.c.bf16 %v946_v3, %v944_v2  ;;  %v985_v2 = vld [vmem:[#allocation5 + $0x48] sm:$0xff]  ;;  %v987_v3 = vld [vmem:[#allocation5 + $0x58] sm:$0xff] }
 0x1b0   : > { %v6117_v5 = vpack.c.bf16 %v987_v3, %v985_v2  ;;  %v1843_v2 = vld [vmem:[%s8927_s5 + $0x38] sm:$0xff] }
 0x1b1   : > { %5788 = vmatpush1.bf16.msra.mxu0 %v5787_v8  ;;  %6044 = vmatpush1.bf16.msra.mxu1 %v5787_v8  ;;  %v948_v8 = vld [vmem:[#allocation3 + $0x720] sm:$0xff] }
 0x1b2   : > { %5790 = vmatprep.subr.bf16.mxu0 %v5789_v9  ;;  %6046 = vmatprep.subr.bf16.mxu1 %v5789_v9  ;;  %v950_v9 = vld [vmem:[#allocation3 + $0x730] sm:$0xff] }
 0x1b3   : > { %v5827_v12 = vpack.c.bf16 %v950_v9, %v948_v8  ;;  %v989_v8 = vld [vmem:[#allocation5 + $0x68] sm:$0xff]  ;;  %v991_v9 = vld [vmem:[#allocation5 + $0x78] sm:$0xff] }
 0x1b4   : > { %1241 = vmatmul.mubr.f32.vlgmr.msra.gmra.mrb[0].mxu0 %v1013_v15  ;;  %1568 = vmatmul.mubr.f32.vlgmr.msra.gmra.mrb[0].mxu1 %v1340_v16  ;;  %v954_v15 = vld [vmem:[#allocation3 + $0x750] sm:$0xff]  ;;  %v957_v16 = vld [vmem:[#allocation3 + $0x768] sm:$0xff] }
 0x1b5   : > { %5792 = vmatpush1.bf16.msra.mxu0 %v5791_v17  ;;  %6048 = vmatpush1.bf16.msra.mxu1 %v5791_v17  ;;  %v959_v17 = vld [vmem:[#allocation3 + $0x778] sm:$0xff] }
 0x1b6   : > { %5794 = vmatprep.subr.bf16.mxu0 %v5793_v18  ;;  %6050 = vmatprep.subr.bf16.mxu1 %v5793_v18  ;;  %v5831_v18 = vpack.c.bf16 %v954_v15, %v952_v14  ;;  %v5833_v19 = vpack.c.bf16 %v959_v17, %v957_v16  ;;  %v990_v14 = vld [vmem:[#allocation5 + $0x70] sm:$0xff]  ;;  %v1852_v15 = vld [vmem:[%s8927_s5 + $0x80] sm:$0xff]  ;;  %v1853_v16 = vld [vmem:[%s8927_s5 + $0x88] sm:$0xff] }
 0x1b7   : > { %1311 = vmatprep.mubr.f32.mxu0 %v1025_v23  ;;  %1638 = vmatprep.mubr.f32.mxu1 %v1352_v24  ;;  %v963_v23 = vld [vmem:[#allocation3 + $0x798] sm:$0xff]  ;;  %v5835_v24 = vpack.c.bf16 %v958_v21, %v956_v20  ;;  %v1884_v17 = vld [vmem:[%s8927_s5 + $0x180] sm:$0xff]  ;;  %v1837_v21 = vld [vmem:[%s8927_s5 + $0x8] sm:$0xff] }
 0x1b8   : > { %v1836_v20 = vld [vmem:[%s8927_s5] sm:$0xff] }
 0x1b9   : > { %5796 = vmatpush1.bf16.msra.mxu0 %v5795_v26  ;;  %6052 = vmatpush1.bf16.msra.mxu1 %v5795_v26  ;;  %v5837_v26 = vpack.c.bf16 %v963_v23, %v961_v22  ;;  %v7465_v22 = vpack.c.bf16 %v1853_v16, %v1852_v15  ;;  %v1845_v15 = vld [vmem:[%s8927_s5 + $0x48] sm:$0xff] }
 0x1ba   : > { %5798 = vmatprep.subr.bf16.mxu0 %v5797_v27  ;;  %6054 = vmatprep.subr.bf16.mxu1 %v5797_v27  ;;  %v960_v27 = vld [vmem:[#allocation3 + $0x780] sm:$0xff] }
 0x1bb   : > { %v5839_v31 = vpack.c.bf16 %v962_v28, %v960_v27  ;;  %v1854_v27 = vld [vmem:[%s8927_s5 + $0x90] sm:$0xff]  ;;  %v1855_v28 = vld [vmem:[%s8927_s5 + $0x98] sm:$0xff] }
 0x1bd   : > { %5800 = vmatpush1.bf16.msra.mxu0 %v5799_v33  ;;  %6056 = vmatpush1.bf16.msra.mxu1 %v5799_v33  ;;  %v5841_v33 = vpack.c.bf16 %v967_v30, %v965_v29  ;;  %v1886_v29 = vld [vmem:[%s8927_s5 + $0x190] sm:$0xff]  ;;  %v1887_v30 = vld [vmem:[%s8927_s5 + $0x198] sm:$0xff] }
 0x1be   : > { %5802 = vmatprep.subr.bf16.mxu0 %v5801_v44  ;;  %6058 = vmatprep.subr.bf16.mxu1 %v5801_v44  ;;  %v964_v44 = vld [vmem:[#allocation3 + $0x7a0] sm:$0xff] }
 0x1bf   : > { %v5843_v36 = vpack.c.bf16 %v966_v48, %v964_v44  ;;  %v7489_v44 = vld [vmem:[%s711_s30 + $0x8] sm:$0xff]  ;;  %v5120_v48 = vld [vmem:[%s704_s26 + $0x4] sm:$0x7] }
 0x1c1   : > { %5804 = vmatpush1.bf16.msra.mxu0 %v5803_v37  ;;  %6060 = vmatpush1.bf16.msra.mxu1 %v5803_v37  ;;  %v5845_v37 = vpack.c.bf16 %v971_v35, %v969_v34  ;;  %v7491_v34 = vpack.c.bf16 %v1837_v21, %v1836_v20  ;;  %v1862_v20 = vld [vmem:[%s8927_s5 + $0xd0] sm:$0xff]  ;;  %v1863_v21 = vld [vmem:[%s8927_s5 + $0xd8] sm:$0xff] }
 0x1c2   : > { %5806 = vmatprep.subr.bf16.mxu0 %v5805_v38  ;;  %6062 = vmatprep.subr.bf16.mxu1 %v5805_v38  ;;  %v968_v38 = vld [vmem:[#allocation3 + $0x7c0] sm:$0xff] }
 0x1c3   : > { %v5847_v43 = vpack.c.bf16 %v970_v39, %v968_v38  ;;  %v7503_v38 = vpack.c.bf16 %v1855_v28, %v1854_v27  ;;  %v7505_v39 = vpack.c.bf16 %v1887_v30, %v1886_v29  ;;  %v1846_v29 = vld [vmem:[%s8927_s5 + $0x50] sm:$0xff]  ;;  %v1847_v30 = vld [vmem:[%s8927_s5 + $0x58] sm:$0xff] }
 0x1c5   : > { %5808 = vmatpush1.bf16.msra.mxu0 %v5807_v45  ;;  %6064 = vmatpush1.bf16.msra.mxu1 %v5807_v45  ;;  %v5849_v45 = vpack.c.bf16 %v975_v41, %v973_v40  ;;  %v1870_v40 = vld [vmem:[%s8927_s5 + $0x110] sm:$0xff]  ;;  %v1871_v41 = vld [vmem:[%s8927_s5 + $0x118] sm:$0xff] }
 0x1c6   : > { %5810 = vmatprep.subr.bf16.mxu0 %v5809_v46  ;;  %6066 = vmatprep.subr.bf16.mxu1 %v5809_v46  ;;  %v972_v46 = vld [vmem:[#allocation3 + $0x7e0] sm:$0xff] }
 0x1c9   : > { %5812 = vmatpush1.bf16.msra.mxu0 %v5811_v52  ;;  %6068 = vmatpush1.bf16.msra.mxu1 %v5811_v52  ;;  %v5851_v52 = vpack.c.bf16 %v974_v47, %v972_v46  ;;  %v1888_v46 = vld [vmem:[%s8927_s5 + $0x1a0] sm:$0xff]  ;;  %v1889_v47 = vld [vmem:[%s8927_s5 + $0x1a8] sm:$0xff] }
 0x1ca   : > { %5814 = vmatprep.subr.bf16.mxu0 %v5813_v53  ;;  %6070 = vmatprep.subr.bf16.mxu1 %v5813_v53  ;;  %v6109_v53 = vpack.c.bf16 %v979_v50, %v977_v49  ;;  %v7531_v50 = vcombine.high %v7489_v44, %v7489_v44  ;;  %v7551_v56 = vpack.c.bf16 %v1889_v47, %v1888_v46 }
 0x1cb   : > { %v6163_v46 = vpack.c.bf16 %v1847_v30, %v1846_v29 }
 0x1cd   : > { %5816 = vmatpush1.bf16.msra.mxu0 %v5815_v58  ;;  %6072 = vmatpush1.bf16.msra.mxu1 %v5815_v58  ;;  %v6751_v58 = vld [vmem:[%s7400_s17] sm:$0xff]  ;;  %s7053_s17 = smov 113  }
 0x1ce   : > { %5818 = vmatprep.subr.bf16.mxu0 %v5817_v59  ;;  %6074 = vmatprep.subr.bf16.mxu1 %v5817_v59  ;;  %v1021_v59 = vrot.slane %v6751_v58, %v1020_v51  ;;  %v1873_v58 = vld [vmem:[%s8927_s5 + $0x128] sm:$0xff] }
 0x1d1   : > { %5820 = vmatpush1.bf16.msra.mxu0 %v5819_v0  ;;  %6076 = vmatpush1.bf16.msra.mxu1 %v5819_v0  ;;  %v980_v0 = vld [vmem:[#allocation5 + $0x20] sm:$0xff] }
 0x1d2   : > { %5822 = vmatprep.subr.bf16.mxu0 %v5821_v1  ;;  %6078 = vmatprep.subr.bf16.mxu1 %v5821_v1  ;;  %v982_v1 = vld [vmem:[#allocation5 + $0x30] sm:$0xff] }
 0x1d3   : > { %v6115_v4 = vpack.c.bf16 %v982_v1, %v980_v0  ;;  %v7577_v0 = vpack.c.bf16 %v1873_v58, %v1872_v57  ;;  %v1842_v1 = vld [vmem:[%s8927_s5 + $0x30] sm:$0xff] }
 0x1d5   : > { %5824 = vmatpush1.bf16.msra.mxu0 %v5823_v6  ;;  %6080 = vmatpush1.bf16.msra.mxu1 %v5823_v6  ;;  %v984_v6 = vld [vmem:[#allocation5 + $0x40] sm:$0xff] }
 0x1d6   : > { %5826 = vmatprep.subr.bf16.mxu0 %v5825_v7  ;;  %6082 = vmatprep.subr.bf16.mxu1 %v5825_v7  ;;  %v986_v7 = vld [vmem:[#allocation5 + $0x50] sm:$0xff] }
 0x1d7   : > { %v6119_v11 = vpack.c.bf16 %v986_v7, %v984_v6  ;;  %v1875_v6 = vld [vmem:[%s8927_s5 + $0x138] sm:$0xff]  ;;  %v1860_v7 = vld [vmem:[%s8927_s5 + $0xc0] sm:$0xff] }
 0x1d9   : > { %5828 = vmatpush1.bf16.msra.mxu0 %v5827_v12  ;;  %6084 = vmatpush1.bf16.msra.mxu1 %v5827_v12  ;;  %v6121_v12 = vpack.c.bf16 %v991_v9, %v989_v8  ;;  %v1861_v8 = vld [vmem:[%s8927_s5 + $0xc8] sm:$0xff]  ;;  %v1892_v9 = vld [vmem:[%s8927_s5 + $0x1c0] sm:$0xff] }
 0x1da   : > { %5830 = vmatprep.subr.bf16.mxu0 %v5829_v13  ;;  %6086 = vmatprep.subr.bf16.mxu1 %v5829_v13  ;;  %v988_v13 = vld [vmem:[#allocation5 + $0x60] sm:$0xff]  ;;  %v7623_v16 = vpack.c.bf16 %v1861_v8, %v1860_v7  ;;  %v1850_v7 = vld [vmem:[%s8927_s5 + $0x70] sm:$0xff] }
 0x1dd   : > { %5832 = vmatpush1.bf16.msra.mxu0 %v5831_v18  ;;  %6088 = vmatpush1.bf16.msra.mxu1 %v5831_v18  ;;  %v1885_v18 = vld [vmem:[%s8927_s5 + $0x188] sm:$0xff] }
 0x1de   : > { %5834 = vmatprep.subr.bf16.mxu0 %v5833_v19  ;;  %6090 = vmatprep.subr.bf16.mxu1 %v5833_v19  ;;  %v6123_v19 = vpack.c.bf16 %v990_v14, %v988_v13  ;;  %v7467_v23 = vpack.c.bf16 %v1885_v18, %v1884_v17  ;;  %v1844_v14 = vld [vmem:[%s8927_s5 + $0x40] sm:$0xff] }
 0x1df   : > { %v1876_v18 = vld [vmem:[%s8927_s5 + $0x140] sm:$0xff]  ;;  %v7647_v27 = vpack.c.bf16 %v1845_v15, %v1844_v14  ;;  %v1882_v14 = vld [vmem:[%s8927_s5 + $0x170] sm:$0xff]  ;;  %v1883_v15 = vld [vmem:[%s8927_s5 + $0x178] sm:$0xff] }
 0x1e1   : > { %5836 = vmatpush1.bf16.msra.mxu0 %v5835_v24  ;;  %6092 = vmatpush1.bf16.msra.mxu1 %v5835_v24  ;;  %v1868_v24 = vld [vmem:[%s8927_s5 + $0x100] sm:$0xff] }
 0x1e2   : > { %5838 = vmatprep.subr.bf16.mxu0 %v5837_v26  ;;  %6094 = vmatprep.subr.bf16.mxu1 %v5837_v26  ;;  %v1869_v26 = vld [vmem:[%s8927_s5 + $0x108] sm:$0xff] }
 0x1e3   : > { %v7493_v35 = vpack.c.bf16 %v1869_v26, %v1868_v24  ;;  %v1894_v24 = vld [vmem:[%s8927_s5 + $0x1d0] sm:$0xff]  ;;  %v1895_v26 = vld [vmem:[%s8927_s5 + $0x1d8] sm:$0xff] }
 0x1e5   : > { %5840 = vmatpush1.bf16.msra.mxu0 %v5839_v31  ;;  %6096 = vmatpush1.bf16.msra.mxu1 %v5839_v31  ;;  %v1645_v31 = vld [vmem:[%s704_s26] sm:$0x7] }
 0x1e6   : > { %5842 = vmatprep.subr.bf16.mxu0 %v5841_v33  ;;  %6098 = vmatprep.subr.bf16.mxu1 %v5841_v33  ;;  %v7487_v33 = vld [vmem:[%s711_s30] sm:$0xff] }
 0x1e7   : > { %v7527_v49 = vcombine.high %v7487_v33, %v7487_v33 }
 0x1e9   : > { %5844 = vmatpush1.bf16.msra.mxu0 %v5843_v36  ;;  %6100 = vmatpush1.bf16.msra.mxu1 %v5843_v36  ;;  %v1838_v36 = vld [vmem:[%s8927_s5 + $0x10] sm:$0xff] }
 0x1ea   : > { %5846 = vmatprep.subr.bf16.mxu0 %v5845_v37  ;;  %6102 = vmatprep.subr.bf16.mxu1 %v5845_v37  ;;  %v1839_v37 = vld [vmem:[%s8927_s5 + $0x18] sm:$0xff] }
 0x1eb   : > { %v7537_v51 = vpack.c.bf16 %v1839_v37, %v1838_v36  ;;  %v1878_v36 = vld [vmem:[%s8927_s5 + $0x150] sm:$0xff]  ;;  %v1879_v37 = vld [vmem:[%s8927_s5 + $0x158] sm:$0xff] }
 0x1ec   : > { %v6195_v47 = vpack.c.bf16 %v1879_v37, %v1878_v36 }
 0x1ed   : > { %5848 = vmatpush1.bf16.msra.mxu0 %v5847_v43  ;;  %6104 = vmatpush1.bf16.msra.mxu1 %v5847_v43  ;;  %v1856_v43 = vld [vmem:[%s8927_s5 + $0xa0] sm:$0xff] }
 0x1ee   : > { %5850 = vmatprep.subr.bf16.mxu0 %v5849_v45  ;;  %6106 = vmatprep.subr.bf16.mxu1 %v5849_v45  ;;  %v1857_v45 = vld [vmem:[%s8927_s5 + $0xa8] sm:$0xff] }
 0x1ef   : > { %v7549_v55 = vpack.c.bf16 %v1857_v45, %v1856_v43  ;;  %v1896_v43 = vld [vmem:[%s8927_s5 + $0x1e0] sm:$0xff]  ;;  %v1897_v45 = vld [vmem:[%s8927_s5 + $0x1e8] sm:$0xff] }
 0x1f0   : > { %v6197_v58 = vpack.c.bf16 %v1897_v45, %v1896_v43 }
 0x1f1   : > { %5852 = vmatpush1.bf16.msra.mxu0 %v5851_v52  ;;  %6108 = vmatpush1.bf16.msra.mxu1 %v5851_v52  ;;  %v7539_v52 = vpack.c.bf16 %v1871_v41, %v1870_v40  ;;  %v1864_v40 = vld [vmem:[%s8927_s5 + $0xe0] sm:$0xff]  ;;  %v1865_v41 = vld [vmem:[%s8927_s5 + $0xe8] sm:$0xff] }
 0x1f2   : > { %6110 = vmatprep.subr.bf16.mxu0 %v6109_v53  ;;  %6126 = vmatprep.subr.bf16.mxu1 %v6109_v53  ;;  %v1840_v53 = vld [vmem:[%s8927_s5 + $0x20] sm:$0xff]  ;;  %v6165_v57 = vpack.c.bf16 %v1865_v41, %v1864_v40 }
 0x1f4   : > { %1312 = vmatmul.mubr.f32.vlgmr.msra.gmra.mrb[0].mxu0 %v1021_v59  ;;  %1639 = vmatmul.mubr.f32.vlgmr.msra.gmra.mrb[0].mxu1 %v1348_v61  ;;  %v1858_v59 = vld [vmem:[%s8927_s5 + $0xb0] sm:$0xff] }
 0x1f5   : > { %6112 = vmatpush1.bf16.msra.mxu0 %v6111_v62  ;;  %6128 = vmatpush1.bf16.msra.mxu1 %v6111_v62  ;;  %v1890_v61 = vld [vmem:[%s8927_s5 + $0x1b0] sm:$0xff]  ;;  %v1891_v62 = vld [vmem:[%s8927_s5 + $0x1b8] sm:$0xff]  ;;  %v7587_v3 = vpack.c.bf16 %v1859_v60, %v1858_v59  ;;  %v1880_v59 = vld [vmem:[%s8927_s5 + $0x160] sm:$0xff] }
 0x1f6   : > { %6114 = vmatprep.subr.bf16.mxu0 %v6113_v63  ;;  %6130 = vmatprep.subr.bf16.mxu1 %v6113_v63  ;;  %v7575_v63 = vpack.c.bf16 %v1841_v54, %v1840_v53  ;;  %v1848_v53 = vld [vmem:[%s8927_s5 + $0x60] sm:$0xff]  ;;  %v1849_v54 = vld [vmem:[%s8927_s5 + $0x68] sm:$0xff] }
 0x1f7   : > { %1714 = vmatprep.mubr.f32.mxu0 %v7046_v10  ;;  %1790 = vmatprep.mubr.f32.mxu1 %v7046_v10  ;;  %v1881_v60 = vld [vmem:[%s8927_s5 + $0x168] sm:$0xff] }
 0x1f9   : > { %6116 = vmatpush1.bf16.msra.mxu0 %v6115_v4  ;;  %6132 = vmatpush1.bf16.msra.mxu1 %v6115_v4  ;;  %v7589_v4 = vpack.c.bf16 %v1891_v62, %v1890_v61  ;;  %v1866_v61 = vld [vmem:[%s8927_s5 + $0xf0] sm:$0xff]  ;;  %v1867_v62 = vld [vmem:[%s8927_s5 + $0xf8] sm:$0xff] }
 0x1fa   : > { %6118 = vmatprep.subr.bf16.mxu0 %v6117_v5  ;;  %6134 = vmatprep.subr.bf16.mxu1 %v6117_v5  ;;  %v1874_v5 = vld [vmem:[%s8927_s5 + $0x130] sm:$0xff]  ;;  %v6169_v8 = vpack.c.bf16 %v1867_v62, %v1866_v61 }
 0x1fb   : > { %v7613_v13 = vpack.c.bf16 %v1875_v6, %v1874_v5  ;;  %v6167_v5 = vpack.c.bf16 %v1849_v54, %v1848_v53  ;;  %v6199_v6 = vpack.c.bf16 %v1881_v60, %v1880_v59 }
 0x1fd   : > { %6120 = vmatpush1.bf16.msra.mxu0 %v6119_v11  ;;  %6136 = vmatpush1.bf16.msra.mxu1 %v6119_v11  ;;  %v1893_v11 = vld [vmem:[%s8927_s5 + $0x1c8] sm:$0xff] }
 0x1fe   : > { %6122 = vmatprep.subr.bf16.mxu0 %v6121_v12  ;;  %6138 = vmatprep.subr.bf16.mxu1 %v6121_v12  ;;  %v7611_v12 = vpack.c.bf16 %v1843_v2, %v1842_v1  ;;  %v7625_v17 = vpack.c.bf16 %v1893_v11, %v1892_v9  ;;  %v1898_v1 = vld [vmem:[%s8927_s5 + $0x1f0] sm:$0xff]  ;;  %v1899_v2 = vld [vmem:[%s8927_s5 + $0x1f8] sm:$0xff] }
 0x1ff   : > { %v6201_v9 = vpack.c.bf16 %v1899_v2, %v1898_v1  ;;  %v1851_v11 = vld [vmem:[%s8927_s5 + $0x78] sm:$0xff] }
 0x201   : > { %6124 = vmatpush1.bf16.msra.mxu0 %v6123_v19  ;;  %6140 = vmatpush1.bf16.msra.mxu1 %v6123_v19  ;;  %v1877_v19 = vld [vmem:[%s8927_s5 + $0x148] sm:$0xff] }
 0x202   : > { %6142 = vmatprep.subr.bf16.mxu0 %v7465_v22  ;;  %6174 = vmatprep.subr.bf16.mxu1 %v7467_v23  ;;  %v7649_v28 = vpack.c.bf16 %v1877_v19, %v1876_v18  ;;  %v6171_v18 = vpack.c.bf16 %v1851_v11, %v1850_v7  ;;  %v6203_v19 = vpack.c.bf16 %v1883_v15, %v1882_v14 }
 0x204   : > { %5119 = vmatmul.mubr.msk.f32.vlgmr.msra.gmra.mrb[2].mxu0 %vm1646_vm0, %v1645_v31  ;;  %5121 = vmatmul.mubr.msk.f32.vlgmr.msra.gmra.mrb[2].mxu1 %vm1646_vm0, %v5120_v48  ;;  %v7659_v31 = vpack.c.bf16 %v1863_v21, %v1862_v20  ;;  %v7661_v48 = vpack.c.bf16 %v1895_v26, %v1894_v24  ;;  %v2049_v20 = vmul.f32 %v7527_v49, %v7527_v49  ;;  %vm8005_vm0 = vmpackc.low %vm1826_vm2, %vm7057_vm15 }
 0x205   : > { %6144 = vmatpush3.bf16.msra.mxu0 %v7491_v34  ;;  %6176 = vmatpush3.bf16.msra.mxu1 %v7493_v35  ;;  %v2051_v21 = vmul.f32 %v7531_v50, %v7531_v50 }
 0x206   : > { %6146 = vmatprep.subr.bf16.mxu0 %v7503_v38  ;;  %6178 = vmatprep.subr.bf16.mxu1 %v7505_v39 }
 0x207   : > { %1964 = vmatprep.mubr.f32.mxu0 %v7527_v49  ;;  %2034 = vmatprep.mubr.f32.mxu1 %v7531_v50 }
 0x209   : > { %6148 = vmatpush3.bf16.msra.mxu0 %v7537_v51  ;;  %6180 = vmatpush3.bf16.msra.mxu1 %v7539_v52 }
 0x20a   : > { %6150 = vmatprep.subr.bf16.mxu0 %v7549_v55  ;;  %6182 = vmatprep.subr.bf16.mxu1 %v7551_v56 }
 0x20d   : > { %6152 = vmatpush3.bf16.msra.mxu0 %v7575_v63  ;;  %6184 = vmatpush3.bf16.msra.mxu1 %v7577_v0 }
 0x20e   : > { %6154 = vmatprep.subr.bf16.mxu0 %v7587_v3  ;;  %6186 = vmatprep.subr.bf16.mxu1 %v7589_v4 }
 0x211   : > { %6156 = vmatpush3.bf16.msra.mxu0 %v7611_v12  ;;  %6188 = vmatpush3.bf16.msra.mxu1 %v7613_v13 }
 0x212   : > { %6158 = vmatprep.subr.bf16.mxu0 %v7623_v16  ;;  %6190 = vmatprep.subr.bf16.mxu1 %v7625_v17 }
 0x215   : > { %6160 = vmatpush3.bf16.msra.mxu0 %v7647_v27  ;;  %6192 = vmatpush3.bf16.msra.mxu1 %v7649_v28 }
 0x216   : > { %6162 = vmatprep.subr.bf16.mxu0 %v7659_v31  ;;  %6194 = vmatprep.subr.bf16.mxu1 %v7661_v48 }
 0x219   : > { %6164 = vmatpush3.bf16.msra.mxu0 %v6163_v46  ;;  %6196 = vmatpush3.bf16.msra.mxu1 %v6195_v47 }
 0x21a   : > { %6166 = vmatprep.subr.bf16.mxu0 %v6165_v57  ;;  %6198 = vmatprep.subr.bf16.mxu1 %v6197_v58 }
 0x21d   : > { %6168 = vmatpush3.bf16.msra.mxu0 %v6167_v5  ;;  %6200 = vmatpush3.bf16.msra.mxu1 %v6199_v6 }
 0x21e   : > { %6170 = vmatprep.subr.bf16.mxu0 %v6169_v8  ;;  %6202 = vmatprep.subr.bf16.mxu1 %v6201_v9 }
 0x221   : > { %6172 = vmatpush3.bf16.msra.mxu0 %v6171_v18  ;;  %6204 = vmatpush3.bf16.msra.mxu1 %v6203_v19 }
 0x222   : > { %6206 = vmatprep.subr.bf16.mxu0 %v7465_v22  ;;  %6238 = vmatprep.subr.bf16.mxu1 %v7467_v23  ;;  %v2048_v22 = vmul.f32 %v7487_v33, %v7487_v33  ;;  %v2050_v23 = vmul.f32 %v7489_v44, %v7489_v44 }
 0x224   : > { %1965 = vmatmul.mubr.f32.vlgmr.msra.gmra.mrb[4].mxu0 %v7487_v33  ;;  %2035 = vmatmul.mubr.f32.vlgmr.msra.gmra.mrb[4].mxu1 %v7489_v44 }
 0x225   : > { %6208 = vmatpush3.bf16.msra.mxu0 %v7491_v34  ;;  %6240 = vmatpush3.bf16.msra.mxu1 %v7493_v35  ;;  %v7047_v34 = vmov 1983009808  }
 0x226   : > { %6210 = vmatprep.subr.bf16.mxu0 %v7503_v38  ;;  %6242 = vmatprep.subr.bf16.mxu1 %v7505_v39  ;;  %v2209_v35 = vunpack.c.l.s4 %v7047_v34  ;;  %v2205_v39 = vld [vmem:[#allocation7] sm:$0xff] }
 0x227   : > { %2116 = vmatprep.mubr.f32.mxu0 %v2049_v20  ;;  %2186 = vmatprep.mubr.f32.mxu1 %v2051_v21 }
 0x228   : > { %v2210_v38 = vunpack.c.0.s8 %v2209_v35 }
 0x229   : > { %6212 = vmatpush3.bf16.msra.mxu0 %v7537_v51  ;;  %6244 = vmatpush3.bf16.msra.mxu1 %v7539_v52  ;;  %v2207_v52 = vcombine.high %v2205_v39, %v2205_v39 }
 0x22a   : > { %6214 = vmatprep.subr.bf16.mxu0 %v7549_v55  ;;  %6246 = vmatprep.subr.bf16.mxu1 %v7551_v56  ;;  %v7756_v51 = vsub.s32 %v2210_v38, %v7392_v32 }
 0x22c   : > { %v2214_v55 = vrot.slane %v2205_v39, %v7756_v51  ;;  %v2221_v56 = vrot.slane %v2207_v52, %v7756_v51 }
 0x22d   : > { %6216 = vmatpush3.bf16.msra.mxu0 %v7575_v63  ;;  %6248 = vmatpush3.bf16.msra.mxu1 %v7577_v0 }
 0x22e   : > { %6218 = vmatprep.subr.bf16.mxu0 %v7587_v3  ;;  %6250 = vmatprep.subr.bf16.mxu1 %v7589_v4  ;;  %v2222_v63 = vcombine.high %v2214_v55, %v2214_v55  ;;  %v2223_v0 = vcombine.high %v2221_v56, %v2221_v56 }
 0x231   : > { %6220 = vmatpush3.bf16.msra.mxu0 %v7611_v12  ;;  %6252 = vmatpush3.bf16.msra.mxu1 %v7613_v13 }
 0x232   : > { %6222 = vmatprep.subr.bf16.mxu0 %v7623_v16  ;;  %6254 = vmatprep.subr.bf16.mxu1 %v7625_v17 }
 0x235   : > { %6224 = vmatpush3.bf16.msra.mxu0 %v7647_v27  ;;  %6256 = vmatpush3.bf16.msra.mxu1 %v7649_v28 }
 0x236   : > { %6226 = vmatprep.subr.bf16.mxu0 %v7659_v31  ;;  %6258 = vmatprep.subr.bf16.mxu1 %v7661_v48 }
 0x239   : > { %6228 = vmatpush3.bf16.msra.mxu0 %v6163_v46  ;;  %6260 = vmatpush3.bf16.msra.mxu1 %v6195_v47 }
 0x23a   : > { %6230 = vmatprep.subr.bf16.mxu0 %v6165_v57  ;;  %6262 = vmatprep.subr.bf16.mxu1 %v6197_v58 }
 0x23d   : > { %6232 = vmatpush3.bf16.msra.mxu0 %v6167_v5  ;;  %6264 = vmatpush3.bf16.msra.mxu1 %v6199_v6 }
 0x23e   : > { %6234 = vmatprep.subr.bf16.mxu0 %v6169_v8  ;;  %6266 = vmatprep.subr.bf16.mxu1 %v6201_v9 }
 0x241   : > { %6236 = vmatpush3.bf16.msra.mxu0 %v6171_v18  ;;  %6268 = vmatpush3.bf16.msra.mxu1 %v6203_v19 }
 0x242   : > { %5123 = vmatprep.subr.msk.mxu0 %vm2228_vm1, %v2222_v63  ;;  %5126 = vmatprep.subr.msk.mxu1 %vm2228_vm1, %v2223_v0 }
 0x244   : > { %2117 = vmatmul.mubr.f32.vlgmr.msra.gmra.mrb[6].mxu0 %v2048_v22  ;;  %2187 = vmatmul.mubr.f32.vlgmr.msra.gmra.mrb[6].mxu1 %v2050_v23 }
 0x245   : > { %2301 = vmatprep.mubr.f32.mxu0 %v7046_v10  ;;  %2372 = vmatprep.mubr.f32.mxu1 %v7046_v10 }
 0x246   : > { %5124 = vmatpush1.msk.msra.mxu0 %vm2228_vm1, %v2214_v55  ;;  %5127 = vmatpush1.msk.msra.mxu1 %vm2228_vm1, %v2221_v56 }
 0x247   : > { %5129 = vmatprep.subr.msk.mxu0 %vm2228_vm1, %v2222_v63  ;;  %5132 = vmatprep.subr.msk.mxu1 %vm2228_vm1, %v2223_v0  ;;  %v1818_v63 = vrot.slane %v7487_v33, 4  ;;  %v1820_v0 = vrot.slane %v7489_v44, 4 }
 0x2c7   : > { %v1313_v32 = vpop.f32.mrb[0].mxu0  ;;  %v1640_v3 = vpop.f32.mrb[0].mxu1 }
 0x2c8   : > { %v1315_v4 = vpop.f32.mrb[1].mxu0  ;;  %v1642_v12 = vpop.f32.mrb[1].mxu1 }
 0x2d7   : > { %v1716_v13 = vpop.f32.mrb[2].mxu0  ;;  %v1792_v16 = vpop.f32.mrb[2].mxu1 }
 0x2d8   : > { %v1810_v17 = vrot.slane %v1716_v13, 7  ;;  %v1812_v24 = vrot.slane %v1792_v16, 7  ;;  %v1718_v26 = vpop.f32.mrb[3].mxu0  ;;  %v1794_v27 = vpop.f32.mrb[3].mxu1  ;;  %v2524_v16 = vld [vmem:[#allocation10] sm:$0xff] }
 0x2d9   : > { %v1811_v28 = vrot.slane %v1718_v26, 7  ;;  %v1813_v29 = vrot.slane %v1794_v27, 7 }
 0x2da   : > { %v1827_v30 = vsel %vm1826_vm2, %v1313_v32, %v1810_v17  ;;  %v1829_v31 = vsel %vm1826_vm2, %v1640_v3, %v1812_v24  ;;  %v2526_v24 = vld [vmem:[#allocation10 + $0x10] sm:$0xff] }
 0x2db   : > { %v1828_v48 = vsel %vm1826_vm2, %v1315_v4, %v1811_v28  ;;  %v1830_v36 = vsel %vm1826_vm2, %v1642_v12, %v1813_v29  ;;  %v1832_v32 = vsel %vm1831_vm5, %v1827_v30, %v1818_v63  ;;  %v1834_v3 = vsel %vm1831_vm5, %v1829_v31, %v1820_v0  ;;  %v2548_v30 = vld [vmem:[#allocation11] sm:$0xff]  ;;  %v2550_v31 = vld [vmem:[#allocation11 + $0x10] sm:$0xff] }
 0x2dc   : > { %v1833_v4 = vsel %vm1831_vm5, %v1828_v48, %v7527_v49  ;;  %v1835_v12 = vsel %vm1831_vm5, %v1830_v36, %v7531_v50  ;;  %vm2858_vm2 = vcmask 596992  }
 0x2f7   : > { %v5209_v37 = vpop.f32.mrb[4].mxu0  ;;  %v5244_v40 = vpop.f32.mrb[4].mxu1 }
 0x2f8   : > { %v5210_v41 = vpop.f32.mrb[5].mxu0  ;;  %v5245_v43 = vpop.f32.mrb[5].mxu1 }
 0x2f9   : > { %v5211_v45 = vadd.f32 %v5210_v41, %v5209_v37  ;;  %v5246_v46 = vadd.f32 %v5245_v43, %v5244_v40  ;;  %v2525_v37 = vld [vmem:[#allocation10 + $0x8] sm:$0xff]  ;;  %v2527_v40 = vld [vmem:[#allocation10 + $0x18] sm:$0xff] }
 0x2fb   : > { %v2037_v47 = vadd.f32 %v5246_v46, %v5211_v45 }
 0x2fd   : > { %v2041_v53 = vsel %vm2040_vm3, %v2037_v47, 0.0  ;;  %v2549_v47 = vld [vmem:[#allocation11 + $0x8] sm:$0xff] }
 0x2fe   : > { %v2042_v54 = vrot.slane %v2041_v53, 4 }
 0x300   : > { %v2043_v57 = vadd.f32 %v2042_v54, %v2041_v53  ;;  %v2551_v53 = vld [vmem:[#allocation11 + $0x18] sm:$0xff]  ;;  %v2556_v54 = vld [vmem:[#allocation13] sm:$0xff] }
 0x302   : > { %v2044_v58 = vrot.slane %v2043_v57, 2 }
 0x304   : > { %v2045_v59 = vadd.f32 %v2044_v58, %v2043_v57  ;;  %v2558_v57 = vld [vmem:[#allocation13 + $0x10] sm:$0xff] }
 0x306   : > { %v2046_v60 = vrot.slane %v2045_v59, 1 }
 0x308   : > { %v2047_v61 = vadd.f32 %v2046_v60, %v2045_v59 }
 0x30a   : > { %v2199_v62 = vmul.f32 0.0009765625, %v2047_v61 }
 0x30c   : > { %5125 = vmatmul.mubr.msk.f32.vlgmr.msra.gmra.mrb[8].mxu0 %vm2224_vm4, %v2199_v62  ;;  %5128 = vmatmul.mubr.msk.f32.vlgmr.msra.gmra.mrb[8].mxu1 %vm2224_vm4, %v2199_v62  ;;  %v2201_v23 = vmul.f32 %v2199_v62, %v2199_v62 }
 0x30d   : > { %5130 = vmatpush1.msk.msra.mxu0 %vm2228_vm1, %v2214_v55  ;;  %5133 = vmatpush1.msk.msra.mxu1 %vm2228_vm1, %v2221_v56 }
 0x30e   : > { %2446 = vmatprep.mubr.f32.mxu0 %v7046_v10  ;;  %2517 = vmatprep.mubr.f32.mxu1 %v7046_v10 }
 0x317   : > { %v5279_v1 = vpop.f32.mrb[6].mxu0  ;;  %v5314_v2 = vpop.f32.mrb[6].mxu1 }
 0x318   : > { %v5280_v5 = vpop.f32.mrb[7].mxu0  ;;  %v5315_v6 = vpop.f32.mrb[7].mxu1 }
 0x319   : > { %v5281_v7 = vadd.f32 %v5280_v5, %v5279_v1  ;;  %v5316_v8 = vadd.f32 %v5315_v6, %v5314_v2  ;;  %v2557_v6 = vld [vmem:[#allocation13 + $0x8] sm:$0xff] }
 0x31b   : > { %v2189_v9 = vadd.f32 %v5316_v8, %v5281_v7  ;;  %v2559_v7 = vld [vmem:[#allocation13 + $0x18] sm:$0xff] }
 0x31d   : > { %v2192_v11 = vsel %vm2040_vm3, %v2189_v9, 0.0 }
 0x31e   : > { %v2193_v14 = vrot.slane %v2192_v11, 4 }
 0x320   : > { %v2194_v15 = vadd.f32 %v2193_v14, %v2192_v11 }
 0x322   : > { %v2195_v18 = vrot.slane %v2194_v15, 2 }
 0x324   : > { %v2196_v19 = vadd.f32 %v2195_v18, %v2194_v15 }
 0x326   : > { %v2197_v20 = vrot.slane %v2196_v19, 1 }
 0x328   : > { %v2198_v21 = vadd.f32 %v2197_v20, %v2196_v19 }
 0x32a   : > { %v2200_v22 = vmul.f32 0.0009765625, %v2198_v21 }
 0x32c   : > { %v2202_v34 = vsub.f32 %v2200_v22, %v2201_v23 }
 0x32e   : > { %v2203_v35 = vadd.f32 1e-05, %v2202_v34 }
 0x330   : > { %6745 = vrsqrt.f32 %v2203_v35 }
 0x33a   : > { %v6746_v38 = vpop.eup %6745 }
 0x33b   : > { %5131 = vmatmul.mubr.msk.f32.vlgmr.msra.gmra.mrb[10].mxu0 %vm2224_vm4, %v6746_v38  ;;  %5134 = vmatmul.mubr.msk.f32.vlgmr.msra.gmra.mrb[10].mxu1 %vm2224_vm4, %v6746_v38 }
 0x33c   : > { %2938 = vmatprep.mubr.f32.mxu0 %v7046_v10  ;;  %3009 = vmatprep.mubr.f32.mxu1 %v7046_v10 }
 0x3df   : > { %v2303_v39 = vpop.f32.mrb[8].mxu0  ;;  %v2374_v52 = vpop.f32.mrb[8].mxu1 }
 0x3e0   : > { %v2305_v55 = vpop.f32.mrb[9].mxu0  ;;  %v2376_v56 = vpop.f32.mrb[9].mxu1 }
 0x40e   : > { %v2448_v13 = vpop.f32.mrb[10].mxu0  ;;  %v2519_v17 = vpop.f32.mrb[10].mxu1 }
 0x40f   : > { %v2531_v26 = vrot.slane %v2448_v13, %v7412_v42  ;;  %v2560_v27 = vmul.f32 %v2448_v13, %v2303_v39  ;;  %v2539_v28 = vrot.slane %v2519_v17, %v7412_v42  ;;  %v2562_v29 = vmul.f32 %v2519_v17, %v2374_v52  ;;  %v2450_v33 = vpop.f32.mrb[11].mxu0  ;;  %v2521_v44 = vpop.f32.mrb[11].mxu1 }
 0x410   : > { %v2535_v49 = vrot.slane %v2450_v33, %v7412_v42  ;;  %v2561_v48 = vmul.f32 %v2450_v33, %v2305_v55  ;;  %v2543_v50 = vrot.slane %v2521_v44, %v7412_v42  ;;  %v2563_v36 = vmul.f32 %v2521_v44, %v2376_v56 }
 0x411   : > { %v2544_v41 = vmul.f32 %v2531_v26, %v2524_v16  ;;  %v2567_v43 = vrot.slane %v2560_v27, %v7412_v42  ;;  %v2546_v45 = vmul.f32 %v2539_v28, %v2526_v24  ;;  %v2575_v46 = vrot.slane %v2562_v29, %v7412_v42  ;;  %v2623_v26 = vld [vmem:[#allocation8 + $0x18] sm:$0xff] }
 0x412   : > { %v2545_v58 = vmul.f32 %v2535_v49, %v2525_v37  ;;  %v2571_v59 = vrot.slane %v2561_v48, %v7412_v42  ;;  %v2547_v60 = vmul.f32 %v2543_v50, %v2527_v40  ;;  %v2579_v61 = vrot.slane %v2563_v36, %v7412_v42  ;;  %v2648_v28 = vld [vmem:[#allocation8 + $0x38] sm:$0xff] }
 0x413   : > { %v2552_v62 = vadd.f32 %v2548_v30, %v2544_v41  ;;  %v2580_v1 = vmul.f32 %v2567_v43, %v2524_v16  ;;  %v2554_v2 = vadd.f32 %v2550_v31, %v2546_v45  ;;  %v2582_v5 = vmul.f32 %v2575_v46, %v2526_v24 }
 0x414   : > { %v2553_v8 = vadd.f32 %v2549_v47, %v2545_v58  ;;  %v2581_v9 = vmul.f32 %v2571_v59, %v2525_v37  ;;  %v2555_v11 = vadd.f32 %v2551_v53, %v2547_v60  ;;  %v2583_v14 = vmul.f32 %v2579_v61, %v2527_v40  ;;  %v2646_v58 = vld [vmem:[#allocation8 + $0x28] sm:$0xff]  ;;  %v2647_v60 = vld [vmem:[#allocation8 + $0x30] sm:$0xff] }
 0x415   : > { %v2584_v15 = vsub.f32 %v2556_v54, %v2580_v1  ;;  %v2588_v18 = vmul.f32 %v2552_v62, %v1832_v32  ;;  %v2586_v19 = vsub.f32 %v2558_v57, %v2582_v5  ;;  %v2590_v20 = vmul.f32 %v2554_v2, %v1834_v3  ;;  %v2620_v54 = vld [vmem:[#allocation8] sm:$0xff] }
 0x416   : > { %v2585_v21 = vsub.f32 %v2557_v6, %v2581_v9  ;;  %v2589_v22 = vmul.f32 %v2553_v8, %v1833_v4  ;;  %v2587_v23 = vsub.f32 %v2559_v7, %v2583_v14  ;;  %v2591_v34 = vmul.f32 %v2555_v11, %v1835_v12  ;;  %v2645_v62 = vld [vmem:[#allocation8 + $0x20] sm:$0xff]  ;;  %v2671_v6 = vld [vmem:[#allocation8 + $0x48] sm:$0xff]  ;;  %v2698_v11 = vld [vmem:[#allocation8 + $0x78] sm:$0xff] }
 0x417   : > { %v7794_v35 = vadd.f32 %v2588_v18, %v2584_v15  ;;  %v7796_v38 = vadd.f32 %v2590_v20, %v2586_v19  ;;  %v7054_v55 = vmov 1.0   ;;  %v7880_v12 = vand.u32 127, %v994_v25  ;;  %v2696_v20 = vld [vmem:[#allocation8 + $0x68] sm:$0xff] }
 0x418   : > { %v7798_v39 = vadd.f32 %v2589_v22, %v2585_v21  ;;  %v7800_v52 = vadd.f32 %v2591_v34, %v2587_v23  ;;  %2816 = vst.msk [vmem:[#allocation2 + $0x120] ss:$8 sm:$0xf] %vm2813_vm6, %v7054_v55  ;;  %v7920_v22 = vld [vmem:[#allocation8 + $0x8] sm:$0xff]  ;;  %v7922_v23 = vld [vmem:[#allocation8 + $0x10] sm:$0xff] }
 0x419   : > { %2609 = vrot.lane.b32.xlu1 %v7796_v38, %s7048_s25  ;;  %2605 = vrot.lane.b32.xlu0 %v7794_v35, %s7048_s25  ;;  %vm2615_vm7 = vcmp.lt.s32.totalorder %v7880_v12, 17  ;;  %vm2640_vm8 = vcmp.lt.s32.totalorder %v7880_v12, 16  ;;  %vm2665_vm9 = vcmp.lt.s32.totalorder %v7880_v12, 15  ;;  %vm2690_vm10 = vcmp.lt.s32.totalorder %v7880_v12, 1 }
 0x41a   : > { %vm2719_vm11 = vcmp.lt.s32.totalorder %v7880_v12, 127  ;;  %vm2744_vm12 = vcmp.lt.s32.totalorder %v7880_v12, 113  ;;  %vm2769_vm13 = vcmp.lt.s32.totalorder %v7880_v12, 112  ;;  %vm2794_vm14 = vcmp.lt.s32.totalorder %v7880_v12, 111  ;;  %v4178_v12 = vld [vmem:[%s8927_s5 + $0x8] sm:$0xff] }
 0x41d   : > { %2611 = vrot.lane.b32.xlu1 %v7800_v52, %s7048_s25  ;;  %2632 = vrot.lane.b32.xlu0 %v7794_v35, %s7049_s14 }
 0x41f   : > { %v7855_v56 = vld [vmem:[#allocation2 + $0x120] sm:$0x1]  ;;  %v7857_v63 = vld [vmem:[#allocation2 + $0x128] sm:$0x1]  ;;  %v7859_v0 = vld [vmem:[#allocation2 + $0x138] sm:$0x1] }
 0x420   : > { %v7861_v32 = vld [vmem:[#allocation2 + $0x130] sm:$0x1] }
 0x421   : > { %2636 = vrot.lane.b32.xlu0 %v7796_v38, %s7049_s14  ;;  %2634 = vrot.lane.b32.xlu1 %v7798_v39, %s7049_s14  ;;  %3966 = vst.msk [vmem:[#allocation2 + $0x120] ss:$8 sm:$0xf] %vm2813_vm6, %v7054_v55  ;;  %v2673_v55 = vld [vmem:[#allocation8 + $0x58] sm:$0xff] }
 0x425   : > { %2657 = vrot.lane.b32.xlu0 %v7794_v35, %s7050_s0  ;;  %2638 = vrot.lane.b32.xlu1 %v7800_v52, %s7049_s14 }
 0x429   : > { %2661 = vrot.lane.b32.xlu0 %v7796_v38, %s7050_s0  ;;  %2659 = vrot.lane.b32.xlu1 %v7798_v39, %s7050_s0 }
 0x42d   : > { %2682 = vrot.lane.b32.xlu0 %v7794_v35, %s7051_s15  ;;  %2663 = vrot.lane.b32.xlu1 %v7800_v52, %s7050_s0 }
 0x431   : > { %2686 = vrot.lane.b32.xlu0 %v7796_v38, %s7051_s15  ;;  %2684 = vrot.lane.b32.xlu1 %v7798_v39, %s7051_s15 }
 0x435   : > { %2711 = vrot.lane.b32.xlu0 %v7794_v35, %s7052_s1  ;;  %2688 = vrot.lane.b32.xlu1 %v7800_v52, %s7051_s15 }
 0x439   : > { %2715 = vrot.lane.b32.xlu0 %v7796_v38, %s7052_s1  ;;  %2713 = vrot.lane.b32.xlu1 %v7798_v39, %s7052_s1 }
 0x43d   : > { %2736 = vrot.lane.b32.xlu0 %v7794_v35, %s7053_s17  ;;  %2717 = vrot.lane.b32.xlu1 %v7800_v52, %s7052_s1 }
 0x441   : > { %2740 = vrot.lane.b32.xlu0 %v7796_v38, %s7053_s17  ;;  %2738 = vrot.lane.b32.xlu1 %v7798_v39, %s7053_s17 }
 0x445   : > { %2742 = vrot.lane.b32.xlu1 %v7800_v52, %s7053_s17  ;;  %2607 = vrot.lane.b32.xlu0 %v7798_v39, %s7048_s25 }
 0x449   : > { %2763 = vrot.lane.b32.xlu1 %v7798_v39, %s8950_s16  ;;  %2761 = vrot.lane.b32.xlu0 %v7794_v35, %s8950_s16 }
 0x44d   : > { %2767 = vrot.lane.b32.xlu1 %v7800_v52, %s8950_s16  ;;  %2765 = vrot.lane.b32.xlu0 %v7796_v38, %s8950_s16 }
 0x451   : > { %2788 = vrot.lane.b32.xlu1 %v7798_v39, %s8948_s28  ;;  %2786 = vrot.lane.b32.xlu0 %v7794_v35, %s8948_s28 }
 0x455   : > { %2792 = vrot.lane.b32.xlu1 %v7800_v52, %s8948_s28  ;;  %2790 = vrot.lane.b32.xlu0 %v7796_v38, %s8948_s28 }
 0x48b   : > { %v7875_v3 = vpop.permute.xlu1 %2609  ;;  %v7877_v4 = vpop.permute.xlu0 %2605 }
 0x48f   : > { %v2612_v13 = vpop.permute.xlu1 %2611  ;;  %v2633_v16 = vpop.permute.xlu0 %2632 }
 0x490   : > { %v2616_v27 = vsel %vm2615_vm7, %v7875_v3, %v2612_v13  ;;  %v2619_v57 = vsel %vm2615_vm7, %v2612_v13, %v7877_v4 }
 0x491   : > { %v2627_v37 = vmul.f32 %v2623_v26, %v2616_v27  ;;  %v2624_v8 = vmul.f32 %v2620_v54, %v2619_v57 }
 0x493   : > { %v2637_v17 = vpop.permute.xlu0 %2636  ;;  %v2635_v24 = vpop.permute.xlu1 %2634 }
 0x494   : > { %v2643_v59 = vsel %vm2640_vm8, %v2633_v16, %v2635_v24  ;;  %v2642_v61 = vsel %vm2640_vm8, %v2635_v24, %v2637_v17  ;;  %v2695_v24 = vld [vmem:[#allocation8 + $0x60] sm:$0xff] }
 0x495   : > { %v2650_v9 = vmul.f32 %v2646_v58, %v2643_v59  ;;  %v2651_v15 = vmul.f32 %v2647_v60, %v2642_v61  ;;  %v2725_v59 = vld [vmem:[#allocation8 + $0xa8] sm:$0xff]  ;;  %v2726_v60 = vld [vmem:[#allocation8 + $0xb0] sm:$0xff] }
 0x497   : > { %v2658_v29 = vpop.permute.xlu0 %2657  ;;  %v2639_v33 = vpop.permute.xlu1 %2638 }
 0x498   : > { %v2641_v25 = vsel %vm2640_vm8, %v2637_v17, %v2639_v33  ;;  %v2644_v1 = vsel %vm2640_vm8, %v2639_v33, %v2633_v16  ;;  %v2697_v16 = vld [vmem:[#allocation8 + $0x70] sm:$0xff] }
 0x499   : > { %v2652_v44 = vmul.f32 %v2648_v28, %v2641_v25  ;;  %v2649_v18 = vmul.f32 %v2645_v62, %v2644_v1  ;;  %v2727_v25 = vld [vmem:[#allocation8 + $0xb8] sm:$0xff] }
 0x49b   : > { %v2662_v40 = vpop.permute.xlu0 %2661  ;;  %v2660_v30 = vpop.permute.xlu1 %2659  ;;  %v6291_v31 = vpack.c.bf16 %v2652_v44, %v2627_v37 }
 0x49c   : > { %v2668_v7 = vsel %vm2665_vm9, %v2658_v29, %v2660_v30  ;;  %v2667_v19 = vsel %vm2665_vm9, %v2660_v30, %v2662_v40  ;;  %v2672_v30 = vld [vmem:[#allocation8 + $0x50] sm:$0xff] }
 0x49d   : > { %6292 = vmatprep.subr.bf16.mxu1 %v6291_v31  ;;  %v2675_v34 = vmul.f32 %v2671_v6, %v2668_v7  ;;  %v2676_v6 = vmul.f32 %v2672_v30, %v2667_v19  ;;  %v2724_v7 = vld [vmem:[#allocation8 + $0xa0] sm:$0xff]  ;;  %v2775_v19 = vld [vmem:[#allocation8 + $0xe8] sm:$0xff] }
 0x49f   : > { %v2683_v49 = vpop.permute.xlu0 %2682  ;;  %v2664_v48 = vpop.permute.xlu1 %2663 }
 0x4a0   : > { %v2666_v13 = vsel %vm2665_vm9, %v2662_v40, %v2664_v48  ;;  %v2669_v31 = vsel %vm2665_vm9, %v2664_v48, %v2658_v29 }
 0x4a1   : > { %v2677_v54 = vmul.f32 %v2673_v55, %v2666_v13  ;;  %v2752_v13 = vld [vmem:[#allocation8 + $0xd8] sm:$0xff] }
 0x4a3   : > { %v2687_v50 = vpop.permute.xlu0 %2686  ;;  %v2685_v36 = vpop.permute.xlu1 %2684 }
 0x4a4   : > { %v2693_v21 = vsel %vm2690_vm10, %v2683_v49, %v2685_v36  ;;  %v2692_v17 = vsel %vm2690_vm10, %v2685_v36, %v2687_v50 }
 0x4a5   : > { %v2701_v57 = vmul.f32 %v2697_v16, %v2692_v17 }
 0x4a7   : > { %v7889_v41 = vpop.permute.xlu0 %2711  ;;  %v2689_v43 = vpop.permute.xlu1 %2688 }
 0x4a8   : > { %v2691_v14 = vsel %vm2690_vm10, %v2687_v50, %v2689_v43  ;;  %v2694_v26 = vsel %vm2690_vm10, %v2689_v43, %v2683_v49  ;;  %v2700_v49 = vmul.f32 %v2696_v20, %v2693_v21  ;;  %v2670_v43 = vld [vmem:[#allocation8 + $0x40] sm:$0xff] }
 0x4a9   : > { %v2702_v33 = vmul.f32 %v2698_v11, %v2691_v14  ;;  %v2699_v58 = vmul.f32 %v2695_v24, %v2694_v26  ;;  %v6271_v14 = vpack.c.bf16 %v2649_v18, %v2624_v8  ;;  %v2674_v21 = vmul.f32 %v2670_v43, %v2669_v31  ;;  %v2750_v24 = vld [vmem:[#allocation8 + $0xc8] sm:$0xff]  ;;  %v2774_v26 = vld [vmem:[#allocation8 + $0xe0] sm:$0xff] }
 0x4ab   : > { %v2716_v45 = vpop.permute.xlu0 %2715  ;;  %v7891_v46 = vpop.permute.xlu1 %2713  ;;  %v6295_v20 = vpack.c.bf16 %v2702_v33, %v2677_v54  ;;  %v6275_v16 = vpack.c.bf16 %v2699_v58, %v2674_v21 }
 0x4ac   : > { %v2722_v11 = vsel %vm2719_vm11, %v7889_v41, %v7891_v46 }
 0x4af   : > { %v7893_v47 = vpop.permute.xlu0 %2736  ;;  %v2718_v53 = vpop.permute.xlu1 %2717 }
 0x4b0   : > { %v2723_v37 = vsel %vm2719_vm11, %v2718_v53, %v7889_v41  ;;  %v6297_v41 = vpack.c.bf16 %v2701_v57, %v2676_v6 }
 0x4b1   : > { %v2731_v61 = vmul.f32 %v2727_v25, %v2723_v37  ;;  %v2776_v25 = vld [vmem:[#allocation8 + $0xf0] sm:$0xff] }
 0x4b3   : > { %v7906_v2 = vpop.permute.xlu0 %2740  ;;  %v7908_v5 = vpop.permute.xlu1 %2738  ;;  %v6299_v17 = vpack.c.bf16 %v2731_v61, %v7800_v52  ;;  %v2799_v61 = vld [vmem:[#allocation8 + $0x100] sm:$0xff] }
 0x4b4   : > { %v2746_v8 = vsel %vm2744_vm12, %v7908_v5, %v7906_v2 }
 0x4b5   : > { %v2754_v57 = vmul.f32 %v2750_v24, %v2746_v8  ;;  %v3029_v8 = vld [vmem:[%s8927_s5 + $0x8] sm:$0xff]  ;;  %v3060_v24 = vld [vmem:[%s8927_s5 + $0x100] sm:$0xff] }
 0x4b7   : > { %v7930_v27 = vpop.permute.xlu1 %2742  ;;  %v2608_v28 = vpop.permute.xlu0 %2607 }
 0x4b8   : > { %v2617_v44 = vsel %vm2615_vm7, %v2608_v28, %v7875_v3  ;;  %v2618_v40 = vsel %vm2615_vm7, %v7877_v4, %v2608_v28  ;;  %v2721_v3 = vsel %vm2719_vm11, %v7891_v46, %v2716_v45  ;;  %v2720_v4 = vsel %vm2719_vm11, %v2716_v45, %v2718_v53 }
 0x4b9   : > { %v2625_v50 = vmul.f32 %v7920_v22, %v2618_v40  ;;  %v2626_v36 = vmul.f32 %v7922_v23, %v2617_v44  ;;  %v2729_v55 = vmul.f32 %v2725_v59, %v2721_v3  ;;  %v6273_v45 = vpack.c.bf16 %v2700_v49, %v2675_v34  ;;  %v2749_v49 = vld [vmem:[#allocation8 + $0xc0] sm:$0xff] }
 0x4ba   : > { %v2730_v53 = vmul.f32 %v2726_v60, %v2720_v4  ;;  %v2728_v46 = vmul.f32 %v2724_v7, %v2722_v11  ;;  %v2745_v43 = vsel %vm2744_vm12, %v7906_v2, %v7930_v27  ;;  %v3045_v11 = vld [vmem:[%s8927_s5 + $0x88] sm:$0xff] }
 0x4bb   : > { %v2764_v29 = vpop.permute.xlu1 %2763  ;;  %v2762_v48 = vpop.permute.xlu0 %2761  ;;  %v6269_v62 = vpack.c.bf16 %v2650_v9, %v2625_v50  ;;  %v6293_v1 = vpack.c.bf16 %v2651_v15, %v2626_v36  ;;  %v2748_v9 = vsel %vm2744_vm12, %v7930_v27, %v7893_v47  ;;  %v2777_v15 = vld [vmem:[#allocation8 + $0xf8] sm:$0xff]  ;;  %v6277_v52 = vpack.c.bf16 %v2729_v55, %v7798_v39  ;;  %v2751_v36 = vld [vmem:[#allocation8 + $0xd0] sm:$0xff] }
 0x4bc   : > { %v2772_v28 = vsel %vm2769_vm13, %v2762_v48, %v2764_v29  ;;  %v2756_v40 = vmul.f32 %v2752_v13, %v2748_v9  ;;  %v2747_v50 = vsel %vm2744_vm12, %v7893_v47, %v7908_v5  ;;  %v6301_v54 = vpack.c.bf16 %v2730_v53, %v7796_v38  ;;  %v2801_v38 = vld [vmem:[#allocation8 + $0x110] sm:$0xff]  ;;  %v3077_v53 = vld [vmem:[%s8927_s5 + $0x188] sm:$0xff] }
 0x4bd   : > { %6270 = vmatprep.subr.bf16.mxu0 %v6269_v62  ;;  %6294 = vmatpush1.bf16.msra.mxu1 %v6293_v1  ;;  %v2778_v39 = vmul.f32 %v2774_v26, %v2772_v28  ;;  %v6279_v47 = vpack.c.bf16 %v2728_v46, %v7794_v35  ;;  %v2753_v5 = vmul.f32 %v2749_v49, %v2747_v50  ;;  %v3044_v35 = vld [vmem:[%s8927_s5 + $0x80] sm:$0xff]  ;;  %v3061_v26 = vld [vmem:[%s8927_s5 + $0x108] sm:$0xff]  ;;  %v3046_v28 = vld [vmem:[%s8927_s5 + $0x90] sm:$0xff] }
 0x4be   : > { %6272 = vmatpush1.bf16.msra.mxu0 %v6271_v14  ;;  %6296 = vmatprep.subr.bf16.mxu1 %v6295_v20  ;;  %v2755_v4 = vmul.f32 %v2751_v36, %v2745_v43  ;;  %v3028_v46 = vld [vmem:[%s8927_s5] sm:$0xff]  ;;  %v3063_v49 = vld [vmem:[%s8927_s5 + $0x118] sm:$0xff]  ;;  %v3049_v36 = vld [vmem:[%s8927_s5 + $0xa8] sm:$0xff] }
 0x4bf   : > { %v2768_v18 = vpop.permute.xlu1 %2767  ;;  %v2766_v34 = vpop.permute.xlu0 %2765  ;;  %6274 = vmatprep.subr.bf16.mxu0 %v6273_v45  ;;  %v6283_v7 = vpack.c.bf16 %v2778_v39, %v2753_v5  ;;  %v3076_v45 = vld [vmem:[%s8927_s5 + $0x180] sm:$0xff]  ;;  %v3065_v5 = vld [vmem:[%s8927_s5 + $0x128] sm:$0xff] }
 0x4c0   : > { %v2773_v33 = vsel %vm2769_vm13, %v2768_v18, %v2762_v48  ;;  %v2770_v37 = vsel %vm2769_vm13, %v2766_v34, %v2768_v18  ;;  %v2771_v44 = vsel %vm2769_vm13, %v2764_v29, %v2766_v34  ;;  %v2802_v29 = vld [vmem:[#allocation8 + $0x118] sm:$0xff]  ;;  %v2800_v48 = vld [vmem:[#allocation8 + $0x108] sm:$0xff] }
 0x4c1   : > { %v2781_v30 = vmul.f32 %v2777_v15, %v2773_v33  ;;  %v2779_v31 = vmul.f32 %v2775_v19, %v2771_v44  ;;  %6298 = vmatpush1.bf16.msra.mxu1 %v6297_v41  ;;  %v2780_v58 = vmul.f32 %v2776_v25, %v2770_v37  ;;  %v8009_v41 = vpack.c.bf16 %v3045_v11, %v3044_v35  ;;  %v3079_v33 = vld [vmem:[%s8927_s5 + $0x198] sm:$0xff]  ;;  %v3030_v44 = vld [vmem:[%s8927_s5 + $0x10] sm:$0xff]  ;;  %v3048_v50 = vld [vmem:[%s8927_s5 + $0xa0] sm:$0xff] }
 0x4c2   : > { %6276 = vmatpush1.bf16.msra.mxu0 %v6275_v16  ;;  %6300 = vmatprep.subr.bf16.mxu1 %v6299_v17  ;;  %v8020_v17 = vpack.c.bf16 %v3077_v53, %v3076_v45  ;;  %v8052_v25 = vpack.c.bf16 %v3029_v8, %v3028_v46  ;;  %v8054_v37 = vpack.c.bf16 %v3061_v26, %v3060_v24  ;;  %v3080_v43 = vld [vmem:[%s8927_s5 + $0x1a0] sm:$0xff]  ;;  %v3067_v35 = vld [vmem:[%s8927_s5 + $0x138] sm:$0xff]  ;;  %v3069_v8 = vld [vmem:[%s8927_s5 + $0x148] sm:$0xff] }
 0x4c3   : > { %v2789_v59 = vpop.permute.xlu1 %2788  ;;  %v2787_v3 = vpop.permute.xlu0 %2786  ;;  %6278 = vmatprep.subr.bf16.mxu0 %v6277_v52  ;;  %v6303_v60 = vpack.c.bf16 %v2781_v30, %v2756_v40  ;;  %v6281_v27 = vpack.c.bf16 %v2779_v31, %v2754_v57  ;;  %v6305_v6 = vpack.c.bf16 %v2780_v58, %v2755_v4  ;;  %v3031_v40 = vld [vmem:[%s8927_s5 + $0x18] sm:$0xff]  ;;  %v3062_v52 = vld [vmem:[%s8927_s5 + $0x110] sm:$0xff]  ;;  %v3032_v58 = vld [vmem:[%s8927_s5 + $0x20] sm:$0xff] }
 0x4c4   : > { %v2797_v2 = vsel %vm2794_vm14, %v2787_v3, %v2789_v59  ;;  %v8090_v57 = vpack.c.bf16 %v3031_v40, %v3030_v44  ;;  %v8092_v39 = vpack.c.bf16 %v3063_v49, %v3062_v52  ;;  %v3050_v4 = vld [vmem:[%s8927_s5 + $0xb0] sm:$0xff]  ;;  %v3052_v11 = vld [vmem:[%s8927_s5 + $0xc0] sm:$0xff]  ;;  %v3087_v24 = vld [vmem:[%s8927_s5 + $0x1d8] sm:$0xff] }
 0x4c5   : > { %6302 = vmatpush1.bf16.msra.mxu1 %v6301_v54  ;;  %v2803_v14 = vmul.f32 %v2799_v61, %v2797_v2  ;;  %v3081_v54 = vld [vmem:[%s8927_s5 + $0x1a8] sm:$0xff]  ;;  %v3051_v61 = vld [vmem:[%s8927_s5 + $0xb8] sm:$0xff]  ;;  %v3082_v2 = vld [vmem:[%s8927_s5 + $0x1b0] sm:$0xff] }
 0x4c6   : > { %6280 = vmatpush1.bf16.msra.mxu0 %v6279_v47  ;;  %6304 = vmatprep.subr.bf16.mxu1 %v6303_v60  ;;  %v8104_v60 = vpack.c.bf16 %v3081_v54, %v3080_v43  ;;  %v3064_v47 = vld [vmem:[%s8927_s5 + $0x120] sm:$0xff]  ;;  %v3071_v44 = vld [vmem:[%s8927_s5 + $0x158] sm:$0xff]  ;;  %v3057_v52 = vld [vmem:[%s8927_s5 + $0xe8] sm:$0xff] }
 0x4c7   : > { %v2793_v62 = vpop.permute.xlu1 %2792  ;;  %v2791_v1 = vpop.permute.xlu0 %2790  ;;  %6282 = vmatprep.subr.bf16.mxu0 %v6281_v27  ;;  %v3083_v27 = vld [vmem:[%s8927_s5 + $0x1b8] sm:$0xff]  ;;  %v3036_v53 = vld [vmem:[%s8927_s5 + $0x40] sm:$0xff] }
 0x4c8   : > { %v2798_v20 = vsel %vm2794_vm14, %v2793_v62, %v2787_v3  ;;  %v2795_v21 = vsel %vm2794_vm14, %v2791_v1, %v2793_v62  ;;  %v2796_v55 = vsel %vm2794_vm14, %v2789_v59, %v2791_v1  ;;  %v3033_v59 = vld [vmem:[%s8927_s5 + $0x28] sm:$0xff]  ;;  %v8102_v3 = vpack.c.bf16 %v3049_v36, %v3048_v50  ;;  %v3035_v62 = vld [vmem:[%s8927_s5 + $0x38] sm:$0xff]  ;;  %v3068_v46 = vld [vmem:[%s8927_s5 + $0x140] sm:$0xff] }
 0x4c9   : > { %v2806_v13 = vmul.f32 %v2802_v29, %v2798_v20  ;;  %v2804_v9 = vmul.f32 %v2800_v48, %v2796_v55  ;;  %v2805_v15 = vmul.f32 %v2801_v38, %v2795_v21  ;;  %6306 = vmatpush1.bf16.msra.mxu1 %v6305_v6  ;;  %v8126_v29 = vpack.c.bf16 %v3033_v59, %v3032_v58  ;;  %v3034_v38 = vld [vmem:[%s8927_s5 + $0x30] sm:$0xff]  ;;  %v3084_v20 = vld [vmem:[%s8927_s5 + $0x1c0] sm:$0xff]  ;;  %v3085_v21 = vld [vmem:[%s8927_s5 + $0x1c8] sm:$0xff] }
 0x4ca   : > { %6284 = vmatpush1.bf16.msra.mxu0 %v6283_v7  ;;  %v8128_v48 = vpack.c.bf16 %v3065_v5, %v3064_v47  ;;  %v8138_v1 = vpack.c.bf16 %v3051_v61, %v3050_v4  ;;  %v8140_v6 = vpack.c.bf16 %v3083_v27, %v3082_v2  ;;  %v3066_v7 = vld [vmem:[%s8927_s5 + $0x130] sm:$0xff]  ;;  %v8162_v55 = vpack.c.bf16 %v3035_v62, %v3034_v38  ;;  %v3056_v40 = vld [vmem:[%s8927_s5 + $0xe0] sm:$0xff]  ;;  %v3089_v50 = vld [vmem:[%s8927_s5 + $0x1e8] sm:$0xff] }
 0x4cb   : > { %v6285_v18 = vpack.c.bf16 %v7857_v63, %v2804_v9  ;;  %v6307_v34 = vpack.c.bf16 %v7859_v0, %v2806_v13  ;;  %v6310_v16 = vpack.c.bf16 %v7861_v32, %v2805_v15  ;;  %v6288_v63 = vpack.c.bf16 %v7855_v56, %v2803_v14  ;;  %v3047_v0 = vld [vmem:[%s8927_s5 + $0x98] sm:$0xff]  ;;  %v3078_v32 = vld [vmem:[%s8927_s5 + $0x190] sm:$0xff]  ;;  %v2596_v56 = vld [vmem:[%s8933_s11] sm:$0xff] }
 0x4cc   : > { %v8064_v30 = vpack.c.bf16 %v3047_v0, %v3046_v28  ;;  %v8066_v31 = vpack.c.bf16 %v3079_v33, %v3078_v32  ;;  %v3053_v14 = vld [vmem:[%s8927_s5 + $0xc8] sm:$0xff]  ;;  %v8164_v45 = vpack.c.bf16 %v3067_v35, %v3066_v7  ;;  %v8176_v15 = vpack.c.bf16 %v3085_v21, %v3084_v20  ;;  %v3039_v0 = vld [vmem:[%s8927_s5 + $0x58] sm:$0xff]  ;;  %v3088_v49 = vld [vmem:[%s8927_s5 + $0x1e0] sm:$0xff] }
 0x4cd   : > { %6287 = vmatprep.subr.msk.bf16.mxu0 %vm8005_vm0, %v6285_v18  ;;  %6309 = vmatprep.subr.msk.bf16.mxu1 %vm8005_vm0, %v6307_v34  ;;  %v3037_v13 = vld [vmem:[%s8927_s5 + $0x48] sm:$0xff]  ;;  %v8174_v9 = vpack.c.bf16 %v3053_v14, %v3052_v11  ;;  %v3054_v18 = vld [vmem:[%s8927_s5 + $0xd0] sm:$0xff]  ;;  %v3055_v34 = vld [vmem:[%s8927_s5 + $0xd8] sm:$0xff]  ;;  %v8200_v28 = vpack.c.bf16 %v3069_v8, %v3068_v46  ;;  %v8243_v58 = vpack.c.bf16 %v3057_v52, %v3056_v40 }
 0x4ce   : > { %6290 = vmatpush1.bf16.msk.msra.mxu0 %vm8005_vm0, %v6288_v63  ;;  %6312 = vmatpush1.bf16.msk.msra.mxu1 %vm8005_vm0, %v6310_v16  ;;  %v3086_v16 = vld [vmem:[%s8927_s5 + $0x1d0] sm:$0xff]  ;;  %v8198_v26 = vpack.c.bf16 %v3037_v13, %v3036_v53  ;;  %v8210_v32 = vpack.c.bf16 %v3055_v34, %v3054_v18  ;;  %v3040_v54 = vld [vmem:[%s8927_s5 + $0x60] sm:$0xff]  ;;  %v8245_v59 = vpack.c.bf16 %v3089_v50, %v3088_v49  ;;  %v3041_v47 = vld [vmem:[%s8927_s5 + $0x68] sm:$0xff] }
 0x4cf   : > { %6314 = vmatprep.subr.bf16.mxu0 %v8009_v41  ;;  %6346 = vmatprep.subr.bf16.mxu1 %v8020_v17  ;;  %v3038_v63 = vld [vmem:[%s8927_s5 + $0x50] sm:$0xff]  ;;  %v8212_v33 = vpack.c.bf16 %v3087_v24, %v3086_v16  ;;  %v3072_v5 = vld [vmem:[%s8927_s5 + $0x160] sm:$0xff]  ;;  %v3073_v4 = vld [vmem:[%s8927_s5 + $0x168] sm:$0xff]  ;;  %v8258_v61 = vpack.c.bf16 %v3041_v47, %v3040_v54 }
 0x4d0   : > { %v8234_v36 = vpack.c.bf16 %v3039_v0, %v3038_v63  ;;  %v8260_v2 = vpack.c.bf16 %v3073_v4, %v3072_v5  ;;  %v3058_v27 = vld [vmem:[%s8927_s5 + $0xf0] sm:$0xff]  ;;  %v3059_v38 = vld [vmem:[%s8927_s5 + $0xf8] sm:$0xff] }
 0x4d1   : > { %5137 = vmatmul.mubr.msk.f32.vlgmr.msra.gmra.mrb[12].mxu0 %vm2858_vm2, %v2596_v56  ;;  %5140 = vmatmul.mubr.msk.f32.vlgmr.msra.gmra.mrb[12].mxu1 %vm2858_vm2, %v2596_v56  ;;  %v3070_v56 = vld [vmem:[%s8927_s5 + $0x150] sm:$0xff]  ;;  %v8275_v7 = vpack.c.bf16 %v3059_v38, %v3058_v27  ;;  %v3091_v35 = vld [vmem:[%s8927_s5 + $0x1f8] sm:$0xff] }
 0x4d2   : > { %6316 = vmatpush3.bf16.msra.mxu0 %v8052_v25  ;;  %6348 = vmatpush3.bf16.msra.mxu1 %v8054_v37  ;;  %v8236_v43 = vpack.c.bf16 %v3071_v44, %v3070_v56  ;;  %v3090_v62 = vld [vmem:[%s8927_s5 + $0x1f0] sm:$0xff]  ;;  %v3043_v14 = vld [vmem:[%s8927_s5 + $0x78] sm:$0xff] }
 0x4d3   : > { %6318 = vmatprep.subr.bf16.mxu0 %v8064_v30  ;;  %6350 = vmatprep.subr.bf16.mxu1 %v8066_v31  ;;  %v3042_v11 = vld [vmem:[%s8927_s5 + $0x70] sm:$0xff]  ;;  %v6373_v20 = vpack.c.bf16 %v3091_v35, %v3090_v62  ;;  %v3075_v13 = vld [vmem:[%s8927_s5 + $0x178] sm:$0xff] }
 0x4d4   : > { %v6343_v21 = vpack.c.bf16 %v3043_v14, %v3042_v11  ;;  %v3074_v53 = vld [vmem:[%s8927_s5 + $0x170] sm:$0xff] }
 0x4d5   : > { %v6375_v46 = vpack.c.bf16 %v3075_v13, %v3074_v53 }
 0x4d6   : > { %6320 = vmatpush3.bf16.msra.mxu0 %v8090_v57  ;;  %6352 = vmatpush3.bf16.msra.mxu1 %v8092_v39 }
 0x4d7   : > { %6322 = vmatprep.subr.bf16.mxu0 %v8102_v3  ;;  %6354 = vmatprep.subr.bf16.mxu1 %v8104_v60 }
 0x4da   : > { %6324 = vmatpush3.bf16.msra.mxu0 %v8126_v29  ;;  %6356 = vmatpush3.bf16.msra.mxu1 %v8128_v48 }
 0x4db   : > { %6326 = vmatprep.subr.bf16.mxu0 %v8138_v1  ;;  %6358 = vmatprep.subr.bf16.mxu1 %v8140_v6 }
 0x4de   : > { %6328 = vmatpush3.bf16.msra.mxu0 %v8162_v55  ;;  %6360 = vmatpush3.bf16.msra.mxu1 %v8164_v45 }
 0x4df   : > { %6330 = vmatprep.subr.bf16.mxu0 %v8174_v9  ;;  %6362 = vmatprep.subr.bf16.mxu1 %v8176_v15 }
 0x4e2   : > { %6332 = vmatpush3.bf16.msra.mxu0 %v8198_v26  ;;  %6364 = vmatpush3.bf16.msra.mxu1 %v8200_v28 }
 0x4e3   : > { %6334 = vmatprep.subr.bf16.mxu0 %v8210_v32  ;;  %6366 = vmatprep.subr.bf16.mxu1 %v8212_v33 }
 0x4e6   : > { %6336 = vmatpush3.bf16.msra.mxu0 %v8234_v36  ;;  %6368 = vmatpush3.bf16.msra.mxu1 %v8236_v43 }
 0x4e7   : > { %6338 = vmatprep.subr.bf16.mxu0 %v8243_v58  ;;  %6370 = vmatprep.subr.bf16.mxu1 %v8245_v59 }
 0x4ea   : > { %6340 = vmatpush3.bf16.msra.mxu0 %v8258_v61  ;;  %6372 = vmatpush3.bf16.msra.mxu1 %v8260_v2 }
 0x4eb   : > { %6342 = vmatprep.subr.bf16.mxu0 %v8275_v7  ;;  %6374 = vmatprep.subr.bf16.mxu1 %v6373_v20 }
 0x4ee   : > { %6344 = vmatpush3.bf16.msra.mxu0 %v6343_v21  ;;  %6376 = vmatpush3.bf16.msra.mxu1 %v6375_v46 }
 0x4ef   : > { %6378 = vmatprep.subr.bf16.mxu0 %v8009_v41  ;;  %6410 = vmatprep.subr.bf16.mxu1 %v8020_v17 }
 0x5a4   : > { %v2940_v8 = vpop.f32.mrb[12].mxu0  ;;  %v3011_v18 = vpop.f32.mrb[12].mxu1 }
 0x5a5   : > { %v3020_v34 = vmul.f32 0.01, %v2940_v8  ;;  %vm3016_vm3 = vcmp.ge.f32.partialorder %v2940_v8, 0.0  ;;  %vm3018_vm5 = vcmp.ge.f32.partialorder %v3011_v18, 0.0  ;;  %v3022_v16 = vmul.f32 0.01, %v3011_v18 }
 0x5a6   : > { %v2942_v24 = vpop.f32.mrb[13].mxu0  ;;  %v3013_v63 = vpop.f32.mrb[13].mxu1 }
 0x5a7   : > { %vm3017_vm6 = vcmp.ge.f32.partialorder %v2942_v24, 0.0  ;;  %v3021_v0 = vmul.f32 0.01, %v2942_v24  ;;  %vm3019_vm15 = vcmp.ge.f32.partialorder %v3013_v63, 0.0  ;;  %v3023_v56 = vmul.f32 0.01, %v3013_v63 }
 0x5a8   : > { %v8299_v52 = vsel %vm3016_vm3, %v2940_v8, %v3020_v34  ;;  %v8303_v41 = vsel %vm3018_vm5, %v3011_v18, %v3022_v16 }
 0x5a9   : > { %v8295_v44 = vsel %vm3017_vm6, %v2942_v24, %v3021_v0  ;;  %v8297_v40 = vsel %vm3019_vm15, %v3013_v63, %v3023_v56  ;;  %v2597_v56 = vld [vmem:[#allocation14] sm:$0xff] }
 0x5aa   : > { %3156 = vmatprep.mubr.f32.mxu0 %v8295_v44  ;;  %3226 = vmatprep.mubr.f32.mxu1 %v8297_v40  ;;  %v3240_v17 = vmul.f32 %v8295_v44, %v8295_v44  ;;  %v3242_v49 = vmul.f32 %v8297_v40, %v8297_v40 }
 0x5ab   : > { %3157 = vmatmul.mubr.f32.vlgmr.msra.gmra.mrb[14].mxu0 %v8299_v52  ;;  %3227 = vmatmul.mubr.f32.vlgmr.msra.gmra.mrb[14].mxu1 %v8303_v41 }
 0x5ac   : > { %6380 = vmatpush3.bf16.msra.mxu0 %v8052_v25  ;;  %6412 = vmatpush3.bf16.msra.mxu1 %v8054_v37  ;;  %v3239_v25 = vmul.f32 %v8299_v52, %v8299_v52  ;;  %v3241_v37 = vmul.f32 %v8303_v41, %v8303_v41 }
 0x5ad   : > { %3307 = vmatprep.mubr.f32.mxu0 %v3240_v17  ;;  %3377 = vmatprep.mubr.f32.mxu1 %v3242_v49  ;;  %v2599_v49 = vld [vmem:[#allocation14 + $0x10] sm:$0xff] }
 0x5ae   : > { %6382 = vmatprep.subr.bf16.mxu0 %v8064_v30  ;;  %6414 = vmatprep.subr.bf16.mxu1 %v8066_v31  ;;  %v3396_v30 = vld [vmem:[#allocation7] sm:$0xff] }
 0x5af   : > { %v3398_v31 = vcombine.high %v3396_v30, %v3396_v30 }
 0x5b0   : > { %6384 = vmatpush3.bf16.msra.mxu0 %v8090_v57  ;;  %6416 = vmatpush3.bf16.msra.mxu1 %v8092_v39  ;;  %v3405_v57 = vrot.slane %v3396_v30, %v7756_v51 }
 0x5b1   : > { %6386 = vmatprep.subr.bf16.mxu0 %v8102_v3  ;;  %6418 = vmatprep.subr.bf16.mxu1 %v8104_v60  ;;  %v3412_v39 = vrot.slane %v3398_v31, %v7756_v51  ;;  %v2598_v31 = vld [vmem:[#allocation14 + $0x8] sm:$0xff] }
 0x5b2   : > { %v3413_v3 = vcombine.high %v3405_v57, %v3405_v57 }
 0x5b3   : > { %v3414_v60 = vcombine.high %v3412_v39, %v3412_v39 }
 0x5b4   : > { %6388 = vmatpush3.bf16.msra.mxu0 %v8126_v29  ;;  %6420 = vmatpush3.bf16.msra.mxu1 %v8128_v48 }
 0x5b5   : > { %6390 = vmatprep.subr.bf16.mxu0 %v8138_v1  ;;  %6422 = vmatprep.subr.bf16.mxu1 %v8140_v6 }
 0x5b8   : > { %6392 = vmatpush3.bf16.msra.mxu0 %v8162_v55  ;;  %6424 = vmatpush3.bf16.msra.mxu1 %v8164_v45 }
 0x5b9   : > { %6394 = vmatprep.subr.bf16.mxu0 %v8174_v9  ;;  %6426 = vmatprep.subr.bf16.mxu1 %v8176_v15 }
 0x5bc   : > { %6396 = vmatpush3.bf16.msra.mxu0 %v8198_v26  ;;  %6428 = vmatpush3.bf16.msra.mxu1 %v8200_v28 }
 0x5bd   : > { %6398 = vmatprep.subr.bf16.mxu0 %v8210_v32  ;;  %6430 = vmatprep.subr.bf16.mxu1 %v8212_v33 }
 0x5c0   : > { %6400 = vmatpush3.bf16.msra.mxu0 %v8234_v36  ;;  %6432 = vmatpush3.bf16.msra.mxu1 %v8236_v43 }
 0x5c1   : > { %6402 = vmatprep.subr.bf16.mxu0 %v8243_v58  ;;  %6434 = vmatprep.subr.bf16.mxu1 %v8245_v59 }
 0x5c4   : > { %6404 = vmatpush3.bf16.msra.mxu0 %v8258_v61  ;;  %6436 = vmatpush3.bf16.msra.mxu1 %v8260_v2 }
 0x5c5   : > { %6406 = vmatprep.subr.bf16.mxu0 %v8275_v7  ;;  %6438 = vmatprep.subr.bf16.mxu1 %v6373_v20 }
 0x5c8   : > { %6408 = vmatpush3.bf16.msra.mxu0 %v6343_v21  ;;  %6440 = vmatpush3.bf16.msra.mxu1 %v6375_v46 }
 0x5c9   : > { %5141 = vmatprep.subr.msk.mxu0 %vm2228_vm1, %v3413_v3  ;;  %5144 = vmatprep.subr.msk.mxu1 %vm2228_vm1, %v3414_v60 }
 0x5cb   : > { %3308 = vmatmul.mubr.f32.vlgmr.msra.gmra.mrb[16].mxu0 %v3239_v25  ;;  %3378 = vmatmul.mubr.f32.vlgmr.msra.gmra.mrb[16].mxu1 %v3241_v37 }
 0x5cc   : > { %3490 = vmatprep.mubr.f32.mxu0 %v7046_v10  ;;  %3561 = vmatprep.mubr.f32.mxu1 %v7046_v10 }
 0x5cd   : > { %5142 = vmatpush1.msk.msra.mxu0 %vm2228_vm1, %v3405_v57  ;;  %5145 = vmatpush1.msk.msra.mxu1 %vm2228_vm1, %v3412_v39 }
 0x5ce   : > { %5147 = vmatprep.subr.msk.mxu0 %vm2228_vm1, %v3413_v3  ;;  %5150 = vmatprep.subr.msk.mxu1 %vm2228_vm1, %v3414_v60 }
 0x67e   : > { %v5349_v29 = vpop.f32.mrb[14].mxu0  ;;  %v5384_v48 = vpop.f32.mrb[14].mxu1 }
 0x67f   : > { %v5350_v1 = vpop.f32.mrb[15].mxu0  ;;  %v5385_v6 = vpop.f32.mrb[15].mxu1 }
 0x680   : > { %v5351_v55 = vadd.f32 %v5350_v1, %v5349_v29  ;;  %v5386_v45 = vadd.f32 %v5385_v6, %v5384_v48 }
 0x682   : > { %v3229_v9 = vadd.f32 %v5386_v45, %v5351_v55 }
 0x684   : > { %v3232_v15 = vsel %vm2224_vm4, %v3229_v9, 0.0 }
 0x685   : > { %v3233_v26 = vrot.slane %v3232_v15, 4 }
 0x687   : > { %v3234_v28 = vadd.f32 %v3233_v26, %v3232_v15  ;;  %v2601_v15 = vld [vmem:[#allocation16] sm:$0xff]  ;;  %v2603_v26 = vld [vmem:[#allocation16 + $0x10] sm:$0xff] }
 0x689   : > { %v3235_v32 = vrot.slane %v3234_v28, 2 }
 0x68b   : > { %v3236_v33 = vadd.f32 %v3235_v32, %v3234_v28 }
 0x68d   : > { %v3237_v50 = vrot.slane %v3236_v33, 1 }
 0x68f   : > { %v3238_v36 = vadd.f32 %v3237_v50, %v3236_v33 }
 0x691   : > { %v3390_v43 = vmul.f32 0.00048828125, %v3238_v36  ;;  %v2602_v36 = vld [vmem:[#allocation16 + $0x8] sm:$0xff] }
 0x693   : > { %5143 = vmatmul.mubr.msk.f32.vlgmr.msra.gmra.mrb[18].mxu0 %vm2224_vm4, %v3390_v43  ;;  %5146 = vmatmul.mubr.msk.f32.vlgmr.msra.gmra.mrb[18].mxu1 %vm2224_vm4, %v3390_v43  ;;  %v3392_v20 = vmul.f32 %v3390_v43, %v3390_v43  ;;  %v2604_v43 = vld [vmem:[#allocation16 + $0x18] sm:$0xff] }
 0x694   : > { %5148 = vmatpush1.msk.msra.mxu0 %vm2228_vm1, %v3405_v57  ;;  %3635 = vmatprep.mubr.f32.mxu0 %v7046_v10 }
 0x695   : > { %5151 = vmatpush1.msk.msra.mxu1 %vm2228_vm1, %v3412_v39  ;;  %3706 = vmatprep.mubr.f32.mxu1 %v7046_v10  ;;  %v2600_v39 = vld [vmem:[#allocation14 + $0x18] sm:$0xff] }
 0x69e   : > { %v5419_v54 = vpop.f32.mrb[16].mxu0  ;;  %v5454_v58 = vpop.f32.mrb[16].mxu1 }
 0x69f   : > { %v5420_v59 = vpop.f32.mrb[17].mxu0  ;;  %v5455_v47 = vpop.f32.mrb[17].mxu1 }
 0x6a0   : > { %v5421_v5 = vadd.f32 %v5420_v59, %v5419_v54  ;;  %v5456_v4 = vadd.f32 %v5455_v47, %v5454_v58 }
 0x6a2   : > { %v3380_v61 = vadd.f32 %v5456_v4, %v5421_v5 }
 0x6a4   : > { %v3383_v2 = vsel %vm2224_vm4, %v3380_v61, 0.0 }
 0x6a5   : > { %v3384_v27 = vrot.slane %v3383_v2, 4 }
 0x6a7   : > { %v3385_v38 = vadd.f32 %v3384_v27, %v3383_v2  ;;  %v3782_v2 = vld [vmem:[#allocation8] sm:$0xff]  ;;  %v3785_v27 = vld [vmem:[#allocation8 + $0x18] sm:$0xff] }
 0x6a9   : > { %v3386_v62 = vrot.slane %v3385_v38, 2 }
 0x6ab   : > { %v3387_v7 = vadd.f32 %v3386_v62, %v3385_v38 }
 0x6ad   : > { %v3388_v35 = vrot.slane %v3387_v7, 1 }
 0x6af   : > { %v3389_v11 = vadd.f32 %v3388_v35, %v3387_v7 }
 0x6b1   : > { %v3391_v14 = vmul.f32 0.00048828125, %v3389_v11 }
 0x6b3   : > { %v3393_v21 = vsub.f32 %v3391_v14, %v3392_v20 }
 0x6b5   : > { %v3394_v53 = vadd.f32 1e-05, %v3393_v21 }
 0x6b7   : > { %6747 = vrsqrt.f32 %v3394_v53  ;;  %v3807_v53 = vld [vmem:[#allocation8 + $0x28] sm:$0xff] }
 0x6c1   : > { %v6748_v13 = vpop.eup %6747 }
 0x6c2   : > { %5149 = vmatmul.mubr.msk.f32.vlgmr.msra.gmra.mrb[20].mxu0 %vm2224_vm4, %v6748_v13  ;;  %5152 = vmatmul.mubr.msk.f32.vlgmr.msra.gmra.mrb[20].mxu1 %vm2224_vm4, %v6748_v13 }
 0x6c3   : > { %4087 = vmatprep.mubr.f32.mxu0 %v7046_v10  ;;  %4158 = vmatprep.mubr.f32.mxu1 %v7046_v10 }
 0x766   : > { %v3492_v46 = vpop.f32.mrb[18].mxu0  ;;  %v3563_v8 = vpop.f32.mrb[18].mxu1 }
 0x767   : > { %v3494_v18 = vpop.f32.mrb[19].mxu0  ;;  %v3565_v34 = vpop.f32.mrb[19].mxu1  ;;  %v3716_v16 = vrot.slane %v3492_v46, %v7412_v42  ;;  %v3724_v24 = vrot.slane %v3563_v8, %v7412_v42  ;;  %v3808_v8 = vld [vmem:[#allocation8 + $0x30] sm:$0xff] }
 0x768   : > { %v3720_v63 = vrot.slane %v3494_v18, %v7412_v42  ;;  %v3728_v0 = vrot.slane %v3565_v34, %v7412_v42  ;;  %v3806_v34 = vld [vmem:[#allocation8 + $0x20] sm:$0xff] }
 0x769   : > { %v3729_v48 = vsub.f32 %v8299_v52, %v3716_v16  ;;  %v3731_v1 = vsub.f32 %v8303_v41, %v3724_v24  ;;  %v3809_v16 = vld [vmem:[#allocation8 + $0x38] sm:$0xff] }
 0x76a   : > { %v3730_v45 = vsub.f32 %v8295_v44, %v3720_v63  ;;  %v3732_v9 = vsub.f32 %v8297_v40, %v3728_v0 }
 0x795   : > { %v3637_v17 = vpop.f32.mrb[20].mxu0  ;;  %v3708_v25 = vpop.f32.mrb[20].mxu1 }
 0x796   : > { %v3736_v37 = vrot.slane %v3637_v17, %v7412_v42  ;;  %v3744_v30 = vrot.slane %v3708_v25, %v7412_v42  ;;  %v3639_v57 = vpop.f32.mrb[21].mxu0  ;;  %v3710_v3 = vpop.f32.mrb[21].mxu1 }
 0x797   : > { %v3740_v60 = vrot.slane %v3639_v57, %v7412_v42  ;;  %v3748_v29 = vrot.slane %v3710_v3, %v7412_v42 }
 0x798   : > { %v3749_v6 = vmul.f32 %v3736_v37, %v2597_v56  ;;  %v3751_v55 = vmul.f32 %v3744_v30, %v2599_v49  ;;  %v3831_v30 = vld [vmem:[#allocation8 + $0x48] sm:$0xff] }
 0x799   : > { %v3750_v28 = vmul.f32 %v3740_v60, %v2598_v31  ;;  %v3752_v32 = vmul.f32 %v3748_v29, %v2600_v39 }
 0x79a   : > { %v3753_v33 = vmul.f32 %v3749_v6, %v3729_v48  ;;  %v3755_v50 = vmul.f32 %v3751_v55, %v3731_v1  ;;  %v3832_v48 = vld [vmem:[#allocation8 + $0x50] sm:$0xff]  ;;  %v3830_v6 = vld [vmem:[#allocation8 + $0x40] sm:$0xff]  ;;  %v3833_v55 = vld [vmem:[#allocation8 + $0x58] sm:$0xff] }
 0x79b   : > { %v3754_v54 = vmul.f32 %v3750_v28, %v3730_v45  ;;  %v3756_v58 = vmul.f32 %v3752_v32, %v3732_v9 }
 0x79c   : > { %v8376_v59 = vadd.f32 %v3753_v33, %v2601_v15  ;;  %v8378_v52 = vadd.f32 %v3755_v50, %v2603_v26 }
 0x79d   : > { %v8380_v41 = vadd.f32 %v3754_v54, %v2602_v36  ;;  %v8382_v47 = vadd.f32 %v3756_v58, %v2604_v43  ;;  %v3855_v36 = vld [vmem:[#allocation8 + $0x68] sm:$0xff] }
 0x79e   : > { %3770 = vrot.lane.b32.xlu0 %v8376_v59, %s7048_s25 }
 0x79f   : > { %3772 = vrot.lane.b32.xlu1 %v8380_v41, %s7048_s25 }
 0x7a2   : > { %3774 = vrot.lane.b32.xlu0 %v8378_v52, %s7048_s25 }
 0x7a3   : > { %3776 = vrot.lane.b32.xlu1 %v8382_v47, %s7048_s25  ;;  %s8973_s25 = smov 112  }
 0x7a6   : > { %3794 = vrot.lane.b32.xlu0 %v8376_v59, %s7049_s14 }
 0x7a7   : > { %3796 = vrot.lane.b32.xlu1 %v8380_v41, %s7049_s14 }
 0x7aa   : > { %3798 = vrot.lane.b32.xlu0 %v8378_v52, %s7049_s14 }
 0x7ab   : > { %3800 = vrot.lane.b32.xlu1 %v8382_v47, %s7049_s14  ;;  %s8974_s14 = smov 111  }
 0x7ae   : > { %3818 = vrot.lane.b32.xlu0 %v8376_v59, %s7050_s0 }
 0x7af   : > { %3820 = vrot.lane.b32.xlu1 %v8380_v41, %s7050_s0 }
 0x7b2   : > { %3822 = vrot.lane.b32.xlu0 %v8378_v52, %s7050_s0 }
 0x7b3   : > { %3824 = vrot.lane.b32.xlu1 %v8382_v47, %s7050_s0 }
 0x7b6   : > { %3842 = vrot.lane.b32.xlu0 %v8376_v59, %s7051_s15 }
 0x7b7   : > { %3844 = vrot.lane.b32.xlu1 %v8380_v41, %s7051_s15 }
 0x7ba   : > { %3846 = vrot.lane.b32.xlu0 %v8378_v52, %s7051_s15 }
 0x7bb   : > { %3848 = vrot.lane.b32.xlu1 %v8382_v47, %s7051_s15 }
 0x7be   : > { %3870 = vrot.lane.b32.xlu0 %v8376_v59, %s7052_s1 }
 0x7bf   : > { %3872 = vrot.lane.b32.xlu1 %v8380_v41, %s7052_s1 }
 0x7c2   : > { %3874 = vrot.lane.b32.xlu0 %v8378_v52, %s7052_s1 }
 0x7c3   : > { %3876 = vrot.lane.b32.xlu1 %v8382_v47, %s7052_s1 }
 0x7c6   : > { %3894 = vrot.lane.b32.xlu0 %v8376_v59, %s7053_s17 }
 0x7c7   : > { %3896 = vrot.lane.b32.xlu1 %v8380_v41, %s7053_s17 }
 0x7ca   : > { %3898 = vrot.lane.b32.xlu0 %v8378_v52, %s7053_s17 }
 0x7cb   : > { %3900 = vrot.lane.b32.xlu1 %v8382_v47, %s7053_s17 }
 0x7ce   : > { %3918 = vrot.lane.b32.xlu0 %v8376_v59, %s8973_s25 }
 0x7cf   : > { %3920 = vrot.lane.b32.xlu1 %v8380_v41, %s8973_s25 }
 0x7d2   : > { %3922 = vrot.lane.b32.xlu0 %v8378_v52, %s8973_s25 }
 0x7d3   : > { %3924 = vrot.lane.b32.xlu1 %v8382_v47, %s8973_s25 }
 0x7d6   : > { %3942 = vrot.lane.b32.xlu0 %v8376_v59, %s8974_s14 }
 0x7d7   : > { %3944 = vrot.lane.b32.xlu1 %v8380_v41, %s8974_s14 }
 0x7da   : > { %3946 = vrot.lane.b32.xlu0 %v8378_v52, %s8974_s14 }
 0x7db   : > { %3948 = vrot.lane.b32.xlu1 %v8382_v47, %s8974_s14  ;;  %s8977_s14 = sld [smem:[#allocation27_spill]] }
 0x810   : > { %v3771_v44 = vpop.permute.xlu0 %3770 }
 0x811   : > { %v3773_v40 = vpop.permute.xlu1 %3772 }
 0x812   : > { %v3780_v5 = vsel %vm2615_vm7, %v3771_v44, %v3773_v40 }
 0x813   : > { %v3787_v4 = vmul.f32 %v3780_v5, %v7920_v22  ;;  %v3854_v5 = vld [vmem:[#allocation8 + $0x60] sm:$0xff] }
 0x814   : > { %v3775_v61 = vpop.permute.xlu0 %3774 }
 0x815   : > { %v3779_v38 = vsel %vm2615_vm7, %v3773_v40, %v3775_v61  ;;  %v3777_v62 = vpop.permute.xlu1 %3776 }
 0x816   : > { %v3788_v7 = vmul.f32 %v3779_v38, %v7922_v23  ;;  %v3778_v35 = vsel %vm2615_vm7, %v3775_v61, %v3777_v62  ;;  %v3781_v11 = vsel %vm2615_vm7, %v3777_v62, %v3771_v44  ;;  %v3856_v44 = vld [vmem:[#allocation8 + $0x70] sm:$0xff] }
 0x817   : > { %v3786_v14 = vmul.f32 %v3782_v2, %v3781_v11  ;;  %v3789_v20 = vmul.f32 %v3785_v27, %v3778_v35 }
 0x818   : > { %v3795_v21 = vpop.permute.xlu0 %3794 }
 0x819   : > { %v3797_v22 = vpop.permute.xlu1 %3796 }
 0x81a   : > { %v3804_v13 = vsel %vm2640_vm8, %v3795_v21, %v3797_v22 }
 0x81b   : > { %v3811_v46 = vmul.f32 %v3807_v53, %v3804_v13 }
 0x81c   : > { %v3799_v18 = vpop.permute.xlu0 %3798 }
 0x81d   : > { %v3803_v23 = vsel %vm2640_vm8, %v3797_v22, %v3799_v18  ;;  %v3801_v24 = vpop.permute.xlu1 %3800  ;;  %v6441_v63 = vpack.c.bf16 %v3811_v46, %v3787_v4  ;;  %v3857_v4 = vld [vmem:[#allocation8 + $0x78] sm:$0xff] }
 0x81e   : > { %v3812_v0 = vmul.f32 %v3808_v8, %v3803_v23  ;;  %v3802_v56 = vsel %vm2640_vm8, %v3799_v18, %v3801_v24  ;;  %v3805_v17 = vsel %vm2640_vm8, %v3801_v24, %v3795_v21  ;;  %v3883_v18 = vld [vmem:[#allocation8 + $0xa8] sm:$0xff]  ;;  %v3885_v23 = vld [vmem:[#allocation8 + $0xb8] sm:$0xff] }
 0x81f   : > { %v3810_v49 = vmul.f32 %v3806_v34, %v3805_v17  ;;  %v3813_v25 = vmul.f32 %v3809_v16, %v3802_v56  ;;  %6442 = vmatprep.subr.bf16.mxu0 %v6441_v63  ;;  %v3884_v16 = vld [vmem:[#allocation8 + $0xb0] sm:$0xff] }
 0x820   : > { %v3819_v37 = vpop.permute.xlu0 %3818  ;;  %v6465_v60 = vpack.c.bf16 %v3812_v0, %v3788_v7 }
 0x821   : > { %v3821_v31 = vpop.permute.xlu1 %3820  ;;  %v6443_v57 = vpack.c.bf16 %v3810_v49, %v3786_v14  ;;  %v6463_v39 = vpack.c.bf16 %v3813_v25, %v3789_v20  ;;  %v3882_v20 = vld [vmem:[#allocation8 + $0xa0] sm:$0xff] }
 0x822   : > { %v3828_v3 = vsel %vm2665_vm9, %v3819_v37, %v3821_v31 }
 0x823   : > { %v3835_v29 = vmul.f32 %v3831_v30, %v3828_v3  ;;  %6444 = vmatpush1.bf16.msra.mxu0 %v6443_v57  ;;  %6464 = vmatprep.subr.bf16.mxu1 %v6463_v39  ;;  %v3906_v30 = vld [vmem:[#allocation8 + $0xc0] sm:$0xff] }
 0x824   : > { %v3823_v1 = vpop.permute.xlu0 %3822  ;;  %6466 = vmatpush1.bf16.msra.mxu1 %v6465_v60 }
 0x825   : > { %v3827_v45 = vsel %vm2665_vm9, %v3821_v31, %v3823_v1  ;;  %v3825_v9 = vpop.permute.xlu1 %3824 }
 0x826   : > { %v3836_v15 = vmul.f32 %v3832_v48, %v3827_v45  ;;  %v3826_v26 = vsel %vm2665_vm9, %v3823_v1, %v3825_v9  ;;  %v3829_v28 = vsel %vm2665_vm9, %v3825_v9, %v3819_v37  ;;  %v3907_v1 = vld [vmem:[#allocation8 + $0xc8] sm:$0xff]  ;;  %v3909_v45 = vld [vmem:[#allocation8 + $0xd8] sm:$0xff] }
 0x827   : > { %v3834_v32 = vmul.f32 %v3830_v6, %v3829_v28  ;;  %v3837_v33 = vmul.f32 %v3833_v55, %v3826_v26  ;;  %v3908_v55 = vld [vmem:[#allocation8 + $0xd0] sm:$0xff] }
 0x828   : > { %v3843_v50 = vpop.permute.xlu0 %3842 }
 0x829   : > { %v3845_v43 = vpop.permute.xlu1 %3844 }
 0x82a   : > { %v3852_v54 = vsel %vm2690_vm10, %v3843_v50, %v3845_v43 }
 0x82b   : > { %v3859_v58 = vmul.f32 %v3855_v36, %v3852_v54 }
 0x82c   : > { %v3847_v40 = vpop.permute.xlu0 %3846 }
 0x82d   : > { %v3851_v61 = vsel %vm2690_vm10, %v3845_v43, %v3847_v40  ;;  %v3849_v2 = vpop.permute.xlu1 %3848  ;;  %v6445_v27 = vpack.c.bf16 %v3859_v58, %v3835_v29  ;;  %v3931_v43 = vld [vmem:[#allocation8 + $0xe8] sm:$0xff]  ;;  %v3932_v58 = vld [vmem:[#allocation8 + $0xf0] sm:$0xff] }
 0x82e   : > { %v3860_v38 = vmul.f32 %v3856_v44, %v3851_v61  ;;  %v3850_v62 = vsel %vm2690_vm10, %v3847_v40, %v3849_v2  ;;  %v3853_v7 = vsel %vm2690_vm10, %v3849_v2, %v3843_v50  ;;  %v3933_v44 = vld [vmem:[#allocation8 + $0xf8] sm:$0xff] }
 0x82f   : > { %v3858_v35 = vmul.f32 %v3854_v5, %v3853_v7  ;;  %v3861_v11 = vmul.f32 %v3857_v4, %v3850_v62  ;;  %6446 = vmatprep.subr.bf16.mxu0 %v6445_v27  ;;  %v3954_v7 = vld [vmem:[#allocation8 + $0x100] sm:$0xff] }
 0x830   : > { %v3871_v14 = vpop.permute.xlu0 %3870  ;;  %v6469_v46 = vpack.c.bf16 %v3860_v38, %v3836_v15 }
 0x831   : > { %v3873_v21 = vpop.permute.xlu1 %3872  ;;  %v6447_v53 = vpack.c.bf16 %v3858_v35, %v3834_v32  ;;  %v6467_v22 = vpack.c.bf16 %v3861_v11, %v3837_v33  ;;  %v3930_v32 = vld [vmem:[#allocation8 + $0xe0] sm:$0xff] }
 0x832   : > { %v3880_v13 = vsel %vm2719_vm11, %v3871_v14, %v3873_v21 }
 0x833   : > { %v3886_v8 = vmul.f32 %v3882_v20, %v3880_v13  ;;  %6448 = vmatpush1.bf16.msra.mxu0 %v6447_v53  ;;  %6468 = vmatprep.subr.bf16.mxu1 %v6467_v22  ;;  %v3955_v13 = vld [vmem:[#allocation8 + $0x108] sm:$0xff] }
 0x834   : > { %v3875_v34 = vpop.permute.xlu0 %3874  ;;  %6470 = vmatpush1.bf16.msra.mxu1 %v6469_v46 }
 0x835   : > { %v3879_v24 = vsel %vm2719_vm11, %v3873_v21, %v3875_v34  ;;  %v3877_v63 = vpop.permute.xlu1 %3876  ;;  %v6451_v39 = vpack.c.bf16 %v3886_v8, %v8376_v59  ;;  %v3956_v8 = vld [vmem:[#allocation8 + $0x110] sm:$0xff] }
 0x836   : > { %v3887_v0 = vmul.f32 %v3883_v18, %v3879_v24  ;;  %v3878_v56 = vsel %vm2719_vm11, %v3875_v34, %v3877_v63  ;;  %v3881_v17 = vsel %vm2719_vm11, %v3877_v63, %v3871_v14  ;;  %v3957_v18 = vld [vmem:[#allocation8 + $0x118] sm:$0xff]  ;;  %v4005_v34 = vld [vmem:[#allocation2 + $0x128] sm:$0x1]  ;;  %v4007_v63 = vld [vmem:[#allocation2 + $0x138] sm:$0x1] }
 0x837   : > { %v3888_v49 = vmul.f32 %v3884_v16, %v3878_v56  ;;  %v3889_v25 = vmul.f32 %v3885_v23, %v3881_v17  ;;  %v4004_v16 = vld [vmem:[#allocation2 + $0x120] sm:$0x1]  ;;  %v4194_v56 = vld [vmem:[%s8927_s5 + $0x88] sm:$0xff] }
 0x838   : > { %v3895_v37 = vpop.permute.xlu0 %3894  ;;  %v6449_v31 = vpack.c.bf16 %v3887_v0, %v8380_v41  ;;  %v4193_v0 = vld [vmem:[%s8927_s5 + $0x80] sm:$0xff] }
 0x839   : > { %v3897_v57 = vpop.permute.xlu1 %3896  ;;  %v6471_v3 = vpack.c.bf16 %v3889_v25, %v8382_v47  ;;  %v6473_v60 = vpack.c.bf16 %v3888_v49, %v8378_v52 }
 0x83a   : > { %v3904_v29 = vsel %vm2744_vm12, %v3895_v37, %v3897_v57  ;;  %6450 = vmatprep.subr.bf16.mxu0 %v6449_v31  ;;  %v4226_v31 = vld [vmem:[%s8927_s5 + $0x188] sm:$0xff] }
 0x83b   : > { %v3910_v48 = vmul.f32 %v3906_v30, %v3904_v29  ;;  %6452 = vmatpush1.bf16.msra.mxu0 %v6451_v39  ;;  %6472 = vmatprep.subr.bf16.mxu1 %v6471_v3  ;;  %v4225_v30 = vld [vmem:[%s8927_s5 + $0x180] sm:$0xff] }
 0x83c   : > { %v3899_v6 = vpop.permute.xlu0 %3898  ;;  %6474 = vmatpush1.bf16.msra.mxu1 %v6473_v60  ;;  %v8530_v60 = vpack.c.bf16 %v4194_v56, %v4193_v0  ;;  %v4177_v29 = vld [vmem:[%s8927_s5] sm:$0xff] }
 0x83d   : > { %v3903_v41 = vsel %vm2744_vm12, %v3897_v57, %v3899_v6  ;;  %v3901_v59 = vpop.permute.xlu1 %3900 }
 0x83e   : > { %v3911_v9 = vmul.f32 %v3907_v1, %v3903_v41  ;;  %v3902_v52 = vsel %vm2744_vm12, %v3899_v6, %v3901_v59  ;;  %v3905_v47 = vsel %vm2744_vm12, %v3901_v59, %v3895_v37  ;;  %v4006_v37 = vld [vmem:[#allocation2 + $0x130] sm:$0x1]  ;;  %v4210_v41 = vld [vmem:[%s8927_s5 + $0x108] sm:$0xff] }
 0x83f   : > { %v3912_v15 = vmul.f32 %v3908_v55, %v3902_v52  ;;  %v3913_v26 = vmul.f32 %v3909_v45, %v3905_v47  ;;  %v8541_v45 = vpack.c.bf16 %v4226_v31, %v4225_v30  ;;  %v4195_v59 = vld [vmem:[%s8927_s5 + $0x90] sm:$0xff]  ;;  %v4228_v47 = vld [vmem:[%s8927_s5 + $0x198] sm:$0xff]  ;;  %v4218_v31 = vld [vmem:[%s8927_s5 + $0x148] sm:$0xff] }
 0x840   : > { %v3919_v28 = vpop.permute.xlu0 %3918  ;;  %v4227_v52 = vld [vmem:[%s8927_s5 + $0x190] sm:$0xff] }
 0x841   : > { %v3921_v33 = vpop.permute.xlu1 %3920  ;;  %v8586_v19 = vpack.c.bf16 %v4228_v47, %v4227_v52  ;;  %v4205_v52 = vld [vmem:[%s8927_s5 + $0xe0] sm:$0xff]  ;;  %v4206_v47 = vld [vmem:[%s8927_s5 + $0xe8] sm:$0xff] }
 0x842   : > { %v3928_v50 = vsel %vm2769_vm13, %v3919_v28, %v3921_v33 }
 0x843   : > { %v3934_v36 = vmul.f32 %v3930_v32, %v3928_v50  ;;  %v4180_v50 = vld [vmem:[%s8927_s5 + $0x18] sm:$0xff] }
 0x844   : > { %v3923_v54 = vpop.permute.xlu0 %3922 }
 0x845   : > { %v3927_v40 = vsel %vm2769_vm13, %v3921_v33, %v3923_v54  ;;  %v3925_v5 = vpop.permute.xlu1 %3924  ;;  %v6455_v14 = vpack.c.bf16 %v3934_v36, %v3910_v48  ;;  %v4209_v48 = vld [vmem:[%s8927_s5 + $0x100] sm:$0xff]  ;;  %v4179_v33 = vld [vmem:[%s8927_s5 + $0x10] sm:$0xff] }
 0x846   : > { %v3935_v4 = vmul.f32 %v3931_v43, %v3927_v40  ;;  %v3926_v61 = vsel %vm2769_vm13, %v3923_v54, %v3925_v5  ;;  %v3929_v2 = vsel %vm2769_vm13, %v3925_v5, %v3919_v28  ;;  %v8572_v28 = vpack.c.bf16 %v4210_v41, %v4209_v48  ;;  %v4211_v36 = vld [vmem:[%s8927_s5 + $0x110] sm:$0xff]  ;;  %v4212_v43 = vld [vmem:[%s8927_s5 + $0x118] sm:$0xff]  ;;  %v4197_v54 = vld [vmem:[%s8927_s5 + $0xa0] sm:$0xff] }
 0x847   : > { %v3936_v27 = vmul.f32 %v3932_v58, %v3926_v61  ;;  %v3937_v38 = vmul.f32 %v3933_v44, %v3929_v2  ;;  %v4198_v58 = vld [vmem:[%s8927_s5 + $0xa8] sm:$0xff]  ;;  %v4229_v44 = vld [vmem:[%s8927_s5 + $0x1a0] sm:$0xff]  ;;  %v8606_v5 = vpack.c.bf16 %v4180_v50, %v4179_v33  ;;  %v4219_v41 = vld [vmem:[%s8927_s5 + $0x150] sm:$0xff] }
 0x848   : > { %v3943_v62 = vpop.permute.xlu0 %3942  ;;  %v6453_v35 = vpack.c.bf16 %v3935_v4, %v3911_v9  ;;  %v4196_v9 = vld [vmem:[%s8927_s5 + $0x98] sm:$0xff]  ;;  %v4230_v40 = vld [vmem:[%s8927_s5 + $0x1a8] sm:$0xff]  ;;  %v8610_v4 = vpack.c.bf16 %v4212_v43, %v4211_v36  ;;  %v8612_v61 = vpack.c.bf16 %v4198_v58, %v4197_v54  ;;  %v4181_v2 = vld [vmem:[%s8927_s5 + $0x20] sm:$0xff]  ;;  %v8756_v43 = vpack.c.bf16 %v4206_v47, %v4205_v52 }
 0x849   : > { %v3945_v11 = vpop.permute.xlu1 %3944  ;;  %v6475_v20 = vpack.c.bf16 %v3937_v38, %v3913_v26  ;;  %v6477_v21 = vpack.c.bf16 %v3936_v27, %v3912_v15  ;;  %v3761_v15 = vld [vmem:[%s8975_s21] sm:$0xff]  ;;  %v8567_v26 = vpack.c.bf16 %v4178_v12, %v4177_v29  ;;  %v8574_v32 = vpack.c.bf16 %v4196_v9, %v4195_v59  ;;  %v4182_v27 = vld [vmem:[%s8927_s5 + $0x28] sm:$0xff]  ;;  %v4236_v29 = vld [vmem:[%s8927_s5 + $0x1d8] sm:$0xff]  ;;  %s8978_s21 = sld [smem:[#allocation28_spill]] }
 0x84a   : > { %v3952_v53 = vsel %vm2794_vm14, %v3943_v62, %v3945_v11  ;;  %6454 = vmatprep.subr.bf16.mxu0 %v6453_v35  ;;  %v4213_v38 = vld [vmem:[%s8927_s5 + $0x120] sm:$0xff]  ;;  %v4199_v35 = vld [vmem:[%s8927_s5 + $0xb0] sm:$0xff]  ;;  %v4220_v9 = vld [vmem:[%s8927_s5 + $0x158] sm:$0xff] }
 0x84b   : > { %v3958_v22 = vmul.f32 %v3954_v7, %v3952_v53  ;;  %6456 = vmatpush1.bf16.msra.mxu0 %v6455_v14  ;;  %6476 = vmatprep.subr.bf16.mxu1 %v6475_v20  ;;  %v4214_v7 = vld [vmem:[%s8927_s5 + $0x128] sm:$0xff]  ;;  %v4231_v14 = vld [vmem:[%s8927_s5 + $0x1b0] sm:$0xff]  ;;  %v4232_v20 = vld [vmem:[%s8927_s5 + $0x1b8] sm:$0xff]  ;;  %v8754_v36 = vpack.c.bf16 %v4220_v9, %v4219_v41 }
 0x84c   : > { %v3947_v46 = vpop.permute.xlu0 %3946  ;;  %6478 = vmatpush1.bf16.msra.mxu1 %v6477_v21  ;;  %v8642_v21 = vpack.c.bf16 %v4182_v27, %v4181_v2  ;;  %v8646_v53 = vpack.c.bf16 %v4214_v7, %v4213_v38  ;;  %v4238_v33 = vld [vmem:[%s8927_s5 + $0x1e8] sm:$0xff]  ;;  %v4189_v54 = vld [vmem:[%s8927_s5 + $0x60] sm:$0xff]  ;;  %v4207_v7 = vld [vmem:[%s8927_s5 + $0xf0] sm:$0xff] }
 0x84d   : > { %v3951_v23 = vsel %vm2794_vm14, %v3945_v11, %v3947_v46  ;;  %v3949_v24 = vpop.permute.xlu1 %3948  ;;  %v6460_v1 = vpack.c.bf16 %v4004_v16, %v3958_v22  ;;  %v4200_v11 = vld [vmem:[%s8927_s5 + $0xb8] sm:$0xff]  ;;  %v4201_v16 = vld [vmem:[%s8927_s5 + $0xc0] sm:$0xff]  ;;  %v4190_v58 = vld [vmem:[%s8927_s5 + $0x68] sm:$0xff] }
 0x84e   : > { %v3959_v17 = vmul.f32 %v3955_v13, %v3951_v23  ;;  %v3950_v49 = vsel %vm2794_vm14, %v3947_v46, %v3949_v24  ;;  %v3953_v25 = vsel %vm2794_vm14, %v3949_v24, %v3943_v62  ;;  %v8624_v62 = vpack.c.bf16 %v4230_v40, %v4229_v44  ;;  %v4183_v13 = vld [vmem:[%s8927_s5 + $0x30] sm:$0xff]  ;;  %v4184_v46 = vld [vmem:[%s8927_s5 + $0x38] sm:$0xff]  ;;  %v4202_v23 = vld [vmem:[%s8927_s5 + $0xc8] sm:$0xff] }
 0x84f   : > { %v3960_v57 = vmul.f32 %v3956_v8, %v3950_v49  ;;  %v3961_v39 = vmul.f32 %v3957_v18, %v3953_v25  ;;  %v8648_v22 = vpack.c.bf16 %v4200_v11, %v4199_v35  ;;  %v4215_v8 = vld [vmem:[%s8927_s5 + $0x130] sm:$0xff]  ;;  %v8660_v18 = vpack.c.bf16 %v4232_v20, %v4231_v14  ;;  %v4233_v24 = vld [vmem:[%s8927_s5 + $0x1c0] sm:$0xff]  ;;  %v4186_v25 = vld [vmem:[%s8927_s5 + $0x48] sm:$0xff]  ;;  %s718_s4 = scalar_lea.vmem %s8978_s21, %s5176_s22 }
 0x850   : > { %v6457_v3 = vpack.c.bf16 %v4005_v34, %v3959_v17  ;;  %v4216_v34 = vld [vmem:[%s8927_s5 + $0x138] sm:$0xff]  ;;  %v8678_v0 = vpack.c.bf16 %v4184_v46, %v4183_v13  ;;  %v8684_v17 = vpack.c.bf16 %v4202_v23, %v4201_v16  ;;  %v4185_v49 = vld [vmem:[%s8927_s5 + $0x40] sm:$0xff]  ;;  %v4222_v2 = vld [vmem:[%s8927_s5 + $0x168] sm:$0xff]  ;;  %v8774_v27 = vpack.c.bf16 %v4190_v58, %v4189_v54 }
 0x851   : > { %v6479_v6 = vpack.c.bf16 %v4007_v63, %v3961_v39  ;;  %v6482_v55 = vpack.c.bf16 %v4006_v37, %v3960_v57  ;;  %v4234_v63 = vld [vmem:[%s8927_s5 + $0x1c8] sm:$0xff]  ;;  %v8682_v56 = vpack.c.bf16 %v4216_v34, %v4215_v8  ;;  %v4217_v37 = vld [vmem:[%s8927_s5 + $0x140] sm:$0xff]  ;;  %v4203_v57 = vld [vmem:[%s8927_s5 + $0xd0] sm:$0xff]  ;;  %v8714_v12 = vpack.c.bf16 %v4186_v25, %v4185_v49 }
 0x852   : > { %6459 = vmatprep.subr.msk.bf16.mxu0 %vm8005_vm0, %v6457_v3  ;;  %v8696_v30 = vpack.c.bf16 %v4234_v63, %v4233_v24  ;;  %v4204_v39 = vld [vmem:[%s8927_s5 + $0xd8] sm:$0xff]  ;;  %v4235_v3 = vld [vmem:[%s8927_s5 + $0x1d0] sm:$0xff]  ;;  %v8718_v48 = vpack.c.bf16 %v4218_v31, %v4217_v37  ;;  %v4221_v40 = vld [vmem:[%s8927_s5 + $0x160] sm:$0xff] }
 0x853   : > { %6462 = vmatpush1.bf16.msk.msra.mxu0 %vm8005_vm0, %v6460_v1  ;;  %6481 = vmatprep.subr.msk.bf16.mxu1 %vm8005_vm0, %v6479_v6  ;;  %v8720_v1 = vpack.c.bf16 %v4204_v39, %v4203_v57  ;;  %v4187_v6 = vld [vmem:[%s8927_s5 + $0x50] sm:$0xff]  ;;  %v8732_v59 = vpack.c.bf16 %v4236_v29, %v4235_v3  ;;  %v8778_v38 = vpack.c.bf16 %v4222_v2, %v4221_v40  ;;  %v4208_v35 = vld [vmem:[%s8927_s5 + $0xf8] sm:$0xff] }
 0x854   : > { %6484 = vmatpush1.bf16.msk.msra.mxu1 %vm8005_vm0, %v6482_v55  ;;  %6486 = vmatprep.subr.bf16.mxu0 %v8530_v60  ;;  %v4188_v55 = vld [vmem:[%s8927_s5 + $0x58] sm:$0xff]  ;;  %v8789_v11 = vpack.c.bf16 %v4208_v35, %v4207_v7  ;;  %v4191_v14 = vld [vmem:[%s8927_s5 + $0x70] sm:$0xff] }
 0x855   : > { %6518 = vmatprep.subr.bf16.mxu1 %v8541_v45  ;;  %v8750_v50 = vpack.c.bf16 %v4188_v55, %v4187_v6  ;;  %v4192_v20 = vld [vmem:[%s8927_s5 + $0x78] sm:$0xff]  ;;  %v4239_v13 = vld [vmem:[%s8927_s5 + $0x1f0] sm:$0xff] }
 0x856   : > { %5155 = vmatmul.mubr.msk.f32.vlgmr.msra.gmra.mrb[22].mxu0 %vm2858_vm2, %v3761_v15  ;;  %v6515_v46 = vpack.c.bf16 %v4192_v20, %v4191_v14  ;;  %v4240_v8 = vld [vmem:[%s8927_s5 + $0x1f8] sm:$0xff]  ;;  %v4223_v34 = vld [vmem:[%s8927_s5 + $0x170] sm:$0xff] }
 0x857   : > { %5158 = vmatmul.mubr.msk.f32.vlgmr.msra.gmra.mrb[22].mxu1 %vm2858_vm2, %v3761_v15  ;;  %6488 = vmatpush3.bf16.msra.mxu0 %v8567_v26  ;;  %v4237_v15 = vld [vmem:[%s8927_s5 + $0x1e0] sm:$0xff]  ;;  %v4224_v16 = vld [vmem:[%s8927_s5 + $0x178] sm:$0xff]  ;;  %v6545_v23 = vpack.c.bf16 %v4240_v8, %v4239_v13 }
 0x858   : > { %6520 = vmatpush3.bf16.msra.mxu1 %v8572_v28  ;;  %6490 = vmatprep.subr.bf16.mxu0 %v8574_v32  ;;  %v8765_v44 = vpack.c.bf16 %v4238_v33, %v4237_v15  ;;  %v6547_v24 = vpack.c.bf16 %v4224_v16, %v4223_v34 }
 0x859   : > { %6522 = vmatprep.subr.bf16.mxu1 %v8586_v19 }
 0x85b   : > { %6492 = vmatpush3.bf16.msra.mxu0 %v8606_v5 }
 0x85c   : > { %6524 = vmatpush3.bf16.msra.mxu1 %v8610_v4  ;;  %6494 = vmatprep.subr.bf16.mxu0 %v8612_v61 }
 0x85d   : > { %6526 = vmatprep.subr.bf16.mxu1 %v8624_v62 }
 0x85f   : > { %6496 = vmatpush3.bf16.msra.mxu0 %v8642_v21 }
 0x860   : > { %6528 = vmatpush3.bf16.msra.mxu1 %v8646_v53  ;;  %6498 = vmatprep.subr.bf16.mxu0 %v8648_v22 }
 0x861   : > { %6530 = vmatprep.subr.bf16.mxu1 %v8660_v18 }
 0x863   : > { %6500 = vmatpush3.bf16.msra.mxu0 %v8678_v0 }
 0x864   : > { %6532 = vmatpush3.bf16.msra.mxu1 %v8682_v56  ;;  %6502 = vmatprep.subr.bf16.mxu0 %v8684_v17 }
 0x865   : > { %6534 = vmatprep.subr.bf16.mxu1 %v8696_v30 }
 0x867   : > { %6504 = vmatpush3.bf16.msra.mxu0 %v8714_v12 }
 0x868   : > { %6536 = vmatpush3.bf16.msra.mxu1 %v8718_v48  ;;  %6506 = vmatprep.subr.bf16.mxu0 %v8720_v1 }
 0x869   : > { %6538 = vmatprep.subr.bf16.mxu1 %v8732_v59 }
 0x86b   : > { %6508 = vmatpush3.bf16.msra.mxu0 %v8750_v50 }
 0x86c   : > { %6540 = vmatpush3.bf16.msra.mxu1 %v8754_v36  ;;  %6510 = vmatprep.subr.bf16.mxu0 %v8756_v43 }
 0x86d   : > { %6542 = vmatprep.subr.bf16.mxu1 %v8765_v44 }
 0x86f   : > { %6512 = vmatpush3.bf16.msra.mxu0 %v8774_v27 }
 0x870   : > { %6544 = vmatpush3.bf16.msra.mxu1 %v8778_v38  ;;  %6514 = vmatprep.subr.bf16.mxu0 %v8789_v11 }
 0x871   : > { %6546 = vmatprep.subr.bf16.mxu1 %v6545_v23 }
 0x873   : > { %6516 = vmatpush3.bf16.msra.mxu0 %v6515_v46 }
 0x874   : > { %6550 = vmatprep.subr.bf16.mxu0 %v8530_v60  ;;  %6548 = vmatpush3.bf16.msra.mxu1 %v6547_v24 }
 0x875   : > { %6582 = vmatprep.subr.bf16.mxu1 %v8541_v45 }
 0x929   : > { %v4089_v63 = vpop.f32.mrb[22].mxu0 }
 0x92a   : > { %v4169_v49 = vmul.f32 0.01, %v4089_v63  ;;  %v4091_v25 = vpop.f32.mrb[23].mxu0  ;;  %v4160_v37 = vpop.f32.mrb[22].mxu1  ;;  %vm4165_vm7 = vcmp.ge.f32.partialorder %v4089_v63, 0.0 }
 0x92b   : > { %vm4166_vm8 = vcmp.ge.f32.partialorder %v4091_v25, 0.0  ;;  %v4170_v31 = vmul.f32 0.01, %v4091_v25  ;;  %v4171_v57 = vmul.f32 0.01, %v4160_v37  ;;  %v4162_v39 = vpop.f32.mrb[23].mxu1 }
 0x92c   : > { %vm4167_vm9 = vcmp.ge.f32.partialorder %v4160_v37, 0.0  ;;  %vm4168_vm10 = vcmp.ge.f32.partialorder %v4162_v39, 0.0  ;;  %v4172_v3 = vmul.f32 0.01, %v4162_v39  ;;  %v8815_v60 = vsel %vm4165_vm7, %v4089_v63, %v4169_v49  ;;  %v3762_v49 = vld [vmem:[%s8976_s20] sm:$0xff] }
 0x92d   : > { %v8812_v29 = vsel %vm4166_vm8, %v4091_v25, %v4170_v31  ;;  %v8824_v55 = vsel %vm4167_vm9, %v4160_v37, %v4171_v57  ;;  %v3764_v37 = vld [vmem:[%s8976_s20 + $0x10] sm:$0xff] }
 0x92e   : > { %4305 = vmatprep.mubr.f32.mxu0 %v8812_v29  ;;  %v4389_v45 = vmul.f32 %v8812_v29, %v8812_v29  ;;  %v8820_v6 = vsel %vm4168_vm10, %v4162_v39, %v4172_v3  ;;  %v3763_v3 = vld [vmem:[%s8976_s20 + $0x8] sm:$0xff] }
 0x92f   : > { %4306 = vmatmul.mubr.f32.vlgmr.msra.gmra.mrb[24].mxu0 %v8815_v60  ;;  %4375 = vmatprep.mubr.f32.mxu1 %v8820_v6  ;;  %v4391_v41 = vmul.f32 %v8820_v6, %v8820_v6 }
 0x930   : > { %6552 = vmatpush3.bf16.msra.mxu0 %v8567_v26  ;;  %4376 = vmatmul.mubr.f32.vlgmr.msra.gmra.mrb[24].mxu1 %v8824_v55  ;;  %v4388_v26 = vmul.f32 %v8815_v60, %v8815_v60 }
 0x931   : > { %4456 = vmatprep.mubr.f32.mxu0 %v4389_v45  ;;  %6584 = vmatpush3.bf16.msra.mxu1 %v8572_v28  ;;  %v4390_v28 = vmul.f32 %v8824_v55, %v8824_v55 }
 0x932   : > { %4526 = vmatprep.mubr.f32.mxu1 %v4391_v41  ;;  %6554 = vmatprep.subr.bf16.mxu0 %v8574_v32  ;;  %v4545_v32 = vld [vmem:[#allocation7] sm:$0xff]  ;;  %v3765_v41 = vld [vmem:[%s8976_s20 + $0x18] sm:$0xff] }
 0x933   : > { %6586 = vmatprep.subr.bf16.mxu1 %v8586_v19  ;;  %v4547_v19 = vcombine.high %v4545_v32, %v4545_v32 }
 0x934   : > { %6556 = vmatpush3.bf16.msra.mxu0 %v8606_v5  ;;  %v4554_v5 = vrot.slane %v4545_v32, %v7756_v51 }
 0x935   : > { %6558 = vmatprep.subr.bf16.mxu0 %v8612_v61  ;;  %6588 = vmatpush3.bf16.msra.mxu1 %v8610_v4  ;;  %v4561_v4 = vrot.slane %v4547_v19, %v7756_v51 }
 0x936   : > { %6590 = vmatprep.subr.bf16.mxu1 %v8624_v62  ;;  %v4562_v61 = vcombine.high %v4554_v5, %v4554_v5 }
 0x937   : > { %v4563_v62 = vcombine.high %v4561_v4, %v4561_v4 }
 0x938   : > { %6560 = vmatpush3.bf16.msra.mxu0 %v8642_v21 }
 0x939   : > { %6562 = vmatprep.subr.bf16.mxu0 %v8648_v22  ;;  %6592 = vmatpush3.bf16.msra.mxu1 %v8646_v53 }
 0x93a   : > { %6594 = vmatprep.subr.bf16.mxu1 %v8660_v18 }
 0x93c   : > { %6564 = vmatpush3.bf16.msra.mxu0 %v8678_v0 }
 0x93d   : > { %6566 = vmatprep.subr.bf16.mxu0 %v8684_v17  ;;  %6596 = vmatpush3.bf16.msra.mxu1 %v8682_v56 }
 0x93e   : > { %6598 = vmatprep.subr.bf16.mxu1 %v8696_v30 }
 0x940   : > { %6568 = vmatpush3.bf16.msra.mxu0 %v8714_v12 }
 0x941   : > { %6570 = vmatprep.subr.bf16.mxu0 %v8720_v1  ;;  %6600 = vmatpush3.bf16.msra.mxu1 %v8718_v48 }
 0x942   : > { %6602 = vmatprep.subr.bf16.mxu1 %v8732_v59 }
 0x944   : > { %6572 = vmatpush3.bf16.msra.mxu0 %v8750_v50 }
 0x945   : > { %6574 = vmatprep.subr.bf16.mxu0 %v8756_v43  ;;  %6604 = vmatpush3.bf16.msra.mxu1 %v8754_v36 }
 0x946   : > { %6606 = vmatprep.subr.bf16.mxu1 %v8765_v44 }
 0x948   : > { %6576 = vmatpush3.bf16.msra.mxu0 %v8774_v27 }
 0x949   : > { %6578 = vmatprep.subr.bf16.mxu0 %v8789_v11  ;;  %6608 = vmatpush3.bf16.msra.mxu1 %v8778_v38 }
 0x94a   : > { %6610 = vmatprep.subr.bf16.mxu1 %v6545_v23 }
 0x94c   : > { %6580 = vmatpush3.bf16.msra.mxu0 %v6515_v46 }
 0x94d   : > { %6612 = vmatpush3.bf16.msra.mxu1 %v6547_v24  ;;  %5159 = vmatprep.subr.msk.mxu0 %vm2228_vm1, %v4562_v61 }
 0x94e   : > { %5162 = vmatprep.subr.msk.mxu1 %vm2228_vm1, %v4563_v62 }
 0x94f   : > { %4457 = vmatmul.mubr.f32.vlgmr.msra.gmra.mrb[26].mxu0 %v4388_v26 }
 0x950   : > { %4639 = vmatprep.mubr.f32.mxu0 %v7046_v10  ;;  %4527 = vmatmul.mubr.f32.vlgmr.msra.gmra.mrb[26].mxu1 %v4390_v28 }
 0x951   : > { %4710 = vmatprep.mubr.f32.mxu1 %v7046_v10  ;;  %5160 = vmatpush1.msk.msra.mxu0 %vm2228_vm1, %v4554_v5 }
 0x952   : > { %5163 = vmatpush1.msk.msra.mxu1 %vm2228_vm1, %v4561_v4  ;;  %5165 = vmatprep.subr.msk.mxu0 %vm2228_vm1, %v4562_v61 }
 0x953   : > { %5168 = vmatprep.subr.msk.mxu1 %vm2228_vm1, %v4563_v62 }
 0xa02   : > { %v5489_v21 = vpop.f32.mrb[24].mxu0 }
 0xa03   : > { %v5490_v53 = vpop.f32.mrb[25].mxu0  ;;  %v5524_v18 = vpop.f32.mrb[24].mxu1 }
 0xa04   : > { %v5491_v22 = vadd.f32 %v5490_v53, %v5489_v21  ;;  %v5525_v0 = vpop.f32.mrb[25].mxu1  ;;  %v3766_v53 = vld [vmem:[%s8977_s14] sm:$0xff] }
 0xa05   : > { %v5526_v51 = vadd.f32 %v5525_v0, %v5524_v18 }
 0xa07   : > { %v4378_v56 = vadd.f32 %v5526_v51, %v5491_v22  ;;  %v3768_v22 = vld [vmem:[%s8977_s14 + $0x10] sm:$0xff] }
 0xa09   : > { %v4381_v17 = vsel %vm2224_vm4, %v4378_v56, 0.0 }
 0xa0a   : > { %v4382_v30 = vrot.slane %v4381_v17, 4 }
 0xa0c   : > { %v4383_v12 = vadd.f32 %v4382_v30, %v4381_v17 }
 0xa0e   : > { %v4384_v48 = vrot.slane %v4383_v12, 2 }
 0xa10   : > { %v4385_v1 = vadd.f32 %v4384_v48, %v4383_v12 }
 0xa12   : > { %v4386_v59 = vrot.slane %v4385_v1, 1 }
 0xa14   : > { %v4387_v9 = vadd.f32 %v4386_v59, %v4385_v1 }
 0xa16   : > { %v4539_v52 = vmul.f32 0.00048828125, %v4387_v9 }
 0xa18   : > { %5161 = vmatmul.mubr.msk.f32.vlgmr.msra.gmra.mrb[28].mxu0 %vm2224_vm4, %v4539_v52  ;;  %5164 = vmatmul.mubr.msk.f32.vlgmr.msra.gmra.mrb[28].mxu1 %vm2224_vm4, %v4539_v52  ;;  %v4541_v11 = vmul.f32 %v4539_v52, %v4539_v52 }
 0xa19   : > { %5166 = vmatpush1.msk.msra.mxu0 %vm2228_vm1, %v4554_v5  ;;  %5169 = vmatpush1.msk.msra.mxu1 %vm2228_vm1, %v4561_v4 }
 0xa1a   : > { %4784 = vmatprep.mubr.f32.mxu0 %v7046_v10  ;;  %4855 = vmatprep.mubr.f32.mxu1 %v7046_v10 }
 0xa22   : > { %v5559_v47 = vpop.f32.mrb[26].mxu0 }
 0xa23   : > { %v5560_v15 = vpop.f32.mrb[27].mxu0  ;;  %v5594_v50 = vpop.f32.mrb[26].mxu1 }
 0xa24   : > { %v5561_v33 = vadd.f32 %v5560_v15, %v5559_v47  ;;  %v5595_v36 = vpop.f32.mrb[27].mxu1 }
 0xa25   : > { %v5596_v43 = vadd.f32 %v5595_v36, %v5594_v50 }
 0xa27   : > { %v4529_v54 = vadd.f32 %v5596_v43, %v5561_v33 }
 0xa29   : > { %v4532_v58 = vsel %vm2224_vm4, %v4529_v54, 0.0 }
 0xa2a   : > { %v4533_v44 = vrot.slane %v4532_v58, 4 }
 0xa2c   : > { %v4534_v40 = vadd.f32 %v4533_v44, %v4532_v58 }
 0xa2e   : > { %v4535_v2 = vrot.slane %v4534_v40, 2 }
 0xa30   : > { %v4536_v27 = vadd.f32 %v4535_v2, %v4534_v40 }
 0xa32   : > { %v4537_v38 = vrot.slane %v4536_v27, 1 }
 0xa34   : > { %v4538_v7 = vadd.f32 %v4537_v38, %v4536_v27 }
 0xa36   : > { %v4540_v35 = vmul.f32 0.00048828125, %v4538_v7 }
 0xa38   : > { %v4542_v14 = vsub.f32 %v4540_v35, %v4541_v11 }
 0xa3a   : > { %v4543_v20 = vadd.f32 1e-05, %v4542_v14 }
 0xa3c   : > { %6749 = vrsqrt.f32 %v4543_v20 }
 0xa46   : > { %v6750_v10 = vpop.eup %6749 }
 0xa47   : > { %5167 = vmatmul.mubr.msk.f32.vlgmr.msra.gmra.mrb[30].mxu0 %vm2224_vm4, %v6750_v10  ;;  %5170 = vmatmul.mubr.msk.f32.vlgmr.msra.gmra.mrb[30].mxu1 %vm2224_vm4, %v6750_v10 }
 0xaeb   : > { %v4641_v13 = vpop.f32.mrb[28].mxu0  ;;  %v4712_v46 = vpop.f32.mrb[28].mxu1 }
 0xaec   : > { %v4643_v8 = vpop.f32.mrb[29].mxu0  ;;  %v4714_v34 = vpop.f32.mrb[29].mxu1  ;;  %v4865_v16 = vrot.slane %v4641_v13, %v7412_v42  ;;  %v4873_v23 = vrot.slane %v4712_v46, %v7412_v42 }
 0xaed   : > { %v4869_v24 = vrot.slane %v4643_v8, %v7412_v42  ;;  %v4877_v63 = vrot.slane %v4714_v34, %v7412_v42 }
 0xaee   : > { %v4878_v19 = vsub.f32 %v8815_v60, %v4865_v16  ;;  %v4880_v5 = vsub.f32 %v8824_v55, %v4873_v23  ;;  %v3767_v55 = vld [vmem:[%s8977_s14 + $0x8] sm:$0xff] }
 0xaef   : > { %v4879_v62 = vsub.f32 %v8812_v29, %v4869_v24  ;;  %v4881_v21 = vsub.f32 %v8820_v6, %v4877_v63  ;;  %v3769_v29 = vld [vmem:[%s8977_s14 + $0x18] sm:$0xff] }
 0xb1a   : > { %v4786_v25 = vpop.f32.mrb[30].mxu0  ;;  %v4857_v31 = vpop.f32.mrb[30].mxu1 }
 0xb1b   : > { %v4885_v57 = vrot.slane %v4786_v25, %v7412_v42  ;;  %v4893_v39 = vrot.slane %v4857_v31, %v7412_v42  ;;  %v4788_v45 = vpop.f32.mrb[31].mxu0  ;;  %v4859_v26 = vpop.f32.mrb[31].mxu1 }
 0xb1c   : > { %v4889_v28 = vrot.slane %v4788_v45, %v7412_v42  ;;  %v4897_v32 = vrot.slane %v4859_v26, %v7412_v42 }
 0xb1d   : > { %v4898_v4 = vmul.f32 %v4885_v57, %v3762_v49  ;;  %v4900_v61 = vmul.f32 %v4893_v39, %v3764_v37 }
 0xb1e   : > { %v4899_v42 = vmul.f32 %v4889_v28, %v3763_v3  ;;  %v4901_v18 = vmul.f32 %v4897_v32, %v3765_v41 }
 0xb1f   : > { %v4902_v60 = vmul.f32 %v4898_v4, %v4878_v19  ;;  %v4904_v0 = vmul.f32 %v4900_v61, %v4880_v5 }
 0xb20   : > { %v4903_v6 = vmul.f32 %v4899_v42, %v4879_v62  ;;  %v4905_v51 = vmul.f32 %v4901_v18, %v4881_v21 }
 0xb21   : > { %v4906_v56 = vadd.f32 %v4902_v60, %v3766_v53  ;;  %v4908_v17 = vadd.f32 %v4904_v0, %v3768_v22 }
 0xb22   : > { %v4907_v30 = vadd.f32 %v4903_v6, %v3767_v55  ;;  %v4909_v12 = vadd.f32 %v4905_v51, %v3769_v29 }
 0xb23   : > { %4910 = vst [vmem:[%s718_s4] sm:$0xff] %v4906_v56  ;;  %5171 = vst [vmem:[%s718_s4 + $0x10] sm:$0xff] %v4908_v17 }
 0xb24   : > { %4911 = vst [vmem:[%s718_s4 + $0x8] sm:$0xff] %v4907_v30  ;;  %5172 = vst [vmem:[%s718_s4 + $0x18] sm:$0xff] %v4909_v12 }
 0xb25 PF: > { %s32_s24 = sadd.s32 1, %s7031_s24  }
 0xb26   : > { %p29_p7 = scmp.ge.s32.totalorder %s32_s24, 4  }
 0xb28   :  { %31 = sbr.rel (!%p29_p7) target bundleno = 13 (0xd), region = 166 }
 0xb2f   :  { %4939 = vsyncpa [#allocation4], 1 }
 0xb30   :  { %4941 = vsyncpa [#allocation4 + $0x1], 1 }
 0xb31   :  { %4942 = vsyncpa [#allocation6], 1 }
 0xb32   :  { %4943 = vsyncpa [#allocation9], 1 }
 0xb33   :  { %4944 = vsyncpa [#allocation12], 1 }
 0xb34   :  { %4945 = vsyncpa [#allocation15], 1 }

</bundles_post_ra>
